<compile_context>
chip_gen: v7x
topology: tpu7x:2x2x1
jax: 0.10.0
libtpu: 0.0.40
codegen_flags: <defaults>
</compile_context>

<pallas_src>
import math
import functools

import jax
import jax.numpy as jnp
from jax import lax
from jax.experimental import pallas as pl
from jax.experimental.pallas import tpu as pltpu


def _round_up(x, m):
    return (x + m - 1) // m * m


# --------------------------- in-kernel helpers ------------------------------ #

def _row_col(shape, W):
    """Integer row/col coordinates of the flattened H*W lane axis, broadcast to
    `shape` (so masks never need an i1 broadcast)."""
    lane = lax.broadcasted_iota(jnp.int32, shape, len(shape) - 1)
    if W & (W - 1) == 0:                       # power-of-two fast path
        return lane >> (W.bit_length() - 1), lane & (W - 1)
    return lane // W, lane % W


def _lane_shift(arr, s):
    """out[..., p] = arr[..., (p + s) % n] for a static shift s (any sign)."""
    n = arr.shape[-1]
    s = s % n
    if s == 0:
        return arr
    doubled = jnp.concatenate([arr, arr], axis=-1)   # lane-aligned concat
    return doubled[:, s:s + n]


def _conv3x3_bn_relu(src, wmat, bias, d, H, W):
    """3x3 conv (dilation d, zero 'same' padding via masks) + folded-BN bias +
    ReLU on the (C, H*W) lane-dense layout, as a single MXU matmul.

    src  : (Cin_p, H*W) f32
    wmat : (Cout, 9*Cin_p) f32   (BN scale folded; K index = (ky*3+kx)*Cin_p+ci)
    bias : (Cout, 1) f32
    """
    n = H * W
    row, col = _row_col(src.shape, W)
    doubled = jnp.concatenate([src, src], axis=-1)   # build once, slice 9x
    parts = []
    for ky in range(3):
        for kx in range(3):
            dy, dx = (ky - 1) * d, (kx - 1) * d
            s = (dy * W + dx) % n
            sh = src if s == 0 else doubled[:, s:s + n]
            conds = []
            if dy > 0:
                conds.append(row < H - dy)
            elif dy < 0:
                conds.append(row >= -dy)
            if dx > 0:
                conds.append(col < W - dx)
            elif dx < 0:
                conds.append(col >= -dx)
            if conds:
                m = conds[0]
                for c in conds[1:]:
                    m = m & c
                sh = jnp.where(m, sh, 0.0)           # zero 'same' padding
            parts.append(sh)
    patches = jnp.concatenate(parts, axis=0)         # (9*Cin_p, H*W), aligned
    y = jnp.dot(wmat, patches, preferred_element_type=jnp.float32)
    return jnp.maximum(y + bias, 0.0)


def _directional_window_max(y, m, step, coord, limit):
    """Clipped one-sided sliding max on the flat (C, H*W) layout, built with
    log-step doubling.  step = +1/+W (forward) or -1/-W (backward):
      out[p] = max_{0<=j<m, coordinate stays inside [0, limit)} y[p + j*step]
    """
    if m <= 1:
        return y
    forward = step > 0

    def extend(arr, off):
        sh = _lane_shift(arr, off * step)
        ok = (coord < limit - off) if forward else (coord >= off)
        return jnp.where(ok, sh, -jnp.inf)

    powers = [y]                    # powers[k] = clipped window max, length 2**k
    length = 1
    while length * 2 <= m:
        powers.append(jnp.maximum(powers[-1], extend(powers[-1], length)))
        length *= 2
    res = None
    covered = 0
    for k in range(len(powers) - 1, -1, -1):         # binary decomposition of m
        if m & (1 << k):
            seg = powers[k] if covered == 0 else extend(powers[k], covered)
            res = seg if res is None else jnp.maximum(res, seg)
            covered += 1 << k
    return res


def _maxpool_same(y, k, H, W):
    """MaxPool2d(kernel=k, stride=1, padding=(k-1)//2) with -inf padding
    (PyTorch MaxPool2d semantics), computed separably on (C, H*W)."""
    pp = (k - 1) // 2
    m = pp + 1
    row, col = _row_col(y.shape, W)
    t = jnp.maximum(_directional_window_max(y, m, 1, col, W),
                    _directional_window_max(y, m, -1, col, W))
    return jnp.maximum(_directional_window_max(t, m, W, row, H),
                       _directional_window_max(t, m, -W, row, H))


# ------------------------------ fused kernel -------------------------------- #

def _dilated_block_kernel(x_ref, wb_ref, bb_ref, wf_ref, bf_ref, o_ref, *,
                          H, W, dilations, pool_ks):
    x = x_ref[...]                                   # (Cin_p, H*W) f32
    branch = []
    for i, d in enumerate(dilations):
        y = _conv3x3_bn_relu(x, wb_ref[i], bb_ref[i], d, H, W)
        if pool_ks[i] > 1:
            y = _maxpool_same(y, pool_ks[i], H, W)
        branch.append(y)
    cat = jnp.concatenate(branch, axis=0)            # (n_branch*Cout, H*W)
    out = _conv3x3_bn_relu(cat, wf_ref[...], bf_ref[...], 1, H, W)
    o_ref[...] = out.astype(o_ref.dtype)


# ------------------------------- wrapper ------------------------------------ #

def _fold_conv_bn(w_hwio, scale, cin_pad):
    """Fold BN scale into the conv weight and lay it out as the LHS of one MXU
    matmul: (Cout, 9*cin_pad), K index = (ky*3+kx)*cin_pad + ci."""
    kh, kw, cin, cout = w_hwio.shape
    wf = w_hwio * scale.reshape(1, 1, 1, cout)
    wf = jnp.transpose(wf, (3, 0, 1, 2)).reshape(cout, kh * kw, cin)
    if cin_pad != cin:
        wf = jnp.pad(wf, ((0, 0), (0, 0), (0, cin_pad - cin)))
    return wf.reshape(cout, kh * kw * cin_pad).astype(jnp.float32)


def dilated_block_forward(x_nchw, params, dilations=(1, 2, 5, 9)):
    """DilatedBlock.forward.  x_nchw: (N, Cin, H, W); returns (N, planes, H, W)."""
    N, Cin, H, W = x_nchw.shape
    HW = H * W
    n_lay = len(dilations)
    cout = params["branch"][0][0].shape[-1]
    cin_p = _round_up(Cin, 8)

    # NCHW -> (N, C, H*W) is a pure reshape (no transpose); pad channels to a
    # multiple of 8 so in-kernel im2col sublane concats stay tile-aligned.
    x = x_nchw.reshape(N, Cin, HW).astype(jnp.float32)
    if cin_p != Cin:
        x = jnp.pad(x, ((0, 0), (0, cin_p - Cin), (0, 0)))

    # Fold BN scale into the conv weights (inference mode) and stack branches.
    wb = jnp.stack([_fold_conv_bn(w, s, cin_p) for (w, s, _) in params["branch"]])
    bb = jnp.stack([b.reshape(cout, 1).astype(jnp.float32)
                    for (_, _, b) in params["branch"]])
    cmid = cout * n_lay
    wf = _fold_conv_bn(params["conv1x1"][0], params["conv1x1"][1], cmid)
    bf = params["conv1x1"][2].reshape(cout, 1).astype(jnp.float32)

    pool_ks = tuple((dilations[-1] - dilations[i]) * 2 + 1 if i < n_lay - 1 else 1
                    for i in range(n_lay))

    kern = functools.partial(_dilated_block_kernel, H=H, W=W,
                             dilations=tuple(dilations), pool_ks=pool_ks)

    out = pl.pallas_call(
        kern,
        out_shape=jax.ShapeDtypeStruct((N, cout, HW), x_nchw.dtype),
        grid=(N,),
        in_specs=[
            pl.BlockSpec((None, cin_p, HW), lambda n: (n, 0, 0)),
            pl.BlockSpec(wb.shape, lambda n: (0, 0, 0)),
            pl.BlockSpec(bb.shape, lambda n: (0, 0, 0)),
            pl.BlockSpec(wf.shape, lambda n: (0, 0)),
            pl.BlockSpec(bf.shape, lambda n: (0, 0)),
        ],
        out_specs=pl.BlockSpec((None, cout, HW), lambda n: (n, 0, 0)),
        compiler_params=pltpu.CompilerParams(dimension_semantics=("parallel",)),
    )(x, wb, bb, wf, bf)
    return out.reshape(N, cout, H, W)


# --------------------------- parameter creation ----------------------------- #

def _make_hdc_params(key, cin, cout, ksize=3):
    """Conv2d(+bias) + BatchNorm2d folded into (weight_hwio, scale, bias).

    # TODO(synk): BatchNorm is folded in inference mode (running stats);
    # training-mode batch statistics are not reproduced.
    """
    k1, k2, k3, k4, k5, k6 = jax.random.split(key, 6)
    fan_in = cin * ksize * ksize
    bound = 1.0 / math.sqrt(fan_in)
    w = jax.random.uniform(k1, (ksize, ksize, cin, cout), jnp.float32, -bound, bound)
    conv_b = jax.random.uniform(k2, (cout,), jnp.float32, -bound, bound)
    gamma = jax.random.uniform(k3, (cout,), jnp.float32, 0.5, 1.5)
    beta = 0.1 * jax.random.normal(k4, (cout,), jnp.float32)
    r_mean = 0.1 * jax.random.normal(k5, (cout,), jnp.float32)
    r_var = jax.random.uniform(k6, (cout,), jnp.float32, 0.5, 1.5)
    eps = 1e-5
    scale = gamma / jnp.sqrt(r_var + eps)
    bias = scale * (conv_b - r_mean) + beta
    return w, scale, bias


# ------------------------------ pure-JAX ref -------------------------------- #

def _ref_conv_bn_relu(x, w, scale, bias, d):
    y = lax.conv_general_dilated(
        x, w, window_strides=(1, 1), padding=[(d, d), (d, d)],
        rhs_dilation=(d, d), dimension_numbers=("NHWC", "HWIO", "NHWC"),
        precision=lax.Precision.HIGHEST)
    return jnp.maximum(y * scale.reshape(1, 1, 1, -1) + bias.reshape(1, 1, 1, -1), 0.0)


def _ref_maxpool_same(y, k):
    p = (k - 1) // 2
    return lax.reduce_window(y, -jnp.inf, lax.max, (1, k, k, 1), (1, 1, 1, 1),
                             padding=[(0, 0), (p, p), (p, p), (0, 0)])


def _ref_forward(x_nchw, params, dilations):
    x = jnp.transpose(x_nchw, (0, 2, 3, 1))
    outs = []
    for i, d in enumerate(dilations):
        w, scale, bias = params["branch"][i]
        y = _ref_conv_bn_relu(x, w, scale, bias, d)
        k = (dilations[-1] - d) * 2 + 1
        if i < len(dilations) - 1 and k > 1:
            y = _ref_maxpool_same(y, k)
        outs.append(y)
    cat = jnp.concatenate(outs, axis=-1)
    w, scale, bias = params["conv1x1"]
    out = _ref_conv_bn_relu(cat, w, scale, bias, 1)
    return jnp.transpose(out, (0, 3, 1, 2))


# ---------------------------------- main ------------------------------------ #

if __name__ == "__main__":
    key = jax.random.PRNGKey(0)
    N, Cin, H, W = 2, 4, 16, 16
    planes = 8
    dilations = (1, 2, 5, 9)

    kx, kp = jax.random.split(key)
    x = jax.random.normal(kx, (N, Cin, H, W), jnp.float32)

    bkeys = jax.random.split(kp, len(dilations) + 1)
    params = {
        "branch": [_make_hdc_params(bkeys[i], Cin, planes)
                   for i in range(len(dilations))],
        "conv1x1": _make_hdc_params(bkeys[-1], planes * len(dilations), planes),
    }

    fwd = jax.jit(functools.partial(dilated_block_forward, dilations=dilations))
    out = jax.block_until_ready(fwd(x, params))
    assert out.shape == (N, planes, H, W), out.shape

    ref = jax.block_until_ready(_ref_forward(x, params, dilations))
    assert jnp.allclose(out, ref, atol=1e-3, rtol=1e-3), \
        float(jnp.max(jnp.abs(out - ref)))

    print("KERNEL_OK")
</pallas_src>

<mosaic_0001>
module attributes {stable_mosaic.version = 11 : i64} {
  func.func @_dilated_block_kernel(%arg0: i32, %arg1: memref<1x8x256xf32, #tpu.memory_space<vmem>>, %arg2: memref<4x8x72xf32, #tpu.memory_space<vmem>>, %arg3: memref<4x8x1xf32, #tpu.memory_space<vmem>>, %arg4: memref<8x288xf32, #tpu.memory_space<vmem>>, %arg5: memref<8x1xf32, #tpu.memory_space<vmem>>, %arg6: memref<1x8x256xf32, #tpu.memory_space<vmem>>) attributes {dimension_semantics = [#tpu.dimension_semantics<parallel>], iteration_bounds = array<i64: 2>, scalar_prefetch = 0 : i64, scratch_operands = 0 : i64, tpu.core_type = #tpu.core_type<tc>, window_params = [{transform_indices = @transform_0, window_bounds = array<i64: 1, 8, 256>}, {pipeline_mode = #tpu.pipeline_mode<synchronous>, transform_indices = @transform_1, window_bounds = array<i64: 4, 8, 72>}, {pipeline_mode = #tpu.pipeline_mode<synchronous>, transform_indices = @transform_2, window_bounds = array<i64: 4, 8, 1>}, {pipeline_mode = #tpu.pipeline_mode<synchronous>, transform_indices = @transform_3, window_bounds = array<i64: 8, 288>}, {pipeline_mode = #tpu.pipeline_mode<synchronous>, transform_indices = @transform_4, window_bounds = array<i64: 8, 1>}, {transform_indices = @transform_5, window_bounds = array<i64: 1, 8, 256>}]} {
    %c0 = arith.constant 0 : index
    %c0_0 = arith.constant 0 : index
    %c0_1 = arith.constant 0 : index
    %0 = vector.load %arg1[%c0, %c0_0, %c0_1] : memref<1x8x256xf32, #tpu.memory_space<vmem>>, vector<1x8x256xf32>
    %1 = vector.shape_cast %0 : vector<1x8x256xf32> to vector<8x256xf32>
    %c0_2 = arith.constant 0 : index
    %c0_3 = arith.constant 0 : index
    %c0_4 = arith.constant 0 : index
    %2 = vector.load %arg2[%c0_2, %c0_3, %c0_4] : memref<4x8x72xf32, #tpu.memory_space<vmem>>, vector<1x8x72xf32>
    %3 = vector.shape_cast %2 : vector<1x8x72xf32> to vector<8x72xf32>
    %c0_5 = arith.constant 0 : index
    %c0_6 = arith.constant 0 : index
    %c0_7 = arith.constant 0 : index
    %4 = vector.load %arg3[%c0_5, %c0_6, %c0_7] : memref<4x8x1xf32, #tpu.memory_space<vmem>>, vector<1x8x1xf32>
    %5 = vector.shape_cast %4 : vector<1x8x1xf32> to vector<8x1xf32>
    %6 = tpu.iota {dimensions = array<i32: 1>} : vector<8x256xi32>
    %c4_i32 = arith.constant 4 : i32
    %7 = vector.broadcast %c4_i32 : i32 to vector<8x256xi32>
    %8 = arith.shrsi %6, %7 : vector<8x256xi32>
    %c15_i32 = arith.constant 15 : i32
    %9 = vector.broadcast %c15_i32 : i32 to vector<8x256xi32>
    %10 = arith.andi %6, %9 : vector<8x256xi32>
    %11 = tpu.concatenate %1, %1 in 1 : vector<8x256xf32>, vector<8x256xf32> -> vector<8x512xf32>
    %12 = vector.extract_strided_slice %11 {offsets = [0, 239], sizes = [8, 256], strides = [1, 1]} : vector<8x512xf32> to vector<8x256xf32>
    %c1_i32 = arith.constant 1 : i32
    %13 = vector.broadcast %c1_i32 : i32 to vector<8x256xi32>
    %14 = arith.cmpi sge, %8, %13 : vector<8x256xi32>
    %c1_i32_8 = arith.constant 1 : i32
    %15 = vector.broadcast %c1_i32_8 : i32 to vector<8x256xi32>
    %16 = arith.cmpi sge, %10, %15 : vector<8x256xi32>
    %17 = arith.andi %14, %16 : vector<8x256xi1>
    %cst = arith.constant 0.000000e+00 : f32
    %18 = vector.broadcast %cst : f32 to vector<8x256xf32>
    %19 = arith.select %17, %12, %18 : vector<8x256xi1>, vector<8x256xf32>
    %20 = vector.extract_strided_slice %11 {offsets = [0, 240], sizes = [8, 256], strides = [1, 1]} : vector<8x512xf32> to vector<8x256xf32>
    %c1_i32_9 = arith.constant 1 : i32
    %21 = vector.broadcast %c1_i32_9 : i32 to vector<8x256xi32>
    %22 = arith.cmpi sge, %8, %21 : vector<8x256xi32>
    %cst_10 = arith.constant 0.000000e+00 : f32
    %23 = vector.broadcast %cst_10 : f32 to vector<8x256xf32>
    %24 = arith.select %22, %20, %23 : vector<8x256xi1>, vector<8x256xf32>
    %25 = vector.extract_strided_slice %11 {offsets = [0, 241], sizes = [8, 256], strides = [1, 1]} : vector<8x512xf32> to vector<8x256xf32>
    %c1_i32_11 = arith.constant 1 : i32
    %26 = vector.broadcast %c1_i32_11 : i32 to vector<8x256xi32>
    %27 = arith.cmpi sge, %8, %26 : vector<8x256xi32>
    %c15_i32_12 = arith.constant 15 : i32
    %28 = vector.broadcast %c15_i32_12 : i32 to vector<8x256xi32>
    %29 = arith.cmpi slt, %10, %28 : vector<8x256xi32>
    %30 = arith.andi %27, %29 : vector<8x256xi1>
    %cst_13 = arith.constant 0.000000e+00 : f32
    %31 = vector.broadcast %cst_13 : f32 to vector<8x256xf32>
    %32 = arith.select %30, %25, %31 : vector<8x256xi1>, vector<8x256xf32>
    %33 = vector.extract_strided_slice %11 {offsets = [0, 255], sizes = [8, 256], strides = [1, 1]} : vector<8x512xf32> to vector<8x256xf32>
    %c1_i32_14 = arith.constant 1 : i32
    %34 = vector.broadcast %c1_i32_14 : i32 to vector<8x256xi32>
    %35 = arith.cmpi sge, %10, %34 : vector<8x256xi32>
    %cst_15 = arith.constant 0.000000e+00 : f32
    %36 = vector.broadcast %cst_15 : f32 to vector<8x256xf32>
    %37 = arith.select %35, %33, %36 : vector<8x256xi1>, vector<8x256xf32>
    %38 = vector.extract_strided_slice %11 {offsets = [0, 1], sizes = [8, 256], strides = [1, 1]} : vector<8x512xf32> to vector<8x256xf32>
    %c15_i32_16 = arith.constant 15 : i32
    %39 = vector.broadcast %c15_i32_16 : i32 to vector<8x256xi32>
    %40 = arith.cmpi slt, %10, %39 : vector<8x256xi32>
    %cst_17 = arith.constant 0.000000e+00 : f32
    %41 = vector.broadcast %cst_17 : f32 to vector<8x256xf32>
    %42 = arith.select %40, %38, %41 : vector<8x256xi1>, vector<8x256xf32>
    %43 = vector.extract_strided_slice %11 {offsets = [0, 15], sizes = [8, 256], strides = [1, 1]} : vector<8x512xf32> to vector<8x256xf32>
    %c15_i32_18 = arith.constant 15 : i32
    %44 = vector.broadcast %c15_i32_18 : i32 to vector<8x256xi32>
    %45 = arith.cmpi slt, %8, %44 : vector<8x256xi32>
    %c1_i32_19 = arith.constant 1 : i32
    %46 = vector.broadcast %c1_i32_19 : i32 to vector<8x256xi32>
    %47 = arith.cmpi sge, %10, %46 : vector<8x256xi32>
    %48 = arith.andi %45, %47 : vector<8x256xi1>
    %cst_20 = arith.constant 0.000000e+00 : f32
    %49 = vector.broadcast %cst_20 : f32 to vector<8x256xf32>
    %50 = arith.select %48, %43, %49 : vector<8x256xi1>, vector<8x256xf32>
    %51 = vector.extract_strided_slice %11 {offsets = [0, 16], sizes = [8, 256], strides = [1, 1]} : vector<8x512xf32> to vector<8x256xf32>
    %c15_i32_21 = arith.constant 15 : i32
    %52 = vector.broadcast %c15_i32_21 : i32 to vector<8x256xi32>
    %53 = arith.cmpi slt, %8, %52 : vector<8x256xi32>
    %cst_22 = arith.constant 0.000000e+00 : f32
    %54 = vector.broadcast %cst_22 : f32 to vector<8x256xf32>
    %55 = arith.select %53, %51, %54 : vector<8x256xi1>, vector<8x256xf32>
    %56 = vector.extract_strided_slice %11 {offsets = [0, 17], sizes = [8, 256], strides = [1, 1]} : vector<8x512xf32> to vector<8x256xf32>
    %c15_i32_23 = arith.constant 15 : i32
    %57 = vector.broadcast %c15_i32_23 : i32 to vector<8x256xi32>
    %58 = arith.cmpi slt, %8, %57 : vector<8x256xi32>
    %c15_i32_24 = arith.constant 15 : i32
    %59 = vector.broadcast %c15_i32_24 : i32 to vector<8x256xi32>
    %60 = arith.cmpi slt, %10, %59 : vector<8x256xi32>
    %61 = arith.andi %58, %60 : vector<8x256xi1>
    %cst_25 = arith.constant 0.000000e+00 : f32
    %62 = vector.broadcast %cst_25 : f32 to vector<8x256xf32>
    %63 = arith.select %61, %56, %62 : vector<8x256xi1>, vector<8x256xf32>
    %64 = tpu.concatenate %19, %24, %32, %37, %1, %42, %50, %55, %63 in 0 : vector<8x256xf32>, vector<8x256xf32>, vector<8x256xf32>, vector<8x256xf32>, vector<8x256xf32>, vector<8x256xf32>, vector<8x256xf32>, vector<8x256xf32>, vector<8x256xf32> -> vector<72x256xf32>
    %cst_26 = arith.constant dense<0.000000e+00> : vector<8x256xf32>
    %65 = tpu.matmul %3, %64, %cst_26 {dimension_numbers = #tpu.dot_dimension_numbers<[1], [0], [0], [1], [0, 0, 1, 1], [], []>} : vector<8x72xf32>, vector<72x256xf32>, vector<8x256xf32> -> vector<8x256xf32>
    %66 = vector.broadcast %5 : vector<8x1xf32> to vector<8x256xf32>
    %67 = arith.addf %65, %66 : vector<8x256xf32>
    %cst_27 = arith.constant 0.000000e+00 : f32
    %68 = vector.broadcast %cst_27 : f32 to vector<8x256xf32>
    %69 = arith.maximumf %67, %68 : vector<8x256xf32>
    %70 = tpu.iota {dimensions = array<i32: 1>} : vector<8x256xi32>
    %c4_i32_28 = arith.constant 4 : i32
    %71 = vector.broadcast %c4_i32_28 : i32 to vector<8x256xi32>
    %72 = arith.shrsi %70, %71 : vector<8x256xi32>
    %c15_i32_29 = arith.constant 15 : i32
    %73 = vector.broadcast %c15_i32_29 : i32 to vector<8x256xi32>
    %74 = arith.andi %70, %73 : vector<8x256xi32>
    %75 = tpu.concatenate %69, %69 in 1 : vector<8x256xf32>, vector<8x256xf32> -> vector<8x512xf32>
    %76 = vector.extract_strided_slice %75 {offsets = [0, 1], sizes = [8, 256], strides = [1, 1]} : vector<8x512xf32> to vector<8x256xf32>
    %c15_i32_30 = arith.constant 15 : i32
    %77 = vector.broadcast %c15_i32_30 : i32 to vector<8x256xi32>
    %78 = arith.cmpi slt, %74, %77 : vector<8x256xi32>
    %cst_31 = arith.constant 0xFF800000 : f32
    %79 = vector.broadcast %cst_31 : f32 to vector<8x256xf32>
    %80 = arith.select %78, %76, %79 : vector<8x256xi1>, vector<8x256xf32>
    %81 = arith.maximumf %69, %80 : vector<8x256xf32>
    %82 = tpu.concatenate %81, %81 in 1 : vector<8x256xf32>, vector<8x256xf32> -> vector<8x512xf32>
    %83 = vector.extract_strided_slice %82 {offsets = [0, 2], sizes = [8, 256], strides = [1, 1]} : vector<8x512xf32> to vector<8x256xf32>
    %c14_i32 = arith.constant 14 : i32
    %84 = vector.broadcast %c14_i32 : i32 to vector<8x256xi32>
    %85 = arith.cmpi slt, %74, %84 : vector<8x256xi32>
    %cst_32 = arith.constant 0xFF800000 : f32
    %86 = vector.broadcast %cst_32 : f32 to vector<8x256xf32>
    %87 = arith.select %85, %83, %86 : vector<8x256xi1>, vector<8x256xf32>
    %88 = arith.maximumf %81, %87 : vector<8x256xf32>
    %89 = tpu.concatenate %88, %88 in 1 : vector<8x256xf32>, vector<8x256xf32> -> vector<8x512xf32>
    %90 = vector.extract_strided_slice %89 {offsets = [0, 4], sizes = [8, 256], strides = [1, 1]} : vector<8x512xf32> to vector<8x256xf32>
    %c12_i32 = arith.constant 12 : i32
    %91 = vector.broadcast %c12_i32 : i32 to vector<8x256xi32>
    %92 = arith.cmpi slt, %74, %91 : vector<8x256xi32>
    %cst_33 = arith.constant 0xFF800000 : f32
    %93 = vector.broadcast %cst_33 : f32 to vector<8x256xf32>
    %94 = arith.select %92, %90, %93 : vector<8x256xi1>, vector<8x256xf32>
    %95 = arith.maximumf %88, %94 : vector<8x256xf32>
    %96 = tpu.concatenate %69, %69 in 1 : vector<8x256xf32>, vector<8x256xf32> -> vector<8x512xf32>
    %97 = vector.extract_strided_slice %96 {offsets = [0, 8], sizes = [8, 256], strides = [1, 1]} : vector<8x512xf32> to vector<8x256xf32>
    %c8_i32 = arith.constant 8 : i32
    %98 = vector.broadcast %c8_i32 : i32 to vector<8x256xi32>
    %99 = arith.cmpi slt, %74, %98 : vector<8x256xi32>
    %cst_34 = arith.constant 0xFF800000 : f32
    %100 = vector.broadcast %cst_34 : f32 to vector<8x256xf32>
    %101 = arith.select %99, %97, %100 : vector<8x256xi1>, vector<8x256xf32>
    %102 = arith.maximumf %95, %101 : vector<8x256xf32>
    %103 = tpu.concatenate %69, %69 in 1 : vector<8x256xf32>, vector<8x256xf32> -> vector<8x512xf32>
    %104 = vector.extract_strided_slice %103 {offsets = [0, 255], sizes = [8, 256], strides = [1, 1]} : vector<8x512xf32> to vector<8x256xf32>
    %c1_i32_35 = arith.constant 1 : i32
    %105 = vector.broadcast %c1_i32_35 : i32 to vector<8x256xi32>
    %106 = arith.cmpi sge, %74, %105 : vector<8x256xi32>
    %cst_36 = arith.constant 0xFF800000 : f32
    %107 = vector.broadcast %cst_36 : f32 to vector<8x256xf32>
    %108 = arith.select %106, %104, %107 : vector<8x256xi1>, vector<8x256xf32>
    %109 = arith.maximumf %69, %108 : vector<8x256xf32>
    %110 = tpu.concatenate %109, %109 in 1 : vector<8x256xf32>, vector<8x256xf32> -> vector<8x512xf32>
    %111 = vector.extract_strided_slice %110 {offsets = [0, 254], sizes = [8, 256], strides = [1, 1]} : vector<8x512xf32> to vector<8x256xf32>
    %c2_i32 = arith.constant 2 : i32
    %112 = vector.broadcast %c2_i32 : i32 to vector<8x256xi32>
    %113 = arith.cmpi sge, %74, %112 : vector<8x256xi32>
    %cst_37 = arith.constant 0xFF800000 : f32
    %114 = vector.broadcast %cst_37 : f32 to vector<8x256xf32>
    %115 = arith.select %113, %111, %114 : vector<8x256xi1>, vector<8x256xf32>
    %116 = arith.maximumf %109, %115 : vector<8x256xf32>
    %117 = tpu.concatenate %116, %116 in 1 : vector<8x256xf32>, vector<8x256xf32> -> vector<8x512xf32>
    %118 = vector.extract_strided_slice %117 {offsets = [0, 252], sizes = [8, 256], strides = [1, 1]} : vector<8x512xf32> to vector<8x256xf32>
    %c4_i32_38 = arith.constant 4 : i32
    %119 = vector.broadcast %c4_i32_38 : i32 to vector<8x256xi32>
    %120 = arith.cmpi sge, %74, %119 : vector<8x256xi32>
    %cst_39 = arith.constant 0xFF800000 : f32
    %121 = vector.broadcast %cst_39 : f32 to vector<8x256xf32>
    %122 = arith.select %120, %118, %121 : vector<8x256xi1>, vector<8x256xf32>
    %123 = arith.maximumf %116, %122 : vector<8x256xf32>
    %124 = tpu.concatenate %69, %69 in 1 : vector<8x256xf32>, vector<8x256xf32> -> vector<8x512xf32>
    %125 = vector.extract_strided_slice %124 {offsets = [0, 248], sizes = [8, 256], strides = [1, 1]} : vector<8x512xf32> to vector<8x256xf32>
    %c8_i32_40 = arith.constant 8 : i32
    %126 = vector.broadcast %c8_i32_40 : i32 to vector<8x256xi32>
    %127 = arith.cmpi sge, %74, %126 : vector<8x256xi32>
    %cst_41 = arith.constant 0xFF800000 : f32
    %128 = vector.broadcast %cst_41 : f32 to vector<8x256xf32>
    %129 = arith.select %127, %125, %128 : vector<8x256xi1>, vector<8x256xf32>
    %130 = arith.maximumf %123, %129 : vector<8x256xf32>
    %131 = arith.maximumf %102, %130 : vector<8x256xf32>
    %132 = tpu.concatenate %131, %131 in 1 : vector<8x256xf32>, vector<8x256xf32> -> vector<8x512xf32>
    %133 = vector.extract_strided_slice %132 {offsets = [0, 16], sizes = [8, 256], strides = [1, 1]} : vector<8x512xf32> to vector<8x256xf32>
    %c15_i32_42 = arith.constant 15 : i32
    %134 = vector.broadcast %c15_i32_42 : i32 to vector<8x256xi32>
    %135 = arith.cmpi slt, %72, %134 : vector<8x256xi32>
    %cst_43 = arith.constant 0xFF800000 : f32
    %136 = vector.broadcast %cst_43 : f32 to vector<8x256xf32>
    %137 = arith.select %135, %133, %136 : vector<8x256xi1>, vector<8x256xf32>
    %138 = arith.maximumf %131, %137 : vector<8x256xf32>
    %139 = tpu.concatenate %138, %138 in 1 : vector<8x256xf32>, vector<8x256xf32> -> vector<8x512xf32>
    %140 = vector.extract_strided_slice %139 {offsets = [0, 32], sizes = [8, 256], strides = [1, 1]} : vector<8x512xf32> to vector<8x256xf32>
    %c14_i32_44 = arith.constant 14 : i32
    %141 = vector.broadcast %c14_i32_44 : i32 to vector<8x256xi32>
    %142 = arith.cmpi slt, %72, %141 : vector<8x256xi32>
    %cst_45 = arith.constant 0xFF800000 : f32
    %143 = vector.broadcast %cst_45 : f32 to vector<8x256xf32>
    %144 = arith.select %142, %140, %143 : vector<8x256xi1>, vector<8x256xf32>
    %145 = arith.maximumf %138, %144 : vector<8x256xf32>
    %146 = tpu.concatenate %145, %145 in 1 : vector<8x256xf32>, vector<8x256xf32> -> vector<8x512xf32>
    %147 = vector.extract_strided_slice %146 {offsets = [0, 64], sizes = [8, 256], strides = [1, 1]} : vector<8x512xf32> to vector<8x256xf32>
    %c12_i32_46 = arith.constant 12 : i32
    %148 = vector.broadcast %c12_i32_46 : i32 to vector<8x256xi32>
    %149 = arith.cmpi slt, %72, %148 : vector<8x256xi32>
    %cst_47 = arith.constant 0xFF800000 : f32
    %150 = vector.broadcast %cst_47 : f32 to vector<8x256xf32>
    %151 = arith.select %149, %147, %150 : vector<8x256xi1>, vector<8x256xf32>
    %152 = arith.maximumf %145, %151 : vector<8x256xf32>
    %153 = tpu.concatenate %131, %131 in 1 : vector<8x256xf32>, vector<8x256xf32> -> vector<8x512xf32>
    %154 = vector.extract_strided_slice %153 {offsets = [0, 128], sizes = [8, 256], strides = [1, 1]} : vector<8x512xf32> to vector<8x256xf32>
    %c8_i32_48 = arith.constant 8 : i32
    %155 = vector.broadcast %c8_i32_48 : i32 to vector<8x256xi32>
    %156 = arith.cmpi slt, %72, %155 : vector<8x256xi32>
    %cst_49 = arith.constant 0xFF800000 : f32
    %157 = vector.broadcast %cst_49 : f32 to vector<8x256xf32>
    %158 = arith.select %156, %154, %157 : vector<8x256xi1>, vector<8x256xf32>
    %159 = arith.maximumf %152, %158 : vector<8x256xf32>
    %160 = tpu.concatenate %131, %131 in 1 : vector<8x256xf32>, vector<8x256xf32> -> vector<8x512xf32>
    %161 = vector.extract_strided_slice %160 {offsets = [0, 240], sizes = [8, 256], strides = [1, 1]} : vector<8x512xf32> to vector<8x256xf32>
    %c1_i32_50 = arith.constant 1 : i32
    %162 = vector.broadcast %c1_i32_50 : i32 to vector<8x256xi32>
    %163 = arith.cmpi sge, %72, %162 : vector<8x256xi32>
    %cst_51 = arith.constant 0xFF800000 : f32
    %164 = vector.broadcast %cst_51 : f32 to vector<8x256xf32>
    %165 = arith.select %163, %161, %164 : vector<8x256xi1>, vector<8x256xf32>
    %166 = arith.maximumf %131, %165 : vector<8x256xf32>
    %167 = tpu.concatenate %166, %166 in 1 : vector<8x256xf32>, vector<8x256xf32> -> vector<8x512xf32>
    %168 = vector.extract_strided_slice %167 {offsets = [0, 224], sizes = [8, 256], strides = [1, 1]} : vector<8x512xf32> to vector<8x256xf32>
    %c2_i32_52 = arith.constant 2 : i32
    %169 = vector.broadcast %c2_i32_52 : i32 to vector<8x256xi32>
    %170 = arith.cmpi sge, %72, %169 : vector<8x256xi32>
    %cst_53 = arith.constant 0xFF800000 : f32
    %171 = vector.broadcast %cst_53 : f32 to vector<8x256xf32>
    %172 = arith.select %170, %168, %171 : vector<8x256xi1>, vector<8x256xf32>
    %173 = arith.maximumf %166, %172 : vector<8x256xf32>
    %174 = tpu.concatenate %173, %173 in 1 : vector<8x256xf32>, vector<8x256xf32> -> vector<8x512xf32>
    %175 = vector.extract_strided_slice %174 {offsets = [0, 192], sizes = [8, 256], strides = [1, 1]} : vector<8x512xf32> to vector<8x256xf32>
    %c4_i32_54 = arith.constant 4 : i32
    %176 = vector.broadcast %c4_i32_54 : i32 to vector<8x256xi32>
    %177 = arith.cmpi sge, %72, %176 : vector<8x256xi32>
    %cst_55 = arith.constant 0xFF800000 : f32
    %178 = vector.broadcast %cst_55 : f32 to vector<8x256xf32>
    %179 = arith.select %177, %175, %178 : vector<8x256xi1>, vector<8x256xf32>
    %180 = arith.maximumf %173, %179 : vector<8x256xf32>
    %181 = tpu.concatenate %131, %131 in 1 : vector<8x256xf32>, vector<8x256xf32> -> vector<8x512xf32>
    %182 = vector.extract_strided_slice %181 {offsets = [0, 128], sizes = [8, 256], strides = [1, 1]} : vector<8x512xf32> to vector<8x256xf32>
    %c8_i32_56 = arith.constant 8 : i32
    %183 = vector.broadcast %c8_i32_56 : i32 to vector<8x256xi32>
    %184 = arith.cmpi sge, %72, %183 : vector<8x256xi32>
    %cst_57 = arith.constant 0xFF800000 : f32
    %185 = vector.broadcast %cst_57 : f32 to vector<8x256xf32>
    %186 = arith.select %184, %182, %185 : vector<8x256xi1>, vector<8x256xf32>
    %187 = arith.maximumf %180, %186 : vector<8x256xf32>
    %188 = arith.maximumf %159, %187 : vector<8x256xf32>
    %c1 = arith.constant 1 : index
    %c0_58 = arith.constant 0 : index
    %c0_59 = arith.constant 0 : index
    %189 = vector.load %arg2[%c1, %c0_58, %c0_59] : memref<4x8x72xf32, #tpu.memory_space<vmem>>, vector<1x8x72xf32>
    %190 = vector.shape_cast %189 : vector<1x8x72xf32> to vector<8x72xf32>
    %c1_60 = arith.constant 1 : index
    %c0_61 = arith.constant 0 : index
    %c0_62 = arith.constant 0 : index
    %191 = vector.load %arg3[%c1_60, %c0_61, %c0_62] : memref<4x8x1xf32, #tpu.memory_space<vmem>>, vector<1x8x1xf32>
    %192 = vector.shape_cast %191 : vector<1x8x1xf32> to vector<8x1xf32>
    %193 = tpu.iota {dimensions = array<i32: 1>} : vector<8x256xi32>
    %c4_i32_63 = arith.constant 4 : i32
    %194 = vector.broadcast %c4_i32_63 : i32 to vector<8x256xi32>
    %195 = arith.shrsi %193, %194 : vector<8x256xi32>
    %c15_i32_64 = arith.constant 15 : i32
    %196 = vector.broadcast %c15_i32_64 : i32 to vector<8x256xi32>
    %197 = arith.andi %193, %196 : vector<8x256xi32>
    %198 = tpu.concatenate %1, %1 in 1 : vector<8x256xf32>, vector<8x256xf32> -> vector<8x512xf32>
    %199 = vector.extract_strided_slice %198 {offsets = [0, 222], sizes = [8, 256], strides = [1, 1]} : vector<8x512xf32> to vector<8x256xf32>
    %c2_i32_65 = arith.constant 2 : i32
    %200 = vector.broadcast %c2_i32_65 : i32 to vector<8x256xi32>
    %201 = arith.cmpi sge, %195, %200 : vector<8x256xi32>
    %c2_i32_66 = arith.constant 2 : i32
    %202 = vector.broadcast %c2_i32_66 : i32 to vector<8x256xi32>
    %203 = arith.cmpi sge, %197, %202 : vector<8x256xi32>
    %204 = arith.andi %201, %203 : vector<8x256xi1>
    %cst_67 = arith.constant 0.000000e+00 : f32
    %205 = vector.broadcast %cst_67 : f32 to vector<8x256xf32>
    %206 = arith.select %204, %199, %205 : vector<8x256xi1>, vector<8x256xf32>
    %207 = vector.extract_strided_slice %198 {offsets = [0, 224], sizes = [8, 256], strides = [1, 1]} : vector<8x512xf32> to vector<8x256xf32>
    %c2_i32_68 = arith.constant 2 : i32
    %208 = vector.broadcast %c2_i32_68 : i32 to vector<8x256xi32>
    %209 = arith.cmpi sge, %195, %208 : vector<8x256xi32>
    %cst_69 = arith.constant 0.000000e+00 : f32
    %210 = vector.broadcast %cst_69 : f32 to vector<8x256xf32>
    %211 = arith.select %209, %207, %210 : vector<8x256xi1>, vector<8x256xf32>
    %212 = vector.extract_strided_slice %198 {offsets = [0, 226], sizes = [8, 256], strides = [1, 1]} : vector<8x512xf32> to vector<8x256xf32>
    %c2_i32_70 = arith.constant 2 : i32
    %213 = vector.broadcast %c2_i32_70 : i32 to vector<8x256xi32>
    %214 = arith.cmpi sge, %195, %213 : vector<8x256xi32>
    %c14_i32_71 = arith.constant 14 : i32
    %215 = vector.broadcast %c14_i32_71 : i32 to vector<8x256xi32>
    %216 = arith.cmpi slt, %197, %215 : vector<8x256xi32>
    %217 = arith.andi %214, %216 : vector<8x256xi1>
    %cst_72 = arith.constant 0.000000e+00 : f32
    %218 = vector.broadcast %cst_72 : f32 to vector<8x256xf32>
    %219 = arith.select %217, %212, %218 : vector<8x256xi1>, vector<8x256xf32>
    %220 = vector.extract_strided_slice %198 {offsets = [0, 254], sizes = [8, 256], strides = [1, 1]} : vector<8x512xf32> to vector<8x256xf32>
    %c2_i32_73 = arith.constant 2 : i32
    %221 = vector.broadcast %c2_i32_73 : i32 to vector<8x256xi32>
    %222 = arith.cmpi sge, %197, %221 : vector<8x256xi32>
    %cst_74 = arith.constant 0.000000e+00 : f32
    %223 = vector.broadcast %cst_74 : f32 to vector<8x256xf32>
    %224 = arith.select %222, %220, %223 : vector<8x256xi1>, vector<8x256xf32>
    %225 = vector.extract_strided_slice %198 {offsets = [0, 2], sizes = [8, 256], strides = [1, 1]} : vector<8x512xf32> to vector<8x256xf32>
    %c14_i32_75 = arith.constant 14 : i32
    %226 = vector.broadcast %c14_i32_75 : i32 to vector<8x256xi32>
    %227 = arith.cmpi slt, %197, %226 : vector<8x256xi32>
    %cst_76 = arith.constant 0.000000e+00 : f32
    %228 = vector.broadcast %cst_76 : f32 to vector<8x256xf32>
    %229 = arith.select %227, %225, %228 : vector<8x256xi1>, vector<8x256xf32>
    %230 = vector.extract_strided_slice %198 {offsets = [0, 30], sizes = [8, 256], strides = [1, 1]} : vector<8x512xf32> to vector<8x256xf32>
    %c14_i32_77 = arith.constant 14 : i32
    %231 = vector.broadcast %c14_i32_77 : i32 to vector<8x256xi32>
    %232 = arith.cmpi slt, %195, %231 : vector<8x256xi32>
    %c2_i32_78 = arith.constant 2 : i32
    %233 = vector.broadcast %c2_i32_78 : i32 to vector<8x256xi32>
    %234 = arith.cmpi sge, %197, %233 : vector<8x256xi32>
    %235 = arith.andi %232, %234 : vector<8x256xi1>
    %cst_79 = arith.constant 0.000000e+00 : f32
    %236 = vector.broadcast %cst_79 : f32 to vector<8x256xf32>
    %237 = arith.select %235, %230, %236 : vector<8x256xi1>, vector<8x256xf32>
    %238 = vector.extract_strided_slice %198 {offsets = [0, 32], sizes = [8, 256], strides = [1, 1]} : vector<8x512xf32> to vector<8x256xf32>
    %c14_i32_80 = arith.constant 14 : i32
    %239 = vector.broadcast %c14_i32_80 : i32 to vector<8x256xi32>
    %240 = arith.cmpi slt, %195, %239 : vector<8x256xi32>
    %cst_81 = arith.constant 0.000000e+00 : f32
    %241 = vector.broadcast %cst_81 : f32 to vector<8x256xf32>
    %242 = arith.select %240, %238, %241 : vector<8x256xi1>, vector<8x256xf32>
    %243 = vector.extract_strided_slice %198 {offsets = [0, 34], sizes = [8, 256], strides = [1, 1]} : vector<8x512xf32> to vector<8x256xf32>
    %c14_i32_82 = arith.constant 14 : i32
    %244 = vector.broadcast %c14_i32_82 : i32 to vector<8x256xi32>
    %245 = arith.cmpi slt, %195, %244 : vector<8x256xi32>
    %c14_i32_83 = arith.constant 14 : i32
    %246 = vector.broadcast %c14_i32_83 : i32 to vector<8x256xi32>
    %247 = arith.cmpi slt, %197, %246 : vector<8x256xi32>
    %248 = arith.andi %245, %247 : vector<8x256xi1>
    %cst_84 = arith.constant 0.000000e+00 : f32
    %249 = vector.broadcast %cst_84 : f32 to vector<8x256xf32>
    %250 = arith.select %248, %243, %249 : vector<8x256xi1>, vector<8x256xf32>
    %251 = tpu.concatenate %206, %211, %219, %224, %1, %229, %237, %242, %250 in 0 : vector<8x256xf32>, vector<8x256xf32>, vector<8x256xf32>, vector<8x256xf32>, vector<8x256xf32>, vector<8x256xf32>, vector<8x256xf32>, vector<8x256xf32>, vector<8x256xf32> -> vector<72x256xf32>
    %cst_85 = arith.constant dense<0.000000e+00> : vector<8x256xf32>
    %252 = tpu.matmul %190, %251, %cst_85 {dimension_numbers = #tpu.dot_dimension_numbers<[1], [0], [0], [1], [0, 0, 1, 1], [], []>} : vector<8x72xf32>, vector<72x256xf32>, vector<8x256xf32> -> vector<8x256xf32>
    %253 = vector.broadcast %192 : vector<8x1xf32> to vector<8x256xf32>
    %254 = arith.addf %252, %253 : vector<8x256xf32>
    %cst_86 = arith.constant 0.000000e+00 : f32
    %255 = vector.broadcast %cst_86 : f32 to vector<8x256xf32>
    %256 = arith.maximumf %254, %255 : vector<8x256xf32>
    %257 = tpu.iota {dimensions = array<i32: 1>} : vector<8x256xi32>
    %c4_i32_87 = arith.constant 4 : i32
    %258 = vector.broadcast %c4_i32_87 : i32 to vector<8x256xi32>
    %259 = arith.shrsi %257, %258 : vector<8x256xi32>
    %c15_i32_88 = arith.constant 15 : i32
    %260 = vector.broadcast %c15_i32_88 : i32 to vector<8x256xi32>
    %261 = arith.andi %257, %260 : vector<8x256xi32>
    %262 = tpu.concatenate %256, %256 in 1 : vector<8x256xf32>, vector<8x256xf32> -> vector<8x512xf32>
    %263 = vector.extract_strided_slice %262 {offsets = [0, 1], sizes = [8, 256], strides = [1, 1]} : vector<8x512xf32> to vector<8x256xf32>
    %c15_i32_89 = arith.constant 15 : i32
    %264 = vector.broadcast %c15_i32_89 : i32 to vector<8x256xi32>
    %265 = arith.cmpi slt, %261, %264 : vector<8x256xi32>
    %cst_90 = arith.constant 0xFF800000 : f32
    %266 = vector.broadcast %cst_90 : f32 to vector<8x256xf32>
    %267 = arith.select %265, %263, %266 : vector<8x256xi1>, vector<8x256xf32>
    %268 = arith.maximumf %256, %267 : vector<8x256xf32>
    %269 = tpu.concatenate %268, %268 in 1 : vector<8x256xf32>, vector<8x256xf32> -> vector<8x512xf32>
    %270 = vector.extract_strided_slice %269 {offsets = [0, 2], sizes = [8, 256], strides = [1, 1]} : vector<8x512xf32> to vector<8x256xf32>
    %c14_i32_91 = arith.constant 14 : i32
    %271 = vector.broadcast %c14_i32_91 : i32 to vector<8x256xi32>
    %272 = arith.cmpi slt, %261, %271 : vector<8x256xi32>
    %cst_92 = arith.constant 0xFF800000 : f32
    %273 = vector.broadcast %cst_92 : f32 to vector<8x256xf32>
    %274 = arith.select %272, %270, %273 : vector<8x256xi1>, vector<8x256xf32>
    %275 = arith.maximumf %268, %274 : vector<8x256xf32>
    %276 = tpu.concatenate %275, %275 in 1 : vector<8x256xf32>, vector<8x256xf32> -> vector<8x512xf32>
    %277 = vector.extract_strided_slice %276 {offsets = [0, 4], sizes = [8, 256], strides = [1, 1]} : vector<8x512xf32> to vector<8x256xf32>
    %c12_i32_93 = arith.constant 12 : i32
    %278 = vector.broadcast %c12_i32_93 : i32 to vector<8x256xi32>
    %279 = arith.cmpi slt, %261, %278 : vector<8x256xi32>
    %cst_94 = arith.constant 0xFF800000 : f32
    %280 = vector.broadcast %cst_94 : f32 to vector<8x256xf32>
    %281 = arith.select %279, %277, %280 : vector<8x256xi1>, vector<8x256xf32>
    %282 = arith.maximumf %275, %281 : vector<8x256xf32>
    %283 = tpu.concatenate %256, %256 in 1 : vector<8x256xf32>, vector<8x256xf32> -> vector<8x512xf32>
    %284 = vector.extract_strided_slice %283 {offsets = [0, 255], sizes = [8, 256], strides = [1, 1]} : vector<8x512xf32> to vector<8x256xf32>
    %c1_i32_95 = arith.constant 1 : i32
    %285 = vector.broadcast %c1_i32_95 : i32 to vector<8x256xi32>
    %286 = arith.cmpi sge, %261, %285 : vector<8x256xi32>
    %cst_96 = arith.constant 0xFF800000 : f32
    %287 = vector.broadcast %cst_96 : f32 to vector<8x256xf32>
    %288 = arith.select %286, %284, %287 : vector<8x256xi1>, vector<8x256xf32>
    %289 = arith.maximumf %256, %288 : vector<8x256xf32>
    %290 = tpu.concatenate %289, %289 in 1 : vector<8x256xf32>, vector<8x256xf32> -> vector<8x512xf32>
    %291 = vector.extract_strided_slice %290 {offsets = [0, 254], sizes = [8, 256], strides = [1, 1]} : vector<8x512xf32> to vector<8x256xf32>
    %c2_i32_97 = arith.constant 2 : i32
    %292 = vector.broadcast %c2_i32_97 : i32 to vector<8x256xi32>
    %293 = arith.cmpi sge, %261, %292 : vector<8x256xi32>
    %cst_98 = arith.constant 0xFF800000 : f32
    %294 = vector.broadcast %cst_98 : f32 to vector<8x256xf32>
    %295 = arith.select %293, %291, %294 : vector<8x256xi1>, vector<8x256xf32>
    %296 = arith.maximumf %289, %295 : vector<8x256xf32>
    %297 = tpu.concatenate %296, %296 in 1 : vector<8x256xf32>, vector<8x256xf32> -> vector<8x512xf32>
    %298 = vector.extract_strided_slice %297 {offsets = [0, 252], sizes = [8, 256], strides = [1, 1]} : vector<8x512xf32> to vector<8x256xf32>
    %c4_i32_99 = arith.constant 4 : i32
    %299 = vector.broadcast %c4_i32_99 : i32 to vector<8x256xi32>
    %300 = arith.cmpi sge, %261, %299 : vector<8x256xi32>
    %cst_100 = arith.constant 0xFF800000 : f32
    %301 = vector.broadcast %cst_100 : f32 to vector<8x256xf32>
    %302 = arith.select %300, %298, %301 : vector<8x256xi1>, vector<8x256xf32>
    %303 = arith.maximumf %296, %302 : vector<8x256xf32>
    %304 = arith.maximumf %282, %303 : vector<8x256xf32>
    %305 = tpu.concatenate %304, %304 in 1 : vector<8x256xf32>, vector<8x256xf32> -> vector<8x512xf32>
    %306 = vector.extract_strided_slice %305 {offsets = [0, 16], sizes = [8, 256], strides = [1, 1]} : vector<8x512xf32> to vector<8x256xf32>
    %c15_i32_101 = arith.constant 15 : i32
    %307 = vector.broadcast %c15_i32_101 : i32 to vector<8x256xi32>
    %308 = arith.cmpi slt, %259, %307 : vector<8x256xi32>
    %cst_102 = arith.constant 0xFF800000 : f32
    %309 = vector.broadcast %cst_102 : f32 to vector<8x256xf32>
    %310 = arith.select %308, %306, %309 : vector<8x256xi1>, vector<8x256xf32>
    %311 = arith.maximumf %304, %310 : vector<8x256xf32>
    %312 = tpu.concatenate %311, %311 in 1 : vector<8x256xf32>, vector<8x256xf32> -> vector<8x512xf32>
    %313 = vector.extract_strided_slice %312 {offsets = [0, 32], sizes = [8, 256], strides = [1, 1]} : vector<8x512xf32> to vector<8x256xf32>
    %c14_i32_103 = arith.constant 14 : i32
    %314 = vector.broadcast %c14_i32_103 : i32 to vector<8x256xi32>
    %315 = arith.cmpi slt, %259, %314 : vector<8x256xi32>
    %cst_104 = arith.constant 0xFF800000 : f32
    %316 = vector.broadcast %cst_104 : f32 to vector<8x256xf32>
    %317 = arith.select %315, %313, %316 : vector<8x256xi1>, vector<8x256xf32>
    %318 = arith.maximumf %311, %317 : vector<8x256xf32>
    %319 = tpu.concatenate %318, %318 in 1 : vector<8x256xf32>, vector<8x256xf32> -> vector<8x512xf32>
    %320 = vector.extract_strided_slice %319 {offsets = [0, 64], sizes = [8, 256], strides = [1, 1]} : vector<8x512xf32> to vector<8x256xf32>
    %c12_i32_105 = arith.constant 12 : i32
    %321 = vector.broadcast %c12_i32_105 : i32 to vector<8x256xi32>
    %322 = arith.cmpi slt, %259, %321 : vector<8x256xi32>
    %cst_106 = arith.constant 0xFF800000 : f32
    %323 = vector.broadcast %cst_106 : f32 to vector<8x256xf32>
    %324 = arith.select %322, %320, %323 : vector<8x256xi1>, vector<8x256xf32>
    %325 = arith.maximumf %318, %324 : vector<8x256xf32>
    %326 = tpu.concatenate %304, %304 in 1 : vector<8x256xf32>, vector<8x256xf32> -> vector<8x512xf32>
    %327 = vector.extract_strided_slice %326 {offsets = [0, 240], sizes = [8, 256], strides = [1, 1]} : vector<8x512xf32> to vector<8x256xf32>
    %c1_i32_107 = arith.constant 1 : i32
    %328 = vector.broadcast %c1_i32_107 : i32 to vector<8x256xi32>
    %329 = arith.cmpi sge, %259, %328 : vector<8x256xi32>
    %cst_108 = arith.constant 0xFF800000 : f32
    %330 = vector.broadcast %cst_108 : f32 to vector<8x256xf32>
    %331 = arith.select %329, %327, %330 : vector<8x256xi1>, vector<8x256xf32>
    %332 = arith.maximumf %304, %331 : vector<8x256xf32>
    %333 = tpu.concatenate %332, %332 in 1 : vector<8x256xf32>, vector<8x256xf32> -> vector<8x512xf32>
    %334 = vector.extract_strided_slice %333 {offsets = [0, 224], sizes = [8, 256], strides = [1, 1]} : vector<8x512xf32> to vector<8x256xf32>
    %c2_i32_109 = arith.constant 2 : i32
    %335 = vector.broadcast %c2_i32_109 : i32 to vector<8x256xi32>
    %336 = arith.cmpi sge, %259, %335 : vector<8x256xi32>
    %cst_110 = arith.constant 0xFF800000 : f32
    %337 = vector.broadcast %cst_110 : f32 to vector<8x256xf32>
    %338 = arith.select %336, %334, %337 : vector<8x256xi1>, vector<8x256xf32>
    %339 = arith.maximumf %332, %338 : vector<8x256xf32>
    %340 = tpu.concatenate %339, %339 in 1 : vector<8x256xf32>, vector<8x256xf32> -> vector<8x512xf32>
    %341 = vector.extract_strided_slice %340 {offsets = [0, 192], sizes = [8, 256], strides = [1, 1]} : vector<8x512xf32> to vector<8x256xf32>
    %c4_i32_111 = arith.constant 4 : i32
    %342 = vector.broadcast %c4_i32_111 : i32 to vector<8x256xi32>
    %343 = arith.cmpi sge, %259, %342 : vector<8x256xi32>
    %cst_112 = arith.constant 0xFF800000 : f32
    %344 = vector.broadcast %cst_112 : f32 to vector<8x256xf32>
    %345 = arith.select %343, %341, %344 : vector<8x256xi1>, vector<8x256xf32>
    %346 = arith.maximumf %339, %345 : vector<8x256xf32>
    %347 = arith.maximumf %325, %346 : vector<8x256xf32>
    %c2 = arith.constant 2 : index
    %c0_113 = arith.constant 0 : index
    %c0_114 = arith.constant 0 : index
    %348 = vector.load %arg2[%c2, %c0_113, %c0_114] : memref<4x8x72xf32, #tpu.memory_space<vmem>>, vector<1x8x72xf32>
    %349 = vector.shape_cast %348 : vector<1x8x72xf32> to vector<8x72xf32>
    %c2_115 = arith.constant 2 : index
    %c0_116 = arith.constant 0 : index
    %c0_117 = arith.constant 0 : index
    %350 = vector.load %arg3[%c2_115, %c0_116, %c0_117] : memref<4x8x1xf32, #tpu.memory_space<vmem>>, vector<1x8x1xf32>
    %351 = vector.shape_cast %350 : vector<1x8x1xf32> to vector<8x1xf32>
    %352 = tpu.iota {dimensions = array<i32: 1>} : vector<8x256xi32>
    %c4_i32_118 = arith.constant 4 : i32
    %353 = vector.broadcast %c4_i32_118 : i32 to vector<8x256xi32>
    %354 = arith.shrsi %352, %353 : vector<8x256xi32>
    %c15_i32_119 = arith.constant 15 : i32
    %355 = vector.broadcast %c15_i32_119 : i32 to vector<8x256xi32>
    %356 = arith.andi %352, %355 : vector<8x256xi32>
    %357 = tpu.concatenate %1, %1 in 1 : vector<8x256xf32>, vector<8x256xf32> -> vector<8x512xf32>
    %358 = vector.extract_strided_slice %357 {offsets = [0, 171], sizes = [8, 256], strides = [1, 1]} : vector<8x512xf32> to vector<8x256xf32>
    %c5_i32 = arith.constant 5 : i32
    %359 = vector.broadcast %c5_i32 : i32 to vector<8x256xi32>
    %360 = arith.cmpi sge, %354, %359 : vector<8x256xi32>
    %c5_i32_120 = arith.constant 5 : i32
    %361 = vector.broadcast %c5_i32_120 : i32 to vector<8x256xi32>
    %362 = arith.cmpi sge, %356, %361 : vector<8x256xi32>
    %363 = arith.andi %360, %362 : vector<8x256xi1>
    %cst_121 = arith.constant 0.000000e+00 : f32
    %364 = vector.broadcast %cst_121 : f32 to vector<8x256xf32>
    %365 = arith.select %363, %358, %364 : vector<8x256xi1>, vector<8x256xf32>
    %366 = vector.extract_strided_slice %357 {offsets = [0, 176], sizes = [8, 256], strides = [1, 1]} : vector<8x512xf32> to vector<8x256xf32>
    %c5_i32_122 = arith.constant 5 : i32
    %367 = vector.broadcast %c5_i32_122 : i32 to vector<8x256xi32>
    %368 = arith.cmpi sge, %354, %367 : vector<8x256xi32>
    %cst_123 = arith.constant 0.000000e+00 : f32
    %369 = vector.broadcast %cst_123 : f32 to vector<8x256xf32>
    %370 = arith.select %368, %366, %369 : vector<8x256xi1>, vector<8x256xf32>
    %371 = vector.extract_strided_slice %357 {offsets = [0, 181], sizes = [8, 256], strides = [1, 1]} : vector<8x512xf32> to vector<8x256xf32>
    %c5_i32_124 = arith.constant 5 : i32
    %372 = vector.broadcast %c5_i32_124 : i32 to vector<8x256xi32>
    %373 = arith.cmpi sge, %354, %372 : vector<8x256xi32>
    %c11_i32 = arith.constant 11 : i32
    %374 = vector.broadcast %c11_i32 : i32 to vector<8x256xi32>
    %375 = arith.cmpi slt, %356, %374 : vector<8x256xi32>
    %376 = arith.andi %373, %375 : vector<8x256xi1>
    %cst_125 = arith.constant 0.000000e+00 : f32
    %377 = vector.broadcast %cst_125 : f32 to vector<8x256xf32>
    %378 = arith.select %376, %371, %377 : vector<8x256xi1>, vector<8x256xf32>
    %379 = vector.extract_strided_slice %357 {offsets = [0, 251], sizes = [8, 256], strides = [1, 1]} : vector<8x512xf32> to vector<8x256xf32>
    %c5_i32_126 = arith.constant 5 : i32
    %380 = vector.broadcast %c5_i32_126 : i32 to vector<8x256xi32>
    %381 = arith.cmpi sge, %356, %380 : vector<8x256xi32>
    %cst_127 = arith.constant 0.000000e+00 : f32
    %382 = vector.broadcast %cst_127 : f32 to vector<8x256xf32>
    %383 = arith.select %381, %379, %382 : vector<8x256xi1>, vector<8x256xf32>
    %384 = vector.extract_strided_slice %357 {offsets = [0, 5], sizes = [8, 256], strides = [1, 1]} : vector<8x512xf32> to vector<8x256xf32>
    %c11_i32_128 = arith.constant 11 : i32
    %385 = vector.broadcast %c11_i32_128 : i32 to vector<8x256xi32>
    %386 = arith.cmpi slt, %356, %385 : vector<8x256xi32>
    %cst_129 = arith.constant 0.000000e+00 : f32
    %387 = vector.broadcast %cst_129 : f32 to vector<8x256xf32>
    %388 = arith.select %386, %384, %387 : vector<8x256xi1>, vector<8x256xf32>
    %389 = vector.extract_strided_slice %357 {offsets = [0, 75], sizes = [8, 256], strides = [1, 1]} : vector<8x512xf32> to vector<8x256xf32>
    %c11_i32_130 = arith.constant 11 : i32
    %390 = vector.broadcast %c11_i32_130 : i32 to vector<8x256xi32>
    %391 = arith.cmpi slt, %354, %390 : vector<8x256xi32>
    %c5_i32_131 = arith.constant 5 : i32
    %392 = vector.broadcast %c5_i32_131 : i32 to vector<8x256xi32>
    %393 = arith.cmpi sge, %356, %392 : vector<8x256xi32>
    %394 = arith.andi %391, %393 : vector<8x256xi1>
    %cst_132 = arith.constant 0.000000e+00 : f32
    %395 = vector.broadcast %cst_132 : f32 to vector<8x256xf32>
    %396 = arith.select %394, %389, %395 : vector<8x256xi1>, vector<8x256xf32>
    %397 = vector.extract_strided_slice %357 {offsets = [0, 80], sizes = [8, 256], strides = [1, 1]} : vector<8x512xf32> to vector<8x256xf32>
    %c11_i32_133 = arith.constant 11 : i32
    %398 = vector.broadcast %c11_i32_133 : i32 to vector<8x256xi32>
    %399 = arith.cmpi slt, %354, %398 : vector<8x256xi32>
    %cst_134 = arith.constant 0.000000e+00 : f32
    %400 = vector.broadcast %cst_134 : f32 to vector<8x256xf32>
    %401 = arith.select %399, %397, %400 : vector<8x256xi1>, vector<8x256xf32>
    %402 = vector.extract_strided_slice %357 {offsets = [0, 85], sizes = [8, 256], strides = [1, 1]} : vector<8x512xf32> to vector<8x256xf32>
    %c11_i32_135 = arith.constant 11 : i32
    %403 = vector.broadcast %c11_i32_135 : i32 to vector<8x256xi32>
    %404 = arith.cmpi slt, %354, %403 : vector<8x256xi32>
    %c11_i32_136 = arith.constant 11 : i32
    %405 = vector.broadcast %c11_i32_136 : i32 to vector<8x256xi32>
    %406 = arith.cmpi slt, %356, %405 : vector<8x256xi32>
    %407 = arith.andi %404, %406 : vector<8x256xi1>
    %cst_137 = arith.constant 0.000000e+00 : f32
    %408 = vector.broadcast %cst_137 : f32 to vector<8x256xf32>
    %409 = arith.select %407, %402, %408 : vector<8x256xi1>, vector<8x256xf32>
    %410 = tpu.concatenate %365, %370, %378, %383, %1, %388, %396, %401, %409 in 0 : vector<8x256xf32>, vector<8x256xf32>, vector<8x256xf32>, vector<8x256xf32>, vector<8x256xf32>, vector<8x256xf32>, vector<8x256xf32>, vector<8x256xf32>, vector<8x256xf32> -> vector<72x256xf32>
    %cst_138 = arith.constant dense<0.000000e+00> : vector<8x256xf32>
    %411 = tpu.matmul %349, %410, %cst_138 {dimension_numbers = #tpu.dot_dimension_numbers<[1], [0], [0], [1], [0, 0, 1, 1], [], []>} : vector<8x72xf32>, vector<72x256xf32>, vector<8x256xf32> -> vector<8x256xf32>
    %412 = vector.broadcast %351 : vector<8x1xf32> to vector<8x256xf32>
    %413 = arith.addf %411, %412 : vector<8x256xf32>
    %cst_139 = arith.constant 0.000000e+00 : f32
    %414 = vector.broadcast %cst_139 : f32 to vector<8x256xf32>
    %415 = arith.maximumf %413, %414 : vector<8x256xf32>
    %416 = tpu.iota {dimensions = array<i32: 1>} : vector<8x256xi32>
    %c4_i32_140 = arith.constant 4 : i32
    %417 = vector.broadcast %c4_i32_140 : i32 to vector<8x256xi32>
    %418 = arith.shrsi %416, %417 : vector<8x256xi32>
    %c15_i32_141 = arith.constant 15 : i32
    %419 = vector.broadcast %c15_i32_141 : i32 to vector<8x256xi32>
    %420 = arith.andi %416, %419 : vector<8x256xi32>
    %421 = tpu.concatenate %415, %415 in 1 : vector<8x256xf32>, vector<8x256xf32> -> vector<8x512xf32>
    %422 = vector.extract_strided_slice %421 {offsets = [0, 1], sizes = [8, 256], strides = [1, 1]} : vector<8x512xf32> to vector<8x256xf32>
    %c15_i32_142 = arith.constant 15 : i32
    %423 = vector.broadcast %c15_i32_142 : i32 to vector<8x256xi32>
    %424 = arith.cmpi slt, %420, %423 : vector<8x256xi32>
    %cst_143 = arith.constant 0xFF800000 : f32
    %425 = vector.broadcast %cst_143 : f32 to vector<8x256xf32>
    %426 = arith.select %424, %422, %425 : vector<8x256xi1>, vector<8x256xf32>
    %427 = arith.maximumf %415, %426 : vector<8x256xf32>
    %428 = tpu.concatenate %427, %427 in 1 : vector<8x256xf32>, vector<8x256xf32> -> vector<8x512xf32>
    %429 = vector.extract_strided_slice %428 {offsets = [0, 2], sizes = [8, 256], strides = [1, 1]} : vector<8x512xf32> to vector<8x256xf32>
    %c14_i32_144 = arith.constant 14 : i32
    %430 = vector.broadcast %c14_i32_144 : i32 to vector<8x256xi32>
    %431 = arith.cmpi slt, %420, %430 : vector<8x256xi32>
    %cst_145 = arith.constant 0xFF800000 : f32
    %432 = vector.broadcast %cst_145 : f32 to vector<8x256xf32>
    %433 = arith.select %431, %429, %432 : vector<8x256xi1>, vector<8x256xf32>
    %434 = arith.maximumf %427, %433 : vector<8x256xf32>
    %435 = tpu.concatenate %415, %415 in 1 : vector<8x256xf32>, vector<8x256xf32> -> vector<8x512xf32>
    %436 = vector.extract_strided_slice %435 {offsets = [0, 4], sizes = [8, 256], strides = [1, 1]} : vector<8x512xf32> to vector<8x256xf32>
    %c12_i32_146 = arith.constant 12 : i32
    %437 = vector.broadcast %c12_i32_146 : i32 to vector<8x256xi32>
    %438 = arith.cmpi slt, %420, %437 : vector<8x256xi32>
    %cst_147 = arith.constant 0xFF800000 : f32
    %439 = vector.broadcast %cst_147 : f32 to vector<8x256xf32>
    %440 = arith.select %438, %436, %439 : vector<8x256xi1>, vector<8x256xf32>
    %441 = arith.maximumf %434, %440 : vector<8x256xf32>
    %442 = tpu.concatenate %415, %415 in 1 : vector<8x256xf32>, vector<8x256xf32> -> vector<8x512xf32>
    %443 = vector.extract_strided_slice %442 {offsets = [0, 255], sizes = [8, 256], strides = [1, 1]} : vector<8x512xf32> to vector<8x256xf32>
    %c1_i32_148 = arith.constant 1 : i32
    %444 = vector.broadcast %c1_i32_148 : i32 to vector<8x256xi32>
    %445 = arith.cmpi sge, %420, %444 : vector<8x256xi32>
    %cst_149 = arith.constant 0xFF800000 : f32
    %446 = vector.broadcast %cst_149 : f32 to vector<8x256xf32>
    %447 = arith.select %445, %443, %446 : vector<8x256xi1>, vector<8x256xf32>
    %448 = arith.maximumf %415, %447 : vector<8x256xf32>
    %449 = tpu.concatenate %448, %448 in 1 : vector<8x256xf32>, vector<8x256xf32> -> vector<8x512xf32>
    %450 = vector.extract_strided_slice %449 {offsets = [0, 254], sizes = [8, 256], strides = [1, 1]} : vector<8x512xf32> to vector<8x256xf32>
    %c2_i32_150 = arith.constant 2 : i32
    %451 = vector.broadcast %c2_i32_150 : i32 to vector<8x256xi32>
    %452 = arith.cmpi sge, %420, %451 : vector<8x256xi32>
    %cst_151 = arith.constant 0xFF800000 : f32
    %453 = vector.broadcast %cst_151 : f32 to vector<8x256xf32>
    %454 = arith.select %452, %450, %453 : vector<8x256xi1>, vector<8x256xf32>
    %455 = arith.maximumf %448, %454 : vector<8x256xf32>
    %456 = tpu.concatenate %415, %415 in 1 : vector<8x256xf32>, vector<8x256xf32> -> vector<8x512xf32>
    %457 = vector.extract_strided_slice %456 {offsets = [0, 252], sizes = [8, 256], strides = [1, 1]} : vector<8x512xf32> to vector<8x256xf32>
    %c4_i32_152 = arith.constant 4 : i32
    %458 = vector.broadcast %c4_i32_152 : i32 to vector<8x256xi32>
    %459 = arith.cmpi sge, %420, %458 : vector<8x256xi32>
    %cst_153 = arith.constant 0xFF800000 : f32
    %460 = vector.broadcast %cst_153 : f32 to vector<8x256xf32>
    %461 = arith.select %459, %457, %460 : vector<8x256xi1>, vector<8x256xf32>
    %462 = arith.maximumf %455, %461 : vector<8x256xf32>
    %463 = arith.maximumf %441, %462 : vector<8x256xf32>
    %464 = tpu.concatenate %463, %463 in 1 : vector<8x256xf32>, vector<8x256xf32> -> vector<8x512xf32>
    %465 = vector.extract_strided_slice %464 {offsets = [0, 16], sizes = [8, 256], strides = [1, 1]} : vector<8x512xf32> to vector<8x256xf32>
    %c15_i32_154 = arith.constant 15 : i32
    %466 = vector.broadcast %c15_i32_154 : i32 to vector<8x256xi32>
    %467 = arith.cmpi slt, %418, %466 : vector<8x256xi32>
    %cst_155 = arith.constant 0xFF800000 : f32
    %468 = vector.broadcast %cst_155 : f32 to vector<8x256xf32>
    %469 = arith.select %467, %465, %468 : vector<8x256xi1>, vector<8x256xf32>
    %470 = arith.maximumf %463, %469 : vector<8x256xf32>
    %471 = tpu.concatenate %470, %470 in 1 : vector<8x256xf32>, vector<8x256xf32> -> vector<8x512xf32>
    %472 = vector.extract_strided_slice %471 {offsets = [0, 32], sizes = [8, 256], strides = [1, 1]} : vector<8x512xf32> to vector<8x256xf32>
    %c14_i32_156 = arith.constant 14 : i32
    %473 = vector.broadcast %c14_i32_156 : i32 to vector<8x256xi32>
    %474 = arith.cmpi slt, %418, %473 : vector<8x256xi32>
    %cst_157 = arith.constant 0xFF800000 : f32
    %475 = vector.broadcast %cst_157 : f32 to vector<8x256xf32>
    %476 = arith.select %474, %472, %475 : vector<8x256xi1>, vector<8x256xf32>
    %477 = arith.maximumf %470, %476 : vector<8x256xf32>
    %478 = tpu.concatenate %463, %463 in 1 : vector<8x256xf32>, vector<8x256xf32> -> vector<8x512xf32>
    %479 = vector.extract_strided_slice %478 {offsets = [0, 64], sizes = [8, 256], strides = [1, 1]} : vector<8x512xf32> to vector<8x256xf32>
    %c12_i32_158 = arith.constant 12 : i32
    %480 = vector.broadcast %c12_i32_158 : i32 to vector<8x256xi32>
    %481 = arith.cmpi slt, %418, %480 : vector<8x256xi32>
    %cst_159 = arith.constant 0xFF800000 : f32
    %482 = vector.broadcast %cst_159 : f32 to vector<8x256xf32>
    %483 = arith.select %481, %479, %482 : vector<8x256xi1>, vector<8x256xf32>
    %484 = arith.maximumf %477, %483 : vector<8x256xf32>
    %485 = tpu.concatenate %463, %463 in 1 : vector<8x256xf32>, vector<8x256xf32> -> vector<8x512xf32>
    %486 = vector.extract_strided_slice %485 {offsets = [0, 240], sizes = [8, 256], strides = [1, 1]} : vector<8x512xf32> to vector<8x256xf32>
    %c1_i32_160 = arith.constant 1 : i32
    %487 = vector.broadcast %c1_i32_160 : i32 to vector<8x256xi32>
    %488 = arith.cmpi sge, %418, %487 : vector<8x256xi32>
    %cst_161 = arith.constant 0xFF800000 : f32
    %489 = vector.broadcast %cst_161 : f32 to vector<8x256xf32>
    %490 = arith.select %488, %486, %489 : vector<8x256xi1>, vector<8x256xf32>
    %491 = arith.maximumf %463, %490 : vector<8x256xf32>
    %492 = tpu.concatenate %491, %491 in 1 : vector<8x256xf32>, vector<8x256xf32> -> vector<8x512xf32>
    %493 = vector.extract_strided_slice %492 {offsets = [0, 224], sizes = [8, 256], strides = [1, 1]} : vector<8x512xf32> to vector<8x256xf32>
    %c2_i32_162 = arith.constant 2 : i32
    %494 = vector.broadcast %c2_i32_162 : i32 to vector<8x256xi32>
    %495 = arith.cmpi sge, %418, %494 : vector<8x256xi32>
    %cst_163 = arith.constant 0xFF800000 : f32
    %496 = vector.broadcast %cst_163 : f32 to vector<8x256xf32>
    %497 = arith.select %495, %493, %496 : vector<8x256xi1>, vector<8x256xf32>
    %498 = arith.maximumf %491, %497 : vector<8x256xf32>
    %499 = tpu.concatenate %463, %463 in 1 : vector<8x256xf32>, vector<8x256xf32> -> vector<8x512xf32>
    %500 = vector.extract_strided_slice %499 {offsets = [0, 192], sizes = [8, 256], strides = [1, 1]} : vector<8x512xf32> to vector<8x256xf32>
    %c4_i32_164 = arith.constant 4 : i32
    %501 = vector.broadcast %c4_i32_164 : i32 to vector<8x256xi32>
    %502 = arith.cmpi sge, %418, %501 : vector<8x256xi32>
    %cst_165 = arith.constant 0xFF800000 : f32
    %503 = vector.broadcast %cst_165 : f32 to vector<8x256xf32>
    %504 = arith.select %502, %500, %503 : vector<8x256xi1>, vector<8x256xf32>
    %505 = arith.maximumf %498, %504 : vector<8x256xf32>
    %506 = arith.maximumf %484, %505 : vector<8x256xf32>
    %c3 = arith.constant 3 : index
    %c0_166 = arith.constant 0 : index
    %c0_167 = arith.constant 0 : index
    %507 = vector.load %arg2[%c3, %c0_166, %c0_167] : memref<4x8x72xf32, #tpu.memory_space<vmem>>, vector<1x8x72xf32>
    %508 = vector.shape_cast %507 : vector<1x8x72xf32> to vector<8x72xf32>
    %c3_168 = arith.constant 3 : index
    %c0_169 = arith.constant 0 : index
    %c0_170 = arith.constant 0 : index
    %509 = vector.load %arg3[%c3_168, %c0_169, %c0_170] : memref<4x8x1xf32, #tpu.memory_space<vmem>>, vector<1x8x1xf32>
    %510 = vector.shape_cast %509 : vector<1x8x1xf32> to vector<8x1xf32>
    %511 = tpu.iota {dimensions = array<i32: 1>} : vector<8x256xi32>
    %c4_i32_171 = arith.constant 4 : i32
    %512 = vector.broadcast %c4_i32_171 : i32 to vector<8x256xi32>
    %513 = arith.shrsi %511, %512 : vector<8x256xi32>
    %c15_i32_172 = arith.constant 15 : i32
    %514 = vector.broadcast %c15_i32_172 : i32 to vector<8x256xi32>
    %515 = arith.andi %511, %514 : vector<8x256xi32>
    %516 = tpu.concatenate %1, %1 in 1 : vector<8x256xf32>, vector<8x256xf32> -> vector<8x512xf32>
    %517 = vector.extract_strided_slice %516 {offsets = [0, 103], sizes = [8, 256], strides = [1, 1]} : vector<8x512xf32> to vector<8x256xf32>
    %c9_i32 = arith.constant 9 : i32
    %518 = vector.broadcast %c9_i32 : i32 to vector<8x256xi32>
    %519 = arith.cmpi sge, %513, %518 : vector<8x256xi32>
    %c9_i32_173 = arith.constant 9 : i32
    %520 = vector.broadcast %c9_i32_173 : i32 to vector<8x256xi32>
    %521 = arith.cmpi sge, %515, %520 : vector<8x256xi32>
    %522 = arith.andi %519, %521 : vector<8x256xi1>
    %cst_174 = arith.constant 0.000000e+00 : f32
    %523 = vector.broadcast %cst_174 : f32 to vector<8x256xf32>
    %524 = arith.select %522, %517, %523 : vector<8x256xi1>, vector<8x256xf32>
    %525 = vector.extract_strided_slice %516 {offsets = [0, 112], sizes = [8, 256], strides = [1, 1]} : vector<8x512xf32> to vector<8x256xf32>
    %c9_i32_175 = arith.constant 9 : i32
    %526 = vector.broadcast %c9_i32_175 : i32 to vector<8x256xi32>
    %527 = arith.cmpi sge, %513, %526 : vector<8x256xi32>
    %cst_176 = arith.constant 0.000000e+00 : f32
    %528 = vector.broadcast %cst_176 : f32 to vector<8x256xf32>
    %529 = arith.select %527, %525, %528 : vector<8x256xi1>, vector<8x256xf32>
    %530 = vector.extract_strided_slice %516 {offsets = [0, 121], sizes = [8, 256], strides = [1, 1]} : vector<8x512xf32> to vector<8x256xf32>
    %c9_i32_177 = arith.constant 9 : i32
    %531 = vector.broadcast %c9_i32_177 : i32 to vector<8x256xi32>
    %532 = arith.cmpi sge, %513, %531 : vector<8x256xi32>
    %c7_i32 = arith.constant 7 : i32
    %533 = vector.broadcast %c7_i32 : i32 to vector<8x256xi32>
    %534 = arith.cmpi slt, %515, %533 : vector<8x256xi32>
    %535 = arith.andi %532, %534 : vector<8x256xi1>
    %cst_178 = arith.constant 0.000000e+00 : f32
    %536 = vector.broadcast %cst_178 : f32 to vector<8x256xf32>
    %537 = arith.select %535, %530, %536 : vector<8x256xi1>, vector<8x256xf32>
    %538 = vector.extract_strided_slice %516 {offsets = [0, 247], sizes = [8, 256], strides = [1, 1]} : vector<8x512xf32> to vector<8x256xf32>
    %c9_i32_179 = arith.constant 9 : i32
    %539 = vector.broadcast %c9_i32_179 : i32 to vector<8x256xi32>
    %540 = arith.cmpi sge, %515, %539 : vector<8x256xi32>
    %cst_180 = arith.constant 0.000000e+00 : f32
    %541 = vector.broadcast %cst_180 : f32 to vector<8x256xf32>
    %542 = arith.select %540, %538, %541 : vector<8x256xi1>, vector<8x256xf32>
    %543 = vector.extract_strided_slice %516 {offsets = [0, 9], sizes = [8, 256], strides = [1, 1]} : vector<8x512xf32> to vector<8x256xf32>
    %c7_i32_181 = arith.constant 7 : i32
    %544 = vector.broadcast %c7_i32_181 : i32 to vector<8x256xi32>
    %545 = arith.cmpi slt, %515, %544 : vector<8x256xi32>
    %cst_182 = arith.constant 0.000000e+00 : f32
    %546 = vector.broadcast %cst_182 : f32 to vector<8x256xf32>
    %547 = arith.select %545, %543, %546 : vector<8x256xi1>, vector<8x256xf32>
    %548 = vector.extract_strided_slice %516 {offsets = [0, 135], sizes = [8, 256], strides = [1, 1]} : vector<8x512xf32> to vector<8x256xf32>
    %c7_i32_183 = arith.constant 7 : i32
    %549 = vector.broadcast %c7_i32_183 : i32 to vector<8x256xi32>
    %550 = arith.cmpi slt, %513, %549 : vector<8x256xi32>
    %c9_i32_184 = arith.constant 9 : i32
    %551 = vector.broadcast %c9_i32_184 : i32 to vector<8x256xi32>
    %552 = arith.cmpi sge, %515, %551 : vector<8x256xi32>
    %553 = arith.andi %550, %552 : vector<8x256xi1>
    %cst_185 = arith.constant 0.000000e+00 : f32
    %554 = vector.broadcast %cst_185 : f32 to vector<8x256xf32>
    %555 = arith.select %553, %548, %554 : vector<8x256xi1>, vector<8x256xf32>
    %556 = vector.extract_strided_slice %516 {offsets = [0, 144], sizes = [8, 256], strides = [1, 1]} : vector<8x512xf32> to vector<8x256xf32>
    %c7_i32_186 = arith.constant 7 : i32
    %557 = vector.broadcast %c7_i32_186 : i32 to vector<8x256xi32>
    %558 = arith.cmpi slt, %513, %557 : vector<8x256xi32>
    %cst_187 = arith.constant 0.000000e+00 : f32
    %559 = vector.broadcast %cst_187 : f32 to vector<8x256xf32>
    %560 = arith.select %558, %556, %559 : vector<8x256xi1>, vector<8x256xf32>
    %561 = vector.extract_strided_slice %516 {offsets = [0, 153], sizes = [8, 256], strides = [1, 1]} : vector<8x512xf32> to vector<8x256xf32>
    %c7_i32_188 = arith.constant 7 : i32
    %562 = vector.broadcast %c7_i32_188 : i32 to vector<8x256xi32>
    %563 = arith.cmpi slt, %513, %562 : vector<8x256xi32>
    %c7_i32_189 = arith.constant 7 : i32
    %564 = vector.broadcast %c7_i32_189 : i32 to vector<8x256xi32>
    %565 = arith.cmpi slt, %515, %564 : vector<8x256xi32>
    %566 = arith.andi %563, %565 : vector<8x256xi1>
    %cst_190 = arith.constant 0.000000e+00 : f32
    %567 = vector.broadcast %cst_190 : f32 to vector<8x256xf32>
    %568 = arith.select %566, %561, %567 : vector<8x256xi1>, vector<8x256xf32>
    %569 = tpu.concatenate %524, %529, %537, %542, %1, %547, %555, %560, %568 in 0 : vector<8x256xf32>, vector<8x256xf32>, vector<8x256xf32>, vector<8x256xf32>, vector<8x256xf32>, vector<8x256xf32>, vector<8x256xf32>, vector<8x256xf32>, vector<8x256xf32> -> vector<72x256xf32>
    %cst_191 = arith.constant dense<0.000000e+00> : vector<8x256xf32>
    %570 = tpu.matmul %508, %569, %cst_191 {dimension_numbers = #tpu.dot_dimension_numbers<[1], [0], [0], [1], [0, 0, 1, 1], [], []>} : vector<8x72xf32>, vector<72x256xf32>, vector<8x256xf32> -> vector<8x256xf32>
    %571 = vector.broadcast %510 : vector<8x1xf32> to vector<8x256xf32>
    %572 = arith.addf %570, %571 : vector<8x256xf32>
    %cst_192 = arith.constant 0.000000e+00 : f32
    %573 = vector.broadcast %cst_192 : f32 to vector<8x256xf32>
    %574 = arith.maximumf %572, %573 : vector<8x256xf32>
    %575 = tpu.concatenate %188, %347, %506, %574 in 0 : vector<8x256xf32>, vector<8x256xf32>, vector<8x256xf32>, vector<8x256xf32> -> vector<32x256xf32>
    %c0_193 = arith.constant 0 : index
    %c0_194 = arith.constant 0 : index
    %576 = vector.load %arg4[%c0_193, %c0_194] : memref<8x288xf32, #tpu.memory_space<vmem>>, vector<8x288xf32>
    %c0_195 = arith.constant 0 : index
    %c0_196 = arith.constant 0 : index
    %577 = vector.load %arg5[%c0_195, %c0_196] : memref<8x1xf32, #tpu.memory_space<vmem>>, vector<8x1xf32>
    %578 = tpu.iota {dimensions = array<i32: 1>} : vector<32x256xi32>
    %c4_i32_197 = arith.constant 4 : i32
    %579 = vector.broadcast %c4_i32_197 : i32 to vector<32x256xi32>
    %580 = arith.shrsi %578, %579 : vector<32x256xi32>
    %c15_i32_198 = arith.constant 15 : i32
    %581 = vector.broadcast %c15_i32_198 : i32 to vector<32x256xi32>
    %582 = arith.andi %578, %581 : vector<32x256xi32>
    %583 = tpu.concatenate %575, %575 in 1 : vector<32x256xf32>, vector<32x256xf32> -> vector<32x512xf32>
    %584 = vector.extract_strided_slice %583 {offsets = [0, 239], sizes = [32, 256], strides = [1, 1]} : vector<32x512xf32> to vector<32x256xf32>
    %c1_i32_199 = arith.constant 1 : i32
    %585 = vector.broadcast %c1_i32_199 : i32 to vector<32x256xi32>
    %586 = arith.cmpi sge, %580, %585 : vector<32x256xi32>
    %c1_i32_200 = arith.constant 1 : i32
    %587 = vector.broadcast %c1_i32_200 : i32 to vector<32x256xi32>
    %588 = arith.cmpi sge, %582, %587 : vector<32x256xi32>
    %589 = arith.andi %586, %588 : vector<32x256xi1>
    %cst_201 = arith.constant 0.000000e+00 : f32
    %590 = vector.broadcast %cst_201 : f32 to vector<32x256xf32>
    %591 = arith.select %589, %584, %590 : vector<32x256xi1>, vector<32x256xf32>
    %592 = vector.extract_strided_slice %583 {offsets = [0, 240], sizes = [32, 256], strides = [1, 1]} : vector<32x512xf32> to vector<32x256xf32>
    %c1_i32_202 = arith.constant 1 : i32
    %593 = vector.broadcast %c1_i32_202 : i32 to vector<32x256xi32>
    %594 = arith.cmpi sge, %580, %593 : vector<32x256xi32>
    %cst_203 = arith.constant 0.000000e+00 : f32
    %595 = vector.broadcast %cst_203 : f32 to vector<32x256xf32>
    %596 = arith.select %594, %592, %595 : vector<32x256xi1>, vector<32x256xf32>
    %597 = vector.extract_strided_slice %583 {offsets = [0, 241], sizes = [32, 256], strides = [1, 1]} : vector<32x512xf32> to vector<32x256xf32>
    %c1_i32_204 = arith.constant 1 : i32
    %598 = vector.broadcast %c1_i32_204 : i32 to vector<32x256xi32>
    %599 = arith.cmpi sge, %580, %598 : vector<32x256xi32>
    %c15_i32_205 = arith.constant 15 : i32
    %600 = vector.broadcast %c15_i32_205 : i32 to vector<32x256xi32>
    %601 = arith.cmpi slt, %582, %600 : vector<32x256xi32>
    %602 = arith.andi %599, %601 : vector<32x256xi1>
    %cst_206 = arith.constant 0.000000e+00 : f32
    %603 = vector.broadcast %cst_206 : f32 to vector<32x256xf32>
    %604 = arith.select %602, %597, %603 : vector<32x256xi1>, vector<32x256xf32>
    %605 = vector.extract_strided_slice %583 {offsets = [0, 255], sizes = [32, 256], strides = [1, 1]} : vector<32x512xf32> to vector<32x256xf32>
    %c1_i32_207 = arith.constant 1 : i32
    %606 = vector.broadcast %c1_i32_207 : i32 to vector<32x256xi32>
    %607 = arith.cmpi sge, %582, %606 : vector<32x256xi32>
    %cst_208 = arith.constant 0.000000e+00 : f32
    %608 = vector.broadcast %cst_208 : f32 to vector<32x256xf32>
    %609 = arith.select %607, %605, %608 : vector<32x256xi1>, vector<32x256xf32>
    %610 = vector.extract_strided_slice %583 {offsets = [0, 1], sizes = [32, 256], strides = [1, 1]} : vector<32x512xf32> to vector<32x256xf32>
    %c15_i32_209 = arith.constant 15 : i32
    %611 = vector.broadcast %c15_i32_209 : i32 to vector<32x256xi32>
    %612 = arith.cmpi slt, %582, %611 : vector<32x256xi32>
    %cst_210 = arith.constant 0.000000e+00 : f32
    %613 = vector.broadcast %cst_210 : f32 to vector<32x256xf32>
    %614 = arith.select %612, %610, %613 : vector<32x256xi1>, vector<32x256xf32>
    %615 = vector.extract_strided_slice %583 {offsets = [0, 15], sizes = [32, 256], strides = [1, 1]} : vector<32x512xf32> to vector<32x256xf32>
    %c15_i32_211 = arith.constant 15 : i32
    %616 = vector.broadcast %c15_i32_211 : i32 to vector<32x256xi32>
    %617 = arith.cmpi slt, %580, %616 : vector<32x256xi32>
    %c1_i32_212 = arith.constant 1 : i32
    %618 = vector.broadcast %c1_i32_212 : i32 to vector<32x256xi32>
    %619 = arith.cmpi sge, %582, %618 : vector<32x256xi32>
    %620 = arith.andi %617, %619 : vector<32x256xi1>
    %cst_213 = arith.constant 0.000000e+00 : f32
    %621 = vector.broadcast %cst_213 : f32 to vector<32x256xf32>
    %622 = arith.select %620, %615, %621 : vector<32x256xi1>, vector<32x256xf32>
    %623 = vector.extract_strided_slice %583 {offsets = [0, 16], sizes = [32, 256], strides = [1, 1]} : vector<32x512xf32> to vector<32x256xf32>
    %c15_i32_214 = arith.constant 15 : i32
    %624 = vector.broadcast %c15_i32_214 : i32 to vector<32x256xi32>
    %625 = arith.cmpi slt, %580, %624 : vector<32x256xi32>
    %cst_215 = arith.constant 0.000000e+00 : f32
    %626 = vector.broadcast %cst_215 : f32 to vector<32x256xf32>
    %627 = arith.select %625, %623, %626 : vector<32x256xi1>, vector<32x256xf32>
    %628 = vector.extract_strided_slice %583 {offsets = [0, 17], sizes = [32, 256], strides = [1, 1]} : vector<32x512xf32> to vector<32x256xf32>
    %c15_i32_216 = arith.constant 15 : i32
    %629 = vector.broadcast %c15_i32_216 : i32 to vector<32x256xi32>
    %630 = arith.cmpi slt, %580, %629 : vector<32x256xi32>
    %c15_i32_217 = arith.constant 15 : i32
    %631 = vector.broadcast %c15_i32_217 : i32 to vector<32x256xi32>
    %632 = arith.cmpi slt, %582, %631 : vector<32x256xi32>
    %633 = arith.andi %630, %632 : vector<32x256xi1>
    %cst_218 = arith.constant 0.000000e+00 : f32
    %634 = vector.broadcast %cst_218 : f32 to vector<32x256xf32>
    %635 = arith.select %633, %628, %634 : vector<32x256xi1>, vector<32x256xf32>
    %636 = tpu.concatenate %591, %596, %604, %609, %575, %614, %622, %627, %635 in 0 : vector<32x256xf32>, vector<32x256xf32>, vector<32x256xf32>, vector<32x256xf32>, vector<32x256xf32>, vector<32x256xf32>, vector<32x256xf32>, vector<32x256xf32>, vector<32x256xf32> -> vector<288x256xf32>
    %cst_219 = arith.constant dense<0.000000e+00> : vector<8x256xf32>
    %637 = tpu.matmul %576, %636, %cst_219 {dimension_numbers = #tpu.dot_dimension_numbers<[1], [0], [0], [1], [0, 0, 1, 1], [], []>} : vector<8x288xf32>, vector<288x256xf32>, vector<8x256xf32> -> vector<8x256xf32>
    %638 = vector.broadcast %577 : vector<8x1xf32> to vector<8x256xf32>
    %639 = arith.addf %637, %638 : vector<8x256xf32>
    %cst_220 = arith.constant 0.000000e+00 : f32
    %640 = vector.broadcast %cst_220 : f32 to vector<8x256xf32>
    %641 = arith.maximumf %639, %640 : vector<8x256xf32>
    %c0_221 = arith.constant 0 : index
    %c0_222 = arith.constant 0 : index
    %c0_223 = arith.constant 0 : index
    %642 = vector.load %arg6[%c0_221, %c0_222, %c0_223] : memref<1x8x256xf32, #tpu.memory_space<vmem>>, vector<1x8x256xf32>
    %643 = vector.shape_cast %642 : vector<1x8x256xf32> to vector<8x256xf32>
    %644 = vector.shape_cast %641 : vector<8x256xf32> to vector<1x8x256xf32>
    tpu.vector_store %arg6[%c0_221, %c0_222, %c0_223], %644 {strides = array<i32>} : memref<1x8x256xf32, #tpu.memory_space<vmem>>, vector<1x8x256xf32>,
    return
  }
  func.func @transform_0(%arg0: i32) -> (i32, i32, i32) {
    %c0_i32 = arith.constant 0 : i32
    %c0_i32_0 = arith.constant 0 : i32
    %c0_i32_1 = arith.constant 0 : i32
    return %arg0, %c0_i32, %c0_i32_0 : i32, i32, i32
  }
  func.func @transform_1(%arg0: i32) -> (i32, i32, i32) {
    %c0_i32 = arith.constant 0 : i32
    %c0_i32_0 = arith.constant 0 : i32
    %c0_i32_1 = arith.constant 0 : i32
    %c0_i32_2 = arith.constant 0 : i32
    return %c0_i32, %c0_i32_0, %c0_i32_1 : i32, i32, i32
  }
  func.func @transform_2(%arg0: i32) -> (i32, i32, i32) {
    %c0_i32 = arith.constant 0 : i32
    %c0_i32_0 = arith.constant 0 : i32
    %c0_i32_1 = arith.constant 0 : i32
    %c0_i32_2 = arith.constant 0 : i32
    return %c0_i32, %c0_i32_0, %c0_i32_1 : i32, i32, i32
  }
  func.func @transform_3(%arg0: i32) -> (i32, i32) {
    %c0_i32 = arith.constant 0 : i32
    %c0_i32_0 = arith.constant 0 : i32
    %c0_i32_1 = arith.constant 0 : i32
    return %c0_i32, %c0_i32_0 : i32, i32
  }
  func.func @transform_4(%arg0: i32) -> (i32, i32) {
    %c0_i32 = arith.constant 0 : i32
    %c0_i32_0 = arith.constant 0 : i32
    %c0_i32_1 = arith.constant 0 : i32
    return %c0_i32, %c0_i32_0 : i32, i32
  }
  func.func @transform_5(%arg0: i32) -> (i32, i32, i32) {
    %c0_i32 = arith.constant 0 : i32
    %c0_i32_0 = arith.constant 0 : i32
    %c0_i32_1 = arith.constant 0 : i32
    return %arg0, %c0_i32, %c0_i32_0 : i32, i32, i32
  }
}

</mosaic_0001>

<bundles_post_ra>
// kernel: dilated_block_forward.1
= control target key start
LH: loop header
LB: loop body
LE: loop exit
PB: predicated region body
PF: predicated region fallthrough
CT: control target
= control target key end

     0   :  { %s3012_s18 = smov 0   ;;  %s4488_s0 = inlined_call_operand.vmem [shape: f32[2,8,256], index: 0, kind: input, shape index: {}]   ;;  %s4489_s1 = inlined_call_operand.vmem [shape: f32[4,8,72], index: 1, kind: input, shape index: {}]   ;;  %s4490_s2 = inlined_call_operand.vmem [shape: f32[4,8,1], index: 2, kind: input, shape index: {}]   ;;  %s4491_s3 = inlined_call_operand.vmem [shape: f32[8,288], index: 3, kind: input, shape index: {}]   ;;  %s4492_s4 = inlined_call_operand.vmem [shape: f32[8,1], index: 4, kind: input, shape index: {}]   ;;  %s4493_s5 = inlined_call_operand.vmem [shape: f32[2,8,256], index: 5, kind: output, shape index: {}]  }
   0x1 LB: > { %s2055_s19 = sadd.s32 4294967295, %s2942_s18   ;;  %p2059_p0 = scmp.ge.s32.totalorder %s2942_s18, 1  ;;  %s2942_s18 = sphi %s3012_s18, %s15_s18  }
   0x2   : > { %p187_p1 = scmp.lt.s32.totalorder %s2942_s18, 3 }
   0x4   : > { %p188_p2 = pnand %p2059_p0, %p187_p1 }
   0x5   : > { %p215_p3 = scmp.lt.s32.totalorder (!%p188_p2), %s2055_s19, 1  ;;  %s2944_s24 = smov (!%p188_p2), 15   ;;  %v2952_v4 = vmov (!%p188_p2), 0.0   ;;  %v2961_v5 = vmov (!%p188_p2), 0   ;;  %v228_v6 = vld [vmem:[%s4490_s2] sm:$0xff] (!%p188_p2)  ;;  %v2082_v7 = vld [vmem:[%s4490_s2 + $0x8] sm:$0xff] (!%p188_p2)  ;;  %v229_v8 = vlaneseq (!%p188_p2) }
   0x6   : > { %191 = sbr.rel (%p188_p2) target bundleno = 1587 (0x633), region = 40  ;;  %s2945_s25 = smov (!%p188_p2), 17   ;;  %415 = vmatprep.mubr.f32.mxu1 (!%p188_p2), %v2952_v4  ;;  %2562 = vset.pattern.permute.xlu1 (!%p188_p2), %v2961_v5  ;;  %vm4499_vm5 = vcmask (!%p188_p2), 121856   ;;  %vm4494_vm7 = vcmask (!%p188_p2), 138240   ;;  %vm4500_vm8 = vcmask (!%p188_p2), 7168   ;;  %vm4496_vm9 = vcmask (!%p188_p2), 130048  }
   0x7   : > { %s2946_s26 = smov (!%p188_p2), 1   ;;  %s2947_s27 = smov (!%p188_p2), 16   ;;  %2563 = vset.pattern.permute.xlu0 (!%p188_p2), %v2961_v5  ;;  %v230_v9 = vand.u32 (!%p188_p2), 127, %v229_v8  ;;  %v4536_v29 = vmov (!%p188_p2), 0  ;;  %vm4503_vm15 = vcmask (!%p188_p2), 1039360   ;;  %v4542_v46 = vmov (!%p188_p2), 0 }
   0x8   : > { %s2948_s28 = smov (!%p188_p2), 127   ;;  %s2949_s29 = smov (!%p188_p2), 113   ;;  %v4545_v59 = vmov (!%p188_p2), 0  ;;  %v4547_v61 = vmov (!%p188_p2), 0 }
   0x9   : > { %s2950_s30 = smov (!%p188_p2), 112   ;;  %s2951_s6 = smov (!%p188_p2), 111   ;;  %v231_v10 = vadd.s32 (!%p188_p2), 128, %v230_v9  ;;  %v3095_v13 = vshra.s32 (!%p188_p2), %v230_v9, 4  ;;  %v3097_v14 = vand.u32 (!%p188_p2), 15, %v230_v9 }
   0xa   : > { %s2953_s7 = smov (!%p188_p2), 34   ;;  %s2954_s8 = smov (!%p188_p2), 32  }
   0xb   : > { %s2955_s9 = smov (!%p188_p2), 30   ;;  %s2956_s10 = smov (!%p188_p2), 2   ;;  %v3091_v11 = vshra.s32 (!%p188_p2), %v231_v10, 4  ;;  %v3093_v12 = vand.u32 (!%p188_p2), 15, %v231_v10  ;;  %vm4498_vm2 = vcmp.ge.s32.totalorder (!%p188_p2), %v3095_v13, 1  ;;  %vm4507_vm3 = vcmp.ge.s32.totalorder (!%p188_p2), %v3097_v14, 1 }
   0xc   : > { %s2957_s11 = smov (!%p188_p2), 126   ;;  %s2958_s12 = smov (!%p188_p2), 96   ;;  %vm3116_vm10 = vmand (!%p188_p2), %vm4498_vm2, %vm4507_vm3  ;;  %vm4501_vm13 = vcmp.lt.s32.totalorder (!%p188_p2), %v3097_v14, 15 }
   0xd   : > { %s4835_s19 = smov (!%p215_p3, %s2055_s19), 1  ;;  %s2959_s13 = smov 98   ;;  %vm4495_vm0 = vcmp.ge.s32.totalorder %v3091_v11, 1  ;;  %vm4497_vm1 = vcmp.ge.s32.totalorder %v3093_v12, 1  ;;  %vm4504_vm4 = vcmp.lt.s32.totalorder %v3093_v12, 15  ;;  %vm3151_vm14 = vmpackc.low %vm4498_vm2, %vm3116_vm10 }
   0xe   : > { %s2205_s20 = sshll.u32 %s4835_s19, 4  ;;  %s2960_s14 = smov 94   ;;  %vm3108_vm6 = vmand %vm4495_vm0, %vm4497_vm1 }
   0xf   : > { %s3028_s23 = scalar_lea.vmem %s4488_s0, %s2205_s20  ;;  %s2962_s15 = smov 80   ;;  %vm3124_vm11 = vmand %vm4495_vm0, %vm4504_vm4 }
  0x10   : > { %v3031_v0 = vld [vmem:[%s3028_s23] sm:$0xff]  ;;  %v3034_v1 = vld [vmem:[%s3028_s23 + $0x8] sm:$0xff]  ;;  %s2963_s16 = smov 85   ;;  %s2964_s17 = smov 5   ;;  %v4537_v29 = vsel %vm3124_vm11, 4294967295, %v4536_v29  ;;  %vm3134_vm12 = vmpackc.low %vm4495_vm0, %vm3108_vm6  ;;  %vm4502_vm0 = vcmask 924672  }
  0x11   : > { %v3038_v2 = vpack.i.bf16 %v3031_v0, %v3034_v1  ;;  %v3050_v3 = vpack.i.bf16 %v3034_v1, %v3031_v0  ;;  %s2965_s21 = smov 75   ;;  %s2966_s22 = smov 123  }
  0x13   : > { %2468 = vrot.lane.b32.xlu1 %v3038_v2, %s2944_s24  ;;  %2458 = vrot.lane.b32.xlu0 %v3038_v2, %s2945_s25 }
  0x17   : > { %2473 = vrot.lane.b32.xlu1 %v3038_v2, %s2946_s26  ;;  %2463 = vrot.lane.b32.xlu0 %v3038_v2, %s2947_s27 }
  0x1b   : > { %2478 = vrot.lane.b32.xlu0 %v3050_v3, %s2948_s28  ;;  %2483 = vrot.lane.b32.xlu1 %v3050_v3, %s2949_s29 }
  0x1f   : > { %2488 = vrot.lane.b32.xlu0 %v3050_v3, %s2950_s30  ;;  %331 = vrot.lane.b32.xlu1 %v3031_v0, %s2951_s6 }
  0x23   : > { %333 = vrot.lane.b32.xlu0 %v3034_v1, %s2951_s6  ;;  %2493 = vrot.lane.b32.xlu1 %v3038_v2, %s2953_s7  ;;  %s2967_s7 = smov 53  }
  0x27   : > { %2498 = vrot.lane.b32.xlu0 %v3038_v2, %s2954_s8  ;;  %2503 = vrot.lane.b32.xlu1 %v3038_v2, %s2955_s9  ;;  %s2968_s9 = smov 48  }
  0x2b   : > { %2508 = vrot.lane.b32.xlu0 %v3038_v2, %s2956_s10  ;;  %2513 = vrot.lane.b32.xlu1 %v3050_v3, %s2957_s11 }
  0x2f   : > { %2523 = vrot.lane.b32.xlu1 %v3050_v3, %s2958_s12  ;;  %2518 = vrot.lane.b32.xlu0 %v3050_v3, %s2959_s13  ;;  %s2969_s13 = smov 43  }
  0x33   : > { %744 = vrot.lane.b32.xlu1 %v3034_v1, %s2960_s14  ;;  %742 = vrot.lane.b32.xlu0 %v3031_v0, %s2960_s14  ;;  %s2977_s14 = smov 120  }
  0x37   : > { %2533 = vrot.lane.b32.xlu1 %v3038_v2, %s2962_s15  ;;  %2528 = vrot.lane.b32.xlu0 %v3038_v2, %s2963_s16  ;;  %s2978_s15 = smov 8   ;;  %s2979_s16 = smov 124  }
  0x3b   : > { %2543 = vrot.lane.b32.xlu1 %v3038_v2, %s2964_s17  ;;  %2538 = vrot.lane.b32.xlu0 %v3038_v2, %s2965_s21  ;;  %s2971_s17 = smov 7   ;;  %s2972_s21 = smov 25  }
  0x3f   : > { %2548 = vrot.lane.b32.xlu0 %v3050_v3, %s2966_s22  ;;  %2553 = vrot.lane.b32.xlu1 %v3050_v3, %s2967_s7  ;;  %s2973_s22 = smov 119   ;;  %s2974_s7 = smov 9  }
  0x43   : > { %2558 = vrot.lane.b32.xlu0 %v3050_v3, %s2968_s9  ;;  %1099 = vrot.lane.b32.xlu1 %v3031_v0, %s2969_s13  ;;  %s2975_s9 = smov 103  }
  0x47   : > { %1101 = vrot.lane.b32.xlu0 %v3034_v1, %s2969_s13  ;;  %344 = vperm.xlu1 %2562, %v228_v6   ;;  %s2976_s13 = smov 121  }
  0x4b   : > { %755 = vperm.xlu0 %2563, %v2082_v7  }
  0x85   : > { %v2469_v15 = vpop.permute.xlu1 %2468  ;;  %v2459_v16 = vpop.permute.xlu0 %2458 }
  0x86   : > { %v2471_v17 = vunpack.i.h.bf16 %v2469_v15  ;;  %v2470_v18 = vunpack.i.l.bf16 %v2469_v15  ;;  %v2461_v19 = vunpack.i.h.bf16 %v2459_v16  ;;  %v2460_v20 = vunpack.i.l.bf16 %v2459_v16 }
  0x87   : > { %v4555_v16 = vmov 0 }
  0x88   : > { %v276_v30 = vsel %vm4499_vm5, %v2471_v17, %v2470_v18  ;;  %v250_v31 = vsel %vm4494_vm7, %v2461_v19, %v2460_v20  ;;  %v249_v35 = vsel %vm4494_vm7, %v2460_v20, %v2461_v19  ;;  %vm2214_vm7 = vmpackc.low %vm4497_vm1, %vm3124_vm11  ;;  %v275_v47 = vsel %vm4499_vm5, %v2470_v18, %v2471_v17 }
  0x89   : > { %v2474_v22 = vpop.permute.xlu1 %2473  ;;  %v2464_v23 = vpop.permute.xlu0 %2463  ;;  %vm4505_vm1 = vcmp.lt.s32.totalorder %v3091_v11, 15 }
  0x8a   : > { %v2476_v25 = vunpack.i.h.bf16 %v2474_v22  ;;  %v2475_v26 = vunpack.i.l.bf16 %v2474_v22  ;;  %v2466_v27 = vunpack.i.h.bf16 %v2464_v23  ;;  %v2465_v28 = vunpack.i.l.bf16 %v2464_v23 }
  0x8b   : > { %v4561_v23 = vmov 0 }
  0x8c   : > { %v287_v33 = vsel %vm4500_vm8, %v2476_v25, %v2475_v26  ;;  %v3141_v34 = vsel %vm4496_vm9, %v2466_v27, %v2465_v28  ;;  %v3145_v36 = vsel %vm4496_vm9, %v2465_v28, %v2466_v27  ;;  %vm3165_vm9 = vmand %vm4498_vm2, %vm4501_vm13  ;;  %v286_v48 = vsel %vm4500_vm8, %v2475_v26, %v2476_v25 }
  0x8d   : > { %v2479_v38 = vpop.permute.xlu0 %2478  ;;  %v2207_v39 = vpack.c.bf16 %v3141_v34, %v250_v31  ;;  %v2210_v40 = vpack.c.bf16 %v3145_v36, %v249_v35  ;;  %v2484_v41 = vpop.permute.xlu1 %2483  ;;  %v4543_v46 = vsel %vm3165_vm9, 4294967295, %v4542_v46  ;;  %v2213_v49 = vpack.c.bf16 %v287_v33, %v276_v30  ;;  %vm2217_vm5 = vmpackc.low %vm4507_vm3, %vm3165_vm9 }
  0x8e   : > { %v2481_v42 = vunpack.i.h.bf16 %v2479_v38  ;;  %v2480_v43 = vunpack.i.l.bf16 %v2479_v38  ;;  %v2486_v44 = vunpack.i.h.bf16 %v2484_v41  ;;  %v2485_v45 = vunpack.i.l.bf16 %v2484_v41 }
  0x8f   : > { %2209 = vmatprep.subr.msk.bf16.mxu1 %vm3134_vm12, %v2207_v39  ;;  %vm4506_vm2 = vcmask 916480   ;;  %vm4514_vm12 = vcmp.lt.s32.totalorder %v3095_v13, 15  ;;  %v2216_v57 = vpack.c.bf16 %v286_v48, %v275_v47  ;;  %vm4544_vm8 = vcmp.ge.s32.totalorder %v3093_v12, 1  ;;  %v227_v47 = vld [vmem:[%s4489_s1] sm:$0xff] }
  0x90   : > { %v298_v50 = vsel %vm4503_vm15, %v2481_v42, %v2480_v43  ;;  %2212 = vmatpush1.bf16.msk.msra.mxu1 %vm3151_vm14, %v2210_v40  ;;  %v313_v54 = vsel %vm4502_vm0, %v2486_v44, %v2485_v45  ;;  %vm4508_vm14 = vmmov 1   ;;  %v297_v58 = vsel %vm4503_vm15, %v2480_v43, %v2481_v42  ;;  %vm3194_vm13 = vmand %vm4505_vm1, %vm4544_vm8 }
  0x91   : > { %2215 = vmatprep.subr.msk.bf16.mxu1 %vm2214_vm7, %v2213_v49  ;;  %v2489_v51 = vpop.permute.xlu0 %2488  ;;  %v2219_v52 = vpack.c.bf16 %v298_v50, %v3034_v1  ;;  %v3182_v53 = vpop.permute.xlu1 %331  ;;  %vm2220_vm7 = vmpackc.low %vm4504_vm4, %vm4508_vm14  ;;  %v4546_v59 = vsel %vm3194_vm13, 4294967295, %v4545_v59  ;;  %vm4549_vm15 = vcmask 924672   ;;  %vm4550_vm8 = vcmp.lt.s32.totalorder %v3097_v14, 15 }
  0x92   : > { %v2491_v55 = vunpack.i.h.bf16 %v2489_v51  ;;  %v2490_v56 = vunpack.i.l.bf16 %v2489_v51  ;;  %vm3205_vm0 = vmand %vm4514_vm12, %vm4507_vm3  ;;  %v312_v62 = vsel %vm4549_vm15, %v2485_v45, %v2486_v44  ;;  %v2222_v8 = vpack.c.bf16 %v297_v58, %v3031_v0 }
  0x93   : > { %v4548_v61 = vsel %vm3205_vm0, 4294967295, %v4547_v61  ;;  %vm2223_vm4 = vmpackc.low %vm4550_vm8, %vm4508_vm14  ;;  %vm4519_vm3 = vcmp.ge.s32.totalorder %v3091_v11, 2  ;;  %vm4554_vm1 = vcmp.lt.s32.totalorder %v3093_v12, 15  ;;  %vm4557_vm8 = vcmask 277504  }
  0x94   : > { %v3199_v60 = vsel %vm4506_vm2, %v2491_v55, %v2490_v56  ;;  %2218 = vmatpush1.bf16.msk.msra.mxu1 %vm2217_vm5, %v2216_v57  ;;  %v3215_v7 = vsel %vm4506_vm2, %v2490_v56, %v2491_v55  ;;  %vm4551_vm5 = vcmp.lt.s32.totalorder %v3091_v11, 15  ;;  %vm4558_vm2 = vmmov %vm4557_vm8  ;;  %vm4571_vm14 = vcmp.lt.s32.totalorder %v3093_v12, 14 }
  0x95   : > { %2221 = vmatprep.subr.msk.bf16.mxu1 %vm2220_vm7, %v2219_v52  ;;  %v334_v63 = vpop.permute.xlu0 %333  ;;  %v2225_v5 = vpack.c.bf16 %v3199_v60, %v313_v54  ;;  %v2494_v6 = vpop.permute.xlu1 %2493  ;;  %vm2226_vm15 = vmpackc.low %vm4551_vm5, %vm3194_vm13  ;;  %v2228_v20 = vpack.c.bf16 %v3215_v7, %v312_v62 }
  0x96   : > { %v2496_v9 = vunpack.i.h.bf16 %v2494_v6  ;;  %v2495_v10 = vunpack.i.l.bf16 %v2494_v6  ;;  %vm3226_vm7 = vmpackc.low %vm4514_vm12, %vm3205_vm0  ;;  %vm4520_vm12 = vcmp.ge.s32.totalorder %v3097_v14, 2  ;;  %vm4521_vm0 = vcmp.ge.s32.totalorder %v3095_v13, 2 }
  0x97   : > { %vm3236_vm13 = vmand %vm4551_vm5, %vm4554_vm1  ;;  %vm4560_vm1 = vcmp.lt.s32.totalorder %v3095_v13, 15 }
  0x98   : > { %2224 = vmatpush1.bf16.msk.msra.mxu1 %vm2223_vm4, %v2222_v8  ;;  %v4556_v16 = vsel %vm3236_vm13, 4294967295, %v4555_v16  ;;  %v668_v17 = vsel %vm4557_vm8, %v2495_v10, %v2496_v9  ;;  %v669_v18 = vsel %vm4558_vm2, %v2496_v9, %v2495_v10  ;;  %vm4559_vm4 = vcmp.lt.s32.totalorder %v3097_v14, 15  ;;  %vm3280_vm11 = vmand %vm4519_vm3, %vm4571_vm14 }
  0x99   : > { %2227 = vmatprep.subr.msk.bf16.mxu1 %vm2226_vm15, %v2225_v5  ;;  %v2499_v19 = vpop.permute.xlu0 %2498  ;;  %v2504_v22 = vpop.permute.xlu1 %2503  ;;  %vm3249_vm5 = vmand %vm4560_vm1, %vm4559_vm4  ;;  %vm4563_vm2 = vcmp.ge.s32.totalorder %v3093_v12, 2  ;;  %vm4568_vm1 = vcmask 261120   ;;  %vm4523_vm8 = vcmask 1031168   ;;  %vm4522_vm14 = vcmp.lt.s32.totalorder %v3097_v14, 14 }
  0x9a   : > { %v4562_v23 = vsel %vm3249_vm5, 4294967295, %v4561_v23  ;;  %v2501_v25 = vunpack.i.h.bf16 %v2499_v19  ;;  %v2500_v26 = vunpack.i.l.bf16 %v2499_v19  ;;  %v2506_v27 = vunpack.i.h.bf16 %v2504_v22  ;;  %vm3258_vm15 = vmand %vm4519_vm3, %vm4563_vm2 }
  0x9b   : > { %v2505_v28 = vunpack.i.l.bf16 %v2504_v22  ;;  %vm3266_vm4 = vmand %vm4521_vm0, %vm4520_vm12  ;;  %vm4570_vm2 = vcmask 908288   ;;  %vm4583_vm12 = vcmask 15360  }
  0x9c   : > { %v678_v32 = vsel %vm4568_vm1, %v2500_v26, %v2501_v25  ;;  %vm4569_vm9 = vmmov %vm4568_vm1  ;;  %2230 = vmatpush1.bf16.msk.msra.mxu1 %vm3226_vm7, %v2228_v20  ;;  %v337_v35 = vsel %vm4570_vm2, %v334_v63, %v3182_v53  ;;  %v336_v52 = vsel %vm4570_vm2, %v3182_v53, %v334_v63  ;;  %vm723_vm2 = vcmask 801792  }
  0x9d   : > { %v679_v33 = vsel %vm4569_vm9, %v2501_v25, %v2500_v26  ;;  %v2234_v39 = vpack.c.bf16 %v678_v32, %v668_v17  ;;  %2078 = vmatprep.subr.msk.mxu1 %vm3236_vm13, %v337_v35  ;;  %vm4574_vm9 = vcmask 244736   ;;  %v2509_v41 = vpop.permute.xlu0 %2508  ;;  %vm3291_vm7 = vmpackc.low %vm4519_vm3, %vm3258_vm15  ;;  %v2514_v43 = vpop.permute.xlu1 %2513  ;;  %vm4529_vm13 = vcmp.ge.s32.totalorder %v3093_v12, 5 }
  0x9e   : > { %v2231_v38 = vpack.c.bf16 %v679_v33, %v669_v18  ;;  %v692_v40 = vsel %vm4574_vm9, %v2506_v27, %v2505_v28  ;;  %v2511_v44 = vunpack.i.h.bf16 %v2509_v41  ;;  %v2510_v45 = vunpack.i.l.bf16 %v2509_v41  ;;  %vm3303_vm1 = vmpackc.low %vm4521_vm0, %vm3266_vm4 }
  0x9f   : > { %v2516_v49 = vunpack.i.h.bf16 %v2514_v43  ;;  %v2515_v50 = vunpack.i.l.bf16 %v2514_v43  ;;  %vm4579_vm15 = vmmov %vm4574_vm9  ;;  %vm4580_vm9 = vcmp.ge.s32.totalorder %v3093_v12, 2 }
  0xa0   : > { %v691_v51 = vsel %vm4579_vm15, %v2505_v28, %v2506_v27  ;;  %vm3314_vm3 = vmpackc.low %vm4580_vm9, %vm3280_vm11  ;;  %v701_v55 = vsel %vm4583_vm12, %v2510_v45, %v2511_v44  ;;  %2079 = vmatpush1.msk.msra.mxu1 %vm3249_vm5, %v336_v52  ;;  %vm4587_vm11 = vcmask 588800   ;;  %vm4528_vm9 = vcmp.lt.s32.totalorder %v3091_v11, 14 }
  0xa1   : > { %vm4584_vm4 = vmmov %vm4583_vm12  ;;  %v712_v57 = vsel %vm4523_vm8, %v2516_v49, %v2515_v50  ;;  %2080 = vmatmul.mubr.msk.f32.vlgmr.msra.gmra.mrb[0].mxu1 %vm4587_vm11, %v227_v47  ;;  %2233 = vmatprep.subr.msk.bf16.mxu1 %vm3291_vm7, %v2231_v38  ;;  %vm4525_vm12 = vcmask 785408   ;;  %v2524_v62 = vpop.permute.xlu1 %2523  ;;  %v2519_v63 = vpop.permute.xlu0 %2518  ;;  %v2240_v5 = vpack.c.bf16 %v701_v55, %v691_v51  ;;  %v711_v10 = vsel %vm4523_vm8, %v2515_v50, %v2516_v49 }
  0xa2   : > { %v702_v56 = vsel %vm4584_vm4, %v2511_v44, %v2510_v45  ;;  %vm3327_vm15 = vmand %vm4521_vm0, %vm4522_vm14  ;;  %2236 = vmatpush1.bf16.msk.msra.mxu1 %vm3303_vm1, %v2234_v39  ;;  %v2526_v6 = vunpack.i.h.bf16 %v2524_v62  ;;  %v2525_v8 = vunpack.i.l.bf16 %v2524_v62  ;;  %v2521_v9 = vunpack.i.h.bf16 %v2519_v63  ;;  %825 = vmatprep.mubr.f32.mxu1 %v2952_v4 }
  0xa3   : > { %v2237_v58 = vpack.c.bf16 %v702_v56, %v692_v40  ;;  %v2243_v15 = vpack.c.bf16 %v712_v57, %v3034_v1  ;;  %vm4588_vm7 = vcmp.ge.s32.totalorder %v3097_v14, 2  ;;  %v2520_v17 = vunpack.i.l.bf16 %v2519_v63 }
  0xa4   : > { %vm2241_vm4 = vmpackc.low %vm4588_vm7, %vm3327_vm15  ;;  %vm4530_vm1 = vcmp.lt.s32.totalorder %v3095_v13, 14  ;;  %v735_v18 = vsel %vm4525_vm12, %v2526_v6, %v2525_v8  ;;  %vm4589_vm11 = vmmov 1   ;;  %vm4590_vm0 = vcmp.lt.s32.totalorder %v3093_v12, 14 }
  0xa5   : > { %2239 = vmatprep.subr.msk.bf16.mxu1 %vm3314_vm3, %v2237_v58  ;;  %vm2244_vm14 = vmpackc.low %vm4590_vm0, %vm4589_vm11  ;;  %v725_v19 = vsel %vm723_vm2, %v2521_v9, %v2520_v17  ;;  %vm4591_vm8 = vcmp.ge.s32.totalorder %v3093_v12, 2  ;;  %v745_v20 = vpop.permute.xlu1 %744  ;;  %v743_v22 = vpop.permute.xlu0 %742  ;;  %v2246_v25 = vpack.c.bf16 %v711_v10, %v3031_v0  ;;  %v734_v26 = vsel %vm4525_vm12, %v2525_v8, %v2526_v6 }
  0xa6   : > { %vm718_vm3 = vmand %vm4528_vm9, %vm4591_vm8  ;;  %2242 = vmatpush1.bf16.msk.msra.mxu1 %vm2241_vm4, %v2240_v5  ;;  %v724_v27 = vsel %vm723_vm2, %v2520_v17, %v2521_v9  ;;  %v2249_v28 = vpack.c.bf16 %v735_v18, %v725_v19  ;;  %vm1007_vm2 = vcmp.ge.s32.totalorder %v3091_v11, 5  ;;  %vm4598_vm12 = vcmp.lt.s32.totalorder %v3093_v12, 14  ;;  %v2081_v5 = vld [vmem:[%s4489_s1 + $0x8] sm:$0xff] }
  0xa7   : > { %vm4592_vm15 = vmmov %vm4588_vm7  ;;  %2245 = vmatprep.subr.msk.bf16.mxu1 %vm2244_vm14, %v2243_v15  ;;  %vm4593_vm7 = vcmp.lt.s32.totalorder %v3097_v14, 14  ;;  %v2252_v31 = vpack.c.bf16 %v734_v26, %v724_v27 }
  0xa8   : > { %vm717_vm0 = vmand %vm4530_vm1, %vm4592_vm15  ;;  %vm1016_vm15 = vcmask 695296  }
  0xa9   : > { %vm2247_vm8 = vmpackc.low %vm4593_vm7, %vm4589_vm11  ;;  %v2534_v33 = vpop.permute.xlu1 %2533  ;;  %v2529_v35 = vpop.permute.xlu0 %2528  ;;  %vm1008_vm7 = vcmp.ge.s32.totalorder %v3097_v14, 5 }
  0xaa   : > { %vm3368_vm5 = vmpackc.low %vm4528_vm9, %vm718_vm3  ;;  %2248 = vmatpush1.bf16.msk.msra.mxu1 %vm2247_vm8, %v2246_v25  ;;  %v2536_v38 = vunpack.i.h.bf16 %v2534_v33  ;;  %v2535_v39 = vunpack.i.l.bf16 %v2534_v33  ;;  %v2531_v40 = vunpack.i.h.bf16 %v2529_v35  ;;  %v2530_v41 = vunpack.i.l.bf16 %v2529_v35 }
  0xab   : > { %vm3376_vm14 = vmpackc.low %vm4530_vm1, %vm717_vm0  ;;  %2251 = vmatprep.subr.msk.bf16.mxu1 %vm3368_vm5, %v2249_v28  ;;  %vm4607_vm5 = vcmask 654336   ;;  %vm4531_vm0 = vcmp.lt.s32.totalorder %v3093_v12, 11 }
  0xac   : > { %vm3386_vm4 = vmand %vm4528_vm9, %vm4598_vm12  ;;  %vm4603_vm12 = vcmask 769024   ;;  %vm4604_vm9 = vcmp.lt.s32.totalorder %v3097_v14, 14  ;;  %v1029_v45 = vsel %vm4607_vm5, %v2536_v38, %v2535_v39  ;;  %v1018_v47 = vsel %vm1016_vm15, %v2531_v40, %v2530_v41 }
  0xad   : > { %vm3396_vm8 = vmand %vm1007_vm2, %vm4529_vm13  ;;  %v748_v43 = vsel %vm4603_vm12, %v745_v20, %v743_v22  ;;  %v1017_v49 = vsel %vm1016_vm15, %v2530_v41, %v2531_v40  ;;  %v2544_v50 = vpop.permute.xlu1 %2543  ;;  %vm1042_vm12 = vcmask 613376   ;;  %v2539_v51 = vpop.permute.xlu0 %2538  ;;  %vm4614_vm15 = vcmask 769024  }
  0xae   : > { %vm3405_vm3 = vmand %vm4530_vm1, %vm4604_vm9  ;;  %vm4609_vm9 = vcmp.ge.s32.totalorder %v3095_v13, 5  ;;  %2254 = vmatpush1.bf16.msk.msra.mxu1 %vm3376_vm14, %v2252_v31  ;;  %v2546_v54 = vunpack.i.h.bf16 %v2544_v50  ;;  %v2545_v55 = vunpack.i.l.bf16 %v2544_v50  ;;  %v2541_v56 = vunpack.i.h.bf16 %v2539_v51 }
  0xaf   : > { %vm4608_vm13 = vmmov %vm4607_vm5  ;;  %vm1034_vm5 = vcmp.lt.s32.totalorder %v3097_v14, 11  ;;  %v2540_v57 = vunpack.i.l.bf16 %v2539_v51  ;;  %v747_v58 = vsel %vm4614_vm15, %v743_v22, %v745_v20  ;;  %2097 = vmatprep.subr.msk.mxu1 %vm3386_vm4, %v748_v43  ;;  %v2255_v62 = vpack.c.bf16 %v1029_v45, %v1018_v47  ;;  %v2100_v51 = vld [vmem:[%s4489_s1 + $0x10] sm:$0xff] }
  0xb0   : > { %v1028_v48 = vsel %vm4608_vm13, %v2535_v39, %v2536_v38  ;;  %vm3418_vm1 = vmand %vm4609_vm9, %vm1008_vm7  ;;  %vm1064_vm15 = vcmask 1006592   ;;  %v2101_v20 = vld [vmem:[%s4490_s2 + $0x10] sm:$0xff] }
  0xb1   : > { %vm3429_vm13 = vmpackc.low %vm1007_vm2, %vm3396_vm8  ;;  %v2258_v6 = vpack.c.bf16 %v1028_v48, %v1017_v49  ;;  %vm4617_vm8 = vcmask 39936   ;;  %v1044_v9 = vsel %vm1042_vm12, %v2541_v56, %v2540_v57  ;;  %v1043_v17 = vsel %vm1042_vm12, %v2540_v57, %v2541_v56  ;;  %v2549_v19 = vpop.permute.xlu0 %2548  ;;  %v2554_v22 = vpop.permute.xlu1 %2553 }
  0xb2   : > { %vm3440_vm14 = vmand %vm1007_vm2, %vm4531_vm0  ;;  %v1055_v8 = vsel %vm4617_vm8, %v2546_v54, %v2545_v55  ;;  %2098 = vmatpush1.msk.msra.mxu1 %vm3405_vm3, %v747_v58  ;;  %v2551_v25 = vunpack.i.h.bf16 %v2549_v19  ;;  %v2550_v26 = vunpack.i.l.bf16 %v2549_v19  ;;  %v2556_v27 = vunpack.i.h.bf16 %v2554_v22 }
  0xb3   : > { %vm4618_vm4 = vmmov %vm4609_vm9  ;;  %v2261_v18 = vpack.c.bf16 %v1055_v8, %v1044_v9  ;;  %v2555_v28 = vunpack.i.l.bf16 %v2554_v22  ;;  %2257 = vmatprep.subr.msk.bf16.mxu1 %vm3429_vm13, %v2255_v62  ;;  %vm1090_vm13 = vcmask 392192  }
  0xb4   : > { %vm3453_vm9 = vmpackc.low %vm4618_vm4, %vm3418_vm1  ;;  %vm4625_vm1 = vcmp.ge.s32.totalorder %v3093_v12, 5  ;;  %v1066_v31 = vsel %vm1064_vm15, %v2551_v25, %v2550_v26  ;;  %v1065_v32 = vsel %vm1064_vm15, %v2550_v26, %v2551_v25  ;;  %vm1071_vm15 = vcmp.lt.s32.totalorder %v3095_v13, 11 }
  0xb5   : > { %vm4621_vm2 = vmmov %vm4617_vm8  ;;  %v2267_v33 = vpack.c.bf16 %v1066_v31, %v3034_v1  ;;  %v2559_v35 = vpop.permute.xlu0 %2558  ;;  %v2270_v40 = vpack.c.bf16 %v1065_v32, %v3031_v0  ;;  %v1100_v45 = vpop.permute.xlu1 %1099 }
  0xb6   : > { %v1054_v15 = vsel %vm4621_vm2, %v2545_v55, %v2546_v54  ;;  %vm4622_vm8 = vmmov %vm4618_vm4  ;;  %vm4626_vm4 = vcmask 588800   ;;  %vm1079_vm2 = vcmask 433152   ;;  %v2561_v38 = vunpack.i.h.bf16 %v2559_v35 }
  0xb7   : > { %vm3463_vm0 = vmand %vm4622_vm8, %vm1034_vm5  ;;  %2099 = vmatmul.mubr.msk.f32.vlgmr.msra.gmra.mrb[2].mxu1 %vm4626_vm4, %v2081_v5  ;;  %vm1072_vm8 = vcmp.lt.s32.totalorder %v3091_v11, 11  ;;  %v2264_v30 = vpack.c.bf16 %v1054_v15, %v1043_v17  ;;  %v1081_v37 = vsel %vm1079_vm2, %v2556_v27, %v2555_v28  ;;  %v2560_v39 = vunpack.i.l.bf16 %v2559_v35 }
  0xb8   : > { %vm2262_vm12 = vmpackc.low %vm4625_vm1, %vm3440_vm14  ;;  %2260 = vmatpush1.bf16.msk.msra.mxu1 %vm3453_vm9, %v2258_v6  ;;  %vm4627_vm14 = vcmp.lt.s32.totalorder %v3093_v12, 11  ;;  %1182 = vmatprep.mubr.f32.mxu1 %v2952_v4  ;;  %vm4628_vm9 = vcmp.ge.s32.totalorder %v3093_v12, 5  ;;  %v1080_v42 = vsel %vm1079_vm2, %v2555_v28, %v2556_v27 }
  0xb9   : > { %vm2265_vm3 = vmpackc.low %vm1008_vm7, %vm3463_vm0  ;;  %2263 = vmatprep.subr.msk.bf16.mxu1 %vm2262_vm12, %v2261_v18  ;;  %v1092_v41 = vsel %vm1090_vm13, %v2561_v38, %v2560_v39  ;;  %v1091_v43 = vsel %vm1090_vm13, %v2560_v39, %v2561_v38  ;;  %v1102_v47 = vpop.permute.xlu0 %1101  ;;  %vm4629_vm13 = vcmp.lt.s32.totalorder %v3093_v12, 11 }
  0xba   : > { %vm2268_vm1 = vmpackc.low %vm4627_vm14, %vm4589_vm11  ;;  %v2273_v44 = vpack.c.bf16 %v1092_v41, %v1081_v37  ;;  %v2276_v48 = vpack.c.bf16 %v1091_v43, %v1080_v42 }
  0xbb   : > { %vm1074_vm0 = vmand %vm1072_vm8, %vm4628_vm9  ;;  %vm4630_vm9 = vcmask 588800  }
  0xbc   : > { %2266 = vmatpush1.bf16.msk.msra.mxu1 %vm2265_vm3, %v2264_v30  ;;  %vm2271_vm12 = vmpackc.low %vm1034_vm5, %vm4589_vm11  ;;  %vm1103_vm3 = vcmask 351232  }
  0xbd   : > { %2269 = vmatprep.subr.msk.bf16.mxu1 %vm2268_vm1, %v2267_v33  ;;  %vm2274_vm4 = vmpackc.low %vm1072_vm8, %vm1074_vm0  ;;  %v1105_v49 = vsel %vm1103_vm3, %v1102_v47, %v1100_v45  ;;  %v1104_v50 = vsel %vm1103_vm3, %v1100_v45, %v1102_v47  ;;  %vm4633_vm0 = vcmp.lt.s32.totalorder %v3097_v14, 15  ;;  %vm4638_vm3 = vcmp.ge.s32.totalorder %v3093_v12, 1 }
  0xbe   : > { %vm1073_vm14 = vmand %vm1071_vm15, %vm1008_vm7 }
  0xbf   : > { %vm2277_vm2 = vmpackc.low %vm1071_vm15, %vm1073_vm14  ;;  %vm4637_vm14 = vcmp.ge.s32.totalorder %v3097_v14, 1 }
  0xc0   : > { %2272 = vmatpush1.bf16.msk.msra.mxu1 %vm2271_vm12, %v2270_v40  ;;  %vm1098_vm1 = vmand %vm1072_vm8, %vm4629_vm13  ;;  %vm4635_vm12 = vcmask 7168  }
  0xc1   : > { %2275 = vmatprep.subr.msk.bf16.mxu1 %vm2274_vm4, %v2273_v44  ;;  %vm1097_vm7 = vmand %vm1071_vm15, %vm1034_vm5  ;;  %vm4631_vm5 = vcmask 1039360   ;;  %vm4634_vm15 = vcmp.lt.s32.totalorder %v3093_v12, 15 }
  0xc2   : > { %vm4632_vm8 = vmmov %vm4631_vm5 }
  0xc3   : > { %vm4636_vm4 = vmmov %vm4635_vm12 }
  0xc4   : > { %2278 = vmatpush1.bf16.msk.msra.mxu1 %vm2277_vm2, %v2276_v48  ;;  %vm4639_vm2 = vmmov %vm4631_vm5 }
  0xc5   : > { %2116 = vmatprep.subr.msk.mxu1 %vm1098_vm1, %v1105_v49  ;;  %vm4640_vm13 = vmmov %vm4639_vm2 }
  0xc6   : > { %v345_v52 = vpop.permute.xlu1 %344  ;;  %vm4641_vm1 = vmmov %vm4636_vm4 }
  0xc8   : > { %2117 = vmatpush1.msk.msra.mxu1 %vm1097_vm7, %v1104_v50  ;;  %vm4642_vm7 = vmmov %vm4641_vm1 }
  0xc9   : > { %2118 = vmatmul.mubr.msk.f32.vlgmr.msra.gmra.mrb[4].mxu1 %vm4630_vm9, %v2100_v51  ;;  %vm4643_vm9 = vmmov %vm4637_vm14 }
  0xca   : > { %1505 = vmatprep.mubr.f32.mxu1 %v2952_v4  ;;  %v756_v5 = vpop.permute.xlu0 %755 }
 0x174   : > { %v417_v54 = vpop.f32.mrb[0].mxu1 }
 0x175   : > { %v418_v55 = vadd.f32 %v417_v54, %v345_v52  ;;  %v419_v56 = vpop.f32.mrb[1].mxu1 }
 0x176   : > { %v420_v57 = vadd.f32 %v419_v56, %v345_v52 }
 0x177   : > { %v422_v53 = vmax.f32 %v418_v55, 0.0 }
 0x178   : > { %v423_v58 = vmax.f32 %v420_v57, 0.0 }
 0x17a   : > { %v3522_v62 = vpack.i.bf16 %v423_v58, %v422_v53  ;;  %v3526_v63 = vpack.i.bf16 %v422_v53, %v423_v58 }
 0x17c   : > { %2565 = vrot.lane.b32.xlu1 %v3522_v62, %s2948_s28 }
 0x180   : > { %2570 = vrot.lane.b32.xlu1 %v3526_v63, %s2946_s26 }
 0x18a   : > { %v827_v6 = vpop.f32.mrb[2].mxu1 }
 0x18b   : > { %v828_v8 = vadd.f32 %v827_v6, %v756_v5  ;;  %v829_v9 = vpop.f32.mrb[3].mxu1 }
 0x18c   : > { %v830_v10 = vadd.f32 %v829_v9, %v756_v5 }
 0x18d   : > { %v832_v15 = vmax.f32 %v828_v8, 0.0 }
 0x18e   : > { %v833_v17 = vmax.f32 %v830_v10, 0.0 }
 0x190   : > { %v2574_v18 = vpack.i.bf16 %v833_v17, %v832_v15  ;;  %v2579_v19 = vpack.i.bf16 %v832_v15, %v833_v17 }
 0x192   : > { %2575 = vrot.lane.b32.xlu0 %v2574_v18, %s2948_s28  ;;  %2580 = vrot.lane.b32.xlu1 %v2579_v19, %s2946_s26 }
 0x196   : > { %1112 = vperm.xlu0 %2563, %v2101_v20  }
 0x19c   : > { %v3535_v22 = vpop.f32.mrb[4].mxu1 }
 0x19d   : > { %v3537_v25 = vpop.f32.mrb[5].mxu1 }
 0x1ee   : > { %v2566_v26 = vpop.permute.xlu1 %2565 }
 0x1ef   : > { %v2568_v27 = vunpack.i.h.bf16 %v2566_v26  ;;  %v2567_v28 = vunpack.i.l.bf16 %v2566_v26 }
 0x1f1   : > { %v430_v30 = vsel %vm4631_vm5, %v2567_v28, %v2568_v27  ;;  %v431_v31 = vsel %vm4632_vm8, %v2568_v27, %v2567_v28  ;;  %vm4644_vm5 = vmmov %vm4638_vm3 }
 0x1f2   : > { %v2571_v32 = vpop.permute.xlu1 %2570  ;;  %v434_v33 = vsel %vm4633_vm0, %v430_v30, -inf  ;;  %v435_v35 = vsel %vm4634_vm15, %v431_v31, -inf  ;;  %vm4645_vm8 = vmmov %vm4633_vm0 }
 0x1f3   : > { %v2573_v37 = vunpack.i.h.bf16 %v2571_v32  ;;  %v2572_v38 = vunpack.i.l.bf16 %v2571_v32  ;;  %v436_v39 = vmax.f32 %v422_v53, %v434_v33  ;;  %v437_v40 = vmax.f32 %v423_v58, %v435_v35  ;;  %vm4646_vm0 = vmmov %vm4634_vm15 }
 0x1f4   : > { %vm4647_vm15 = vcmask 1031168  }
 0x1f5   : > { %v491_v41 = vsel %vm4635_vm12, %v2572_v38, %v2573_v37  ;;  %v492_v42 = vsel %vm4636_vm4, %v2573_v37, %v2572_v38  ;;  %v2584_v43 = vpack.i.bf16 %v437_v40, %v436_v39  ;;  %vm4648_vm12 = vmmov %vm4647_vm15  ;;  %vm4649_vm4 = vcmp.lt.s32.totalorder %v3097_v14, 14 }
 0x1f6   : > { %v495_v44 = vsel %vm4637_vm14, %v491_v41, -inf  ;;  %v496_v45 = vsel %vm4638_vm3, %v492_v42, -inf  ;;  %vm4650_vm14 = vcmp.lt.s32.totalorder %v3093_v12, 14  ;;  %vm4651_vm3 = vcmask 15360  }
 0x1f7   : > { %2585 = vrot.lane.b32.xlu1 %v2584_v43, %s2957_s11  ;;  %v3552_v47 = vmax.f32 %v422_v53, %v495_v44  ;;  %v3554_v48 = vmax.f32 %v423_v58, %v496_v45 }
 0x1f9   : > { %v2589_v49 = vpack.i.bf16 %v3552_v47, %v3554_v48 }
 0x1fb   : > { %2590 = vrot.lane.b32.xlu0 %v2589_v49, %s2956_s10 }
 0x204   : > { %v2576_v50 = vpop.permute.xlu0 %2575  ;;  %v2581_v51 = vpop.permute.xlu1 %2580 }
 0x205   : > { %v2578_v52 = vunpack.i.h.bf16 %v2576_v50  ;;  %v2577_v54 = vunpack.i.l.bf16 %v2576_v50  ;;  %v2583_v55 = vunpack.i.h.bf16 %v2581_v51  ;;  %v2582_v56 = vunpack.i.l.bf16 %v2581_v51 }
 0x207   : > { %v840_v57 = vsel %vm4639_vm2, %v2577_v54, %v2578_v52  ;;  %v841_v5 = vsel %vm4640_vm13, %v2578_v52, %v2577_v54  ;;  %v880_v53 = vsel %vm4641_vm1, %v2582_v56, %v2583_v55  ;;  %v881_v58 = vsel %vm4642_vm7, %v2583_v55, %v2582_v56  ;;  %vm4652_vm2 = vmmov %vm4651_vm3 }
 0x208   : > { %v884_v6 = vsel %vm4643_vm9, %v880_v53, -inf  ;;  %v885_v8 = vsel %vm4644_vm5, %v881_v58, -inf  ;;  %v844_v9 = vsel %vm4645_vm8, %v840_v57, -inf  ;;  %v845_v10 = vsel %vm4646_vm0, %v841_v5, -inf }
 0x209   : > { %v3571_v18 = vmax.f32 %v832_v15, %v884_v6  ;;  %v3573_v19 = vmax.f32 %v833_v17, %v885_v8  ;;  %v3575_v20 = vmax.f32 %v832_v15, %v844_v9  ;;  %v3577_v26 = vmax.f32 %v833_v17, %v845_v10 }
 0x20a   : > { %vm4653_vm13 = vcmp.ge.s32.totalorder %v3097_v14, 2  ;;  %vm4654_vm1 = vcmp.ge.s32.totalorder %v3093_v12, 2  ;;  %vm1374_vm7 = vcmask 56320   ;;  %vm1357_vm9 = vcmask 203776  }
 0x20b   : > { %v2599_v27 = vpack.i.bf16 %v3571_v18, %v3573_v19  ;;  %v2594_v28 = vpack.i.bf16 %v3577_v26, %v3575_v20  ;;  %vm1348_vm0 = vcmp.ge.s32.totalorder %v3091_v11, 9 }
 0x20d   : > { %2600 = vrot.lane.b32.xlu0 %v2599_v27, %s2956_s10  ;;  %2595 = vrot.lane.b32.xlu1 %v2594_v28, %s2957_s11 }
 0x211   : > { %2610 = vrot.lane.b32.xlu0 %v3050_v3, %s2971_s17  ;;  %2605 = vrot.lane.b32.xlu1 %v3050_v3, %s2972_s21  ;;  %s2980_s17 = smov 4  }
 0x215   : > { %2620 = vrot.lane.b32.xlu0 %v3050_v3, %s2973_s22  ;;  %2615 = vrot.lane.b32.xlu1 %v3038_v2, %s2974_s7  ;;  %v1113_v15 = vpop.permute.xlu0 %1112  ;;  %s2981_s22 = smov 64   ;;  %s224_s7 = scalar_lea.vmem %s4493_s5, %s2205_s20 }
 0x216   : > { %v1185_v45 = vadd.f32 %v3535_v22, %v1113_v15  ;;  %v1187_v49 = vadd.f32 %v3537_v25, %v1113_v15 }
 0x218   : > { %v3628_v54 = vmax.f32 %v1185_v45, 0.0  ;;  %v3630_v25 = vmax.f32 %v1187_v49, 0.0 }
 0x219   : > { %1422 = vrot.lane.b32.xlu0 %v3034_v1, %s2975_s9  ;;  %2625 = vrot.lane.b32.xlu1 %v3038_v2, %s2976_s13 }
 0x21d   : > { %2630 = vrot.lane.b32.xlu0 %v3522_v62, %s2977_s14  ;;  %1424 = vrot.lane.b32.xlu1 %v3031_v0, %s2975_s9 }
 0x221   : > { %2635 = vrot.lane.b32.xlu1 %v3526_v63, %s2978_s15 }
 0x269   : > { %v2586_v17 = vpop.permute.xlu1 %2585 }
 0x26a   : > { %v2588_v3 = vunpack.i.h.bf16 %v2586_v17  ;;  %v2587_v30 = vunpack.i.l.bf16 %v2586_v17 }
 0x26c   : > { %v447_v31 = vsel %vm4647_vm15, %v2587_v30, %v2588_v3  ;;  %v448_v32 = vsel %vm4648_vm12, %v2588_v3, %v2587_v30  ;;  %vm1350_vm15 = vcmp.ge.s32.totalorder %v3093_v12, 9  ;;  %vm1347_vm12 = vcmp.ge.s32.totalorder %v3095_v13, 9 }
 0x26d   : > { %v2591_v1 = vpop.permute.xlu0 %2590  ;;  %v451_v2 = vsel %vm4649_vm4, %v447_v31, -inf  ;;  %v452_v62 = vsel %vm4650_vm14, %v448_v32, -inf  ;;  %vm1349_vm4 = vcmp.ge.s32.totalorder %v3097_v14, 9  ;;  %vm1367_vm14 = vcmp.lt.s32.totalorder %v3093_v12, 7  ;;  %vm3642_vm5 = vmand %vm1348_vm0, %vm1350_vm15 }
 0x26e   : > { %v2593_v33 = vunpack.i.h.bf16 %v2591_v1  ;;  %v2592_v0 = vunpack.i.l.bf16 %v2591_v1  ;;  %v3600_v35 = vmax.f32 %v436_v39, %v451_v2  ;;  %v3602_v63 = vmax.f32 %v437_v40, %v452_v62 }
 0x270   : > { %v508_v37 = vsel %vm4651_vm3, %v2592_v0, %v2593_v33  ;;  %v509_v38 = vsel %vm4652_vm2, %v2593_v33, %v2592_v0  ;;  %v2639_v41 = vpack.i.bf16 %v3602_v63, %v3600_v35  ;;  %vm4660_vm3 = vcmp.ge.s32.totalorder %v3097_v14, 2 }
 0x271   : > { %v512_v42 = vsel %vm4653_vm13, %v508_v37, -inf  ;;  %v513_v43 = vsel %vm4654_vm1, %v509_v38, -inf  ;;  %vm4655_vm13 = vmmov %vm4652_vm2  ;;  %vm4656_vm1 = vcmask 1031168  }
 0x272   : > { %2640 = vrot.lane.b32.xlu0 %v2639_v41, %s2979_s16  ;;  %v3614_v39 = vmax.f32 %v3552_v47, %v512_v42  ;;  %v3617_v40 = vmax.f32 %v3554_v48, %v513_v43  ;;  %vm4657_vm8 = vmmov %vm4656_vm1 }
 0x274   : > { %v2644_v44 = vpack.i.bf16 %v3614_v39, %v3617_v40 }
 0x276   : > { %2645 = vrot.lane.b32.xlu1 %v2644_v44, %s2980_s17 }
 0x27f   : > { %v2601_v50 = vpop.permute.xlu0 %2600  ;;  %v2596_v51 = vpop.permute.xlu1 %2595 }
 0x280   : > { %v2603_v47 = vunpack.i.h.bf16 %v2601_v50  ;;  %v2602_v48 = vunpack.i.l.bf16 %v2601_v50  ;;  %v2598_v52 = vunpack.i.h.bf16 %v2596_v51  ;;  %v2597_v22 = vunpack.i.l.bf16 %v2596_v51 }
 0x282   : > { %v894_v55 = vsel %vm4652_vm2, %v2602_v48, %v2603_v47  ;;  %v895_v56 = vsel %vm4655_vm13, %v2603_v47, %v2602_v48  ;;  %v854_v57 = vsel %vm4656_vm1, %v2597_v22, %v2598_v52  ;;  %v855_v5 = vsel %vm4657_vm8, %v2598_v52, %v2597_v22  ;;  %vm1351_vm1 = vmand %vm1347_vm12, %vm1349_vm4 }
 0x283   : > { %v2611_v58 = vpop.permute.xlu0 %2610  ;;  %v2606_v6 = vpop.permute.xlu1 %2605  ;;  %v898_v8 = vsel %vm4660_vm3, %v894_v55, -inf  ;;  %vm4661_vm2 = vcmp.ge.s32.totalorder %v3093_v12, 2  ;;  %vm4662_vm13 = vcmp.lt.s32.totalorder %v3097_v14, 14  ;;  %vm4663_vm8 = vcmp.lt.s32.totalorder %v3093_v12, 14  ;;  %vm3674_vm3 = vmpackc.low %vm1348_vm0, %vm3642_vm5 }
 0x284   : > { %v899_v9 = vsel %vm4661_vm2, %v895_v56, -inf  ;;  %v858_v10 = vsel %vm4662_vm13, %v854_v57, -inf  ;;  %v859_v27 = vsel %vm4663_vm8, %v855_v5, -inf  ;;  %v2613_v28 = vunpack.i.h.bf16 %v2611_v58  ;;  %vm3684_vm2 = vmpackc.low %vm1347_vm12, %vm1351_vm1  ;;  %v2934_v5 = vld [vmem:[%s3028_s23 + $0x8] sm:$0xff] }
 0x285   : > { %v2612_v15 = vunpack.i.l.bf16 %v2611_v58  ;;  %v2608_v17 = vunpack.i.h.bf16 %v2606_v6  ;;  %v2607_v3 = vunpack.i.l.bf16 %v2606_v6  ;;  %v3659_v30 = vmax.f32 %v3571_v18, %v898_v8  ;;  %v2935_v8 = vld [vmem:[%s3028_s23] sm:$0xff] }
 0x286   : > { %v3662_v31 = vmax.f32 %v3573_v19, %v899_v9  ;;  %v3665_v32 = vmax.f32 %v3575_v20, %v858_v10  ;;  %v3668_v1 = vmax.f32 %v3577_v26, %v859_v27  ;;  %vm1411_vm13 = vcmask 990208  }
 0x287   : > { %v1375_v18 = vsel %vm1374_vm7, %v2612_v15, %v2613_v28  ;;  %v1376_v62 = vsel %vm1374_vm7, %v2613_v28, %v2612_v15  ;;  %v1358_v19 = vsel %vm1357_vm9, %v2607_v3, %v2608_v17  ;;  %v1359_v20 = vsel %vm1357_vm9, %v2608_v17, %v2607_v3  ;;  %v2621_v37 = vpop.permute.xlu0 %2620  ;;  %v2616_v38 = vpop.permute.xlu1 %2615  ;;  %vm1369_vm7 = vmand %vm1348_vm0, %vm1367_vm14 }
 0x288   : > { %v2279_v33 = vpack.c.bf16 %v3145_v36, %v1359_v20  ;;  %v2282_v0 = vpack.c.bf16 %v3141_v34, %v1358_v19  ;;  %v2659_v41 = vpack.i.bf16 %v3659_v30, %v3662_v31  ;;  %v2649_v42 = vpack.i.bf16 %v3668_v1, %v3665_v32 }
 0x289   : > { %v2623_v43 = vunpack.i.h.bf16 %v2621_v37  ;;  %v2622_v44 = vunpack.i.l.bf16 %v2621_v37  ;;  %v2618_v45 = vunpack.i.h.bf16 %v2616_v38  ;;  %v2617_v49 = vunpack.i.l.bf16 %v2616_v38 }
 0x28a   : > { %vm4668_vm9 = vcmp.lt.s32.totalorder %v3097_v14, 7  ;;  %2660 = vrot.lane.b32.xlu1 %v2659_v41, %s2980_s17  ;;  %2650 = vrot.lane.b32.xlu0 %v2649_v42, %s2979_s16  ;;  %vm4671_vm8 = vcmask 973824   ;;  %vm4672_vm0 = vcmask 72704   ;;  %v3724_v55 = vpack.i.bf16 %v3628_v54, %v3630_v25 }
 0x28b   : > { %vm3702_vm5 = vmand %vm1347_vm12, %vm4668_vm9  ;;  %v1398_v36 = vsel %vm4671_vm8, %v2623_v43, %v2622_v44  ;;  %v1386_v50 = vsel %vm4672_vm0, %v2617_v49, %v2618_v45  ;;  %2281 = vmatprep.subr.msk.bf16.mxu1 %vm3674_vm3, %v2279_v33  ;;  %vm1404_vm9 = vcmp.lt.s32.totalorder %v3091_v11, 7  ;;  %v2626_v22 = vpop.permute.xlu1 %2625  ;;  %v3728_v56 = vpack.i.bf16 %v3630_v25, %v3628_v54  ;;  %v1423_v15 = vpop.permute.xlu0 %1422 }
 0x28c   : > { %vm4673_vm1 = vmmov %vm4672_vm0  ;;  %v2288_v52 = vpack.c.bf16 %v1386_v50, %v1375_v18  ;;  %2284 = vmatpush1.bf16.msk.msra.mxu1 %vm3684_vm2, %v2282_v0  ;;  %v2291_v53 = vpack.c.bf16 %v1398_v36, %v2934_v5  ;;  %v2628_v58 = vunpack.i.h.bf16 %v2626_v22  ;;  %v2627_v6 = vunpack.i.l.bf16 %v2626_v22 }
 0x28d   : > { %v1387_v51 = vsel %vm4673_vm1, %v2618_v45, %v2617_v49  ;;  %vm3715_vm12 = vmpackc.low %vm1350_vm15, %vm1369_vm7  ;;  %vm4677_vm0 = vcmp.lt.s32.totalorder %v3097_v14, 7 }
 0x28e   : > { %v2285_v48 = vpack.c.bf16 %v1387_v51, %v1376_v62  ;;  %vm2289_vm3 = vmpackc.low %vm1349_vm4, %vm3702_vm5  ;;  %2665 = vrot.lane.b32.xlu1 %v3724_v55, %s2946_s26  ;;  %2655 = vrot.lane.b32.xlu0 %v3728_v56, %s2948_s28  ;;  %v1413_v10 = vsel %vm1411_vm13, %v2628_v58, %v2627_v6  ;;  %v1412_v27 = vsel %vm1411_vm13, %v2627_v6, %v2628_v58 }
 0x28f   : > { %vm4676_vm7 = vmmov %vm4671_vm8  ;;  %vm1403_vm8 = vcmp.lt.s32.totalorder %v3095_v13, 7  ;;  %v2297_v28 = vpack.c.bf16 %v3215_v7, %v1413_v10  ;;  %v1425_v17 = vpop.permute.xlu1 %1424  ;;  %v2300_v3 = vpack.c.bf16 %v3199_v60, %v1412_v27  ;;  %v2119_v7 = vld [vmem:[%s4489_s1 + $0x18] sm:$0xff]  ;;  %v2631_v60 = vpop.permute.xlu0 %2630 }
 0x290   : > { %v1397_v57 = vsel %vm4676_vm7, %v2622_v44, %v2623_v43  ;;  %vm2292_vm2 = vmpackc.low %vm1367_vm14, %vm4589_vm11  ;;  %2287 = vmatprep.subr.msk.bf16.mxu1 %vm3715_vm12, %v2285_v48  ;;  %vm1426_vm12 = vcmask 842752   ;;  %v2633_v44 = vunpack.i.h.bf16 %v2631_v60  ;;  %v2632_v45 = vunpack.i.l.bf16 %v2631_v60 }
 0x291   : > { %vm1406_vm5 = vmand %vm1404_vm9, %vm1350_vm15  ;;  %v2294_v9 = vpack.c.bf16 %v1397_v57, %v2935_v8  ;;  %2290 = vmatpush1.bf16.msk.msra.mxu1 %vm2289_vm3, %v2288_v52  ;;  %v1428_v2 = vsel %vm1426_vm12, %v1425_v17, %v1423_v15  ;;  %v1427_v18 = vsel %vm1426_vm12, %v1423_v15, %v1425_v17  ;;  %vm472_vm12 = vcmp.lt.s32.totalorder %v3097_v14, 8 }
 0x292   : > { %vm2295_vm1 = vmpackc.low %vm4677_vm0, %vm4589_vm11  ;;  %2293 = vmatprep.subr.msk.bf16.mxu1 %vm2292_vm2, %v2291_v53  ;;  %vm4679_vm2 = vcmask 588800  }
 0x293   : > { %vm2298_vm7 = vmpackc.low %vm1404_vm9, %vm1406_vm5  ;;  %v2636_v62 = vpop.permute.xlu1 %2635  ;;  %vm455_vm5 = vcmp.lt.s32.totalorder %v3097_v14, 12 }
 0x294   : > { %vm1405_vm15 = vmand %vm1403_vm8, %vm1349_vm4  ;;  %v2638_v49 = vunpack.i.h.bf16 %v2636_v62  ;;  %v2637_v34 = vunpack.i.l.bf16 %v2636_v62 }
 0x295   : > { %2296 = vmatpush1.bf16.msk.msra.mxu1 %vm2295_vm1, %v2294_v9  ;;  %vm2301_vm11 = vmpackc.low %vm1403_vm8, %vm1405_vm15  ;;  %vm517_vm1 = vcmp.ge.s32.totalorder %v3093_v12, 4  ;;  %vm539_vm15 = vcmask 64512  }
 0x296   : > { %2299 = vmatprep.subr.msk.bf16.mxu1 %vm2298_vm7, %v2297_v28  ;;  %vm1421_vm4 = vmand %vm1404_vm9, %vm1367_vm14  ;;  %vm463_vm14 = vcmask 1014784   ;;  %vm524_vm9 = vcmask 31744   ;;  %vm478_vm7 = vcmask 982016   ;;  %v540_v22 = vsel %vm539_vm15, %v2637_v34, %v2638_v49 }
 0x297   : > { %vm4678_vm13 = vmmov %vm4677_vm0  ;;  %vm516_vm0 = vcmp.ge.s32.totalorder %v3097_v14, 4  ;;  %v479_v48 = vsel %vm478_vm7, %v2632_v45, %v2633_v44  ;;  %v480_v52 = vsel %vm478_vm7, %v2633_v44, %v2632_v45  ;;  %v541_v57 = vsel %vm539_vm15, %v2638_v49, %v2637_v34 }
 0x298   : > { %vm1420_vm3 = vmand %vm1403_vm8, %vm4678_vm13  ;;  %vm456_vm8 = vcmp.lt.s32.totalorder %v3093_v12, 12  ;;  %vm534_vm13 = vcmp.ge.s32.totalorder %v3093_v12, 8  ;;  %v483_v17 = vsel %vm472_vm12, %v479_v48, -inf  ;;  %vm4682_vm7 = vcmask 1039360  }
 0x299   : > { %2302 = vmatpush1.bf16.msk.msra.mxu1 %vm2301_vm11, %v2300_v3  ;;  %vm473_vm11 = vcmp.lt.s32.totalorder %v3093_v12, 8  ;;  %vm4683_vm15 = vmmov %vm4682_vm7  ;;  %vm4684_vm12 = vcmp.ge.s32.totalorder %v3097_v14, 1 }
 0x29a   : > { %2135 = vmatprep.subr.msk.mxu1 %vm1421_vm4, %v1428_v2  ;;  %vm533_vm4 = vcmp.ge.s32.totalorder %v3097_v14, 8  ;;  %v484_v3 = vsel %vm473_vm11, %v480_v52, -inf  ;;  %vm4685_vm11 = vcmp.ge.s32.totalorder %v3093_v12, 1 }
 0x29d   : > { %2136 = vmatpush1.msk.msra.mxu1 %vm1420_vm3, %v1427_v18  ;;  %vm4680_vm3 = vcmask 7168  }
 0x29e   : > { %2137 = vmatmul.mubr.msk.f32.vlgmr.msra.gmra.mrb[6].mxu1 %vm4679_vm2, %v2119_v7  ;;  %vm4681_vm2 = vmmov %vm4680_vm3 }
 0x2e4   : > { %v2641_v19 = vpop.permute.xlu0 %2640 }
 0x2e5   : > { %v2643_v26 = vunpack.i.h.bf16 %v2641_v19  ;;  %v2642_v33 = vunpack.i.l.bf16 %v2641_v19 }
 0x2e7   : > { %v464_v38 = vsel %vm463_vm14, %v2642_v33, %v2643_v26  ;;  %v465_v41 = vsel %vm463_vm14, %v2643_v26, %v2642_v33 }
 0x2e8   : > { %v2646_v20 = vpop.permute.xlu1 %2645  ;;  %v468_v36 = vsel %vm455_vm5, %v464_v38, -inf  ;;  %v469_v50 = vsel %vm456_vm8, %v465_v41, -inf }
 0x2e9   : > { %v2648_v0 = vunpack.i.h.bf16 %v2646_v20  ;;  %v2647_v37 = vunpack.i.l.bf16 %v2646_v20  ;;  %v470_v5 = vmax.f32 %v3600_v35, %v468_v36  ;;  %v471_v53 = vmax.f32 %v3602_v63, %v469_v50 }
 0x2ea   : > { %v544_v35 = vsel %vm533_vm4, %v540_v22, -inf  ;;  %v545_v63 = vsel %vm534_vm13, %v541_v57, -inf  ;;  %vm4686_vm4 = vcmp.lt.s32.totalorder %v3097_v14, 15  ;;  %vm4687_vm13 = vcmp.lt.s32.totalorder %v3093_v12, 15 }
 0x2eb   : > { %v525_v42 = vsel %vm524_vm9, %v2647_v37, %v2648_v0  ;;  %v526_v43 = vsel %vm524_vm9, %v2648_v0, %v2647_v37  ;;  %v485_v62 = vmax.f32 %v470_v5, %v483_v17  ;;  %v486_v19 = vmax.f32 %v471_v53, %v484_v3 }
 0x2ec   : > { %v529_v51 = vsel %vm516_vm0, %v525_v42, -inf  ;;  %v530_v47 = vsel %vm517_vm1, %v526_v43, -inf }
 0x2ed   : > { %v531_v58 = vmax.f32 %v3614_v39, %v529_v51  ;;  %v532_v6 = vmax.f32 %v3617_v40, %v530_v47 }
 0x2ef   : > { %v546_v20 = vmax.f32 %v531_v58, %v544_v35  ;;  %v547_v26 = vmax.f32 %v532_v6, %v545_v63 }
 0x2f1   : > { %v3846_v53 = vmax.f32 %v485_v62, %v546_v20  ;;  %v3848_v58 = vmax.f32 %v486_v19, %v547_v26 }
 0x2fc   : > { %v2661_v8 = vpop.permute.xlu1 %2660  ;;  %v2651_v9 = vpop.permute.xlu0 %2650 }
 0x2fd   : > { %v2663_v10 = vunpack.i.h.bf16 %v2661_v8  ;;  %v2662_v27 = vunpack.i.l.bf16 %v2661_v8  ;;  %v2653_v28 = vunpack.i.h.bf16 %v2651_v9  ;;  %v2652_v15 = vunpack.i.l.bf16 %v2651_v9 }
 0x2ff   : > { %v908_v39 = vsel %vm524_vm9, %v2662_v27, %v2663_v10  ;;  %v909_v40 = vsel %vm524_vm9, %v2663_v10, %v2662_v27  ;;  %v868_v2 = vsel %vm463_vm14, %v2652_v15, %v2653_v28  ;;  %v869_v18 = vsel %vm463_vm14, %v2653_v28, %v2652_v15 }
 0x300   : > { %v2666_v7 = vpop.permute.xlu1 %2665  ;;  %v2656_v60 = vpop.permute.xlu0 %2655  ;;  %v912_v41 = vsel %vm516_vm0, %v908_v39, -inf  ;;  %v913_v42 = vsel %vm517_vm1, %v909_v40, -inf  ;;  %v872_v43 = vsel %vm455_vm5, %v868_v2, -inf  ;;  %v873_v44 = vsel %vm456_vm8, %v869_v18, -inf }
 0x301   : > { %v2668_v33 = vunpack.i.h.bf16 %v2666_v7  ;;  %v2667_v0 = vunpack.i.l.bf16 %v2666_v7  ;;  %v2658_v37 = vunpack.i.h.bf16 %v2656_v60  ;;  %v2657_v38 = vunpack.i.l.bf16 %v2656_v60 }
 0x302   : > { %v914_v6 = vmax.f32 %v3659_v30, %v912_v41  ;;  %v915_v8 = vmax.f32 %v3662_v31, %v913_v42  ;;  %v874_v9 = vmax.f32 %v3665_v32, %v872_v43  ;;  %v875_v10 = vmax.f32 %v3668_v1, %v873_v44 }
 0x303   : > { %v1235_v45 = vsel %vm4680_vm3, %v2667_v0, %v2668_v33  ;;  %v1236_v49 = vsel %vm4681_vm2, %v2668_v33, %v2667_v0  ;;  %v1197_v34 = vsel %vm4682_vm7, %v2657_v38, %v2658_v37  ;;  %v1198_v36 = vsel %vm4683_vm15, %v2658_v37, %v2657_v38 }
 0x304   : > { %v1239_v50 = vsel %vm4684_vm12, %v1235_v45, -inf  ;;  %v1240_v51 = vsel %vm4685_vm11, %v1236_v49, -inf  ;;  %v1201_v47 = vsel %vm4686_vm4, %v1197_v34, -inf  ;;  %v1202_v48 = vsel %vm4687_vm13, %v1198_v36, -inf }
 0x305   : > { %v3835_v52 = vmax.f32 %v3628_v54, %v1239_v50  ;;  %v3838_v22 = vmax.f32 %v3630_v25, %v1240_v51  ;;  %v3841_v57 = vmax.f32 %v3628_v54, %v1201_v47  ;;  %v3844_v5 = vmax.f32 %v3630_v25, %v1202_v48 }
 0x306   : > { %v3860_v25 = vmax.f32 %v874_v9, %v914_v6  ;;  %v3862_v28 = vmax.f32 %v875_v10, %v915_v8  ;;  %v2684_v30 = vpack.i.bf16 %v3846_v53, %v3848_v58  ;;  %v2679_v31 = vpack.i.bf16 %v3848_v58, %v3846_v53 }
 0x307   : > { %v2674_v27 = vpack.i.bf16 %v3835_v52, %v3838_v22  ;;  %v2669_v54 = vpack.i.bf16 %v3844_v5, %v3841_v57  ;;  %vm4688_vm3 = vcmask 15360   ;;  %vm4690_vm7 = vcmask 1031168  }
 0x308   : > { %v2699_v32 = vpack.i.bf16 %v3860_v25, %v3862_v28  ;;  %v2689_v1 = vpack.i.bf16 %v3862_v28, %v3860_v25  ;;  %vm4689_vm2 = vmmov %vm4688_vm3  ;;  %vm4692_vm12 = vcmp.ge.s32.totalorder %v3097_v14, 2  ;;  %vm4693_vm11 = vcmp.ge.s32.totalorder %v3093_v12, 2 }
 0x309   : > { %2675 = vrot.lane.b32.xlu1 %v2674_v27, %s2956_s10  ;;  %2670 = vrot.lane.b32.xlu0 %v2669_v54, %s2957_s11  ;;  %vm4691_vm15 = vmmov %vm4690_vm7  ;;  %vm4694_vm4 = vcmp.lt.s32.totalorder %v3097_v14, 14  ;;  %vm4695_vm13 = vcmp.lt.s32.totalorder %v3093_v12, 14 }
 0x30d   : > { %2685 = vrot.lane.b32.xlu1 %v2684_v30, %s2947_s27  ;;  %2680 = vrot.lane.b32.xlu0 %v2679_v31, %s2950_s30 }
 0x311   : > { %2700 = vrot.lane.b32.xlu1 %v2699_v32, %s2947_s27  ;;  %2690 = vrot.lane.b32.xlu0 %v2689_v1, %s2950_s30 }
 0x315   : > { %2705 = vrot.lane.b32.xlu1 %v3724_v55, %s2980_s17  ;;  %2695 = vrot.lane.b32.xlu0 %v3728_v56, %s2979_s16 }
 0x37b   : > { %v2676_v15 = vpop.permute.xlu1 %2675  ;;  %v2671_v17 = vpop.permute.xlu0 %2670 }
 0x37c   : > { %v2678_v3 = vunpack.i.h.bf16 %v2676_v15  ;;  %v2677_v35 = vunpack.i.l.bf16 %v2676_v15  ;;  %v2673_v63 = vunpack.i.h.bf16 %v2671_v17  ;;  %v2672_v39 = vunpack.i.l.bf16 %v2671_v17 }
 0x37e   : > { %v1249_v40 = vsel %vm4688_vm3, %v2677_v35, %v2678_v3  ;;  %v1250_v2 = vsel %vm4689_vm2, %v2678_v3, %v2677_v35  ;;  %v1211_v18 = vsel %vm4690_vm7, %v2672_v39, %v2673_v63  ;;  %v1212_v7 = vsel %vm4691_vm15, %v2673_v63, %v2672_v39 }
 0x37f   : > { %v1253_v55 = vsel %vm4692_vm12, %v1249_v40, -inf  ;;  %v1254_v56 = vsel %vm4693_vm11, %v1250_v2, -inf  ;;  %v1215_v60 = vsel %vm4694_vm4, %v1211_v18, -inf  ;;  %v1216_v62 = vsel %vm4695_vm13, %v1212_v7, -inf  ;;  %v2686_v19 = vpop.permute.xlu1 %2685  ;;  %v2681_v20 = vpop.permute.xlu0 %2680 }
 0x380   : > { %v2688_v26 = vunpack.i.h.bf16 %v2686_v19  ;;  %v2687_v33 = vunpack.i.l.bf16 %v2686_v19  ;;  %v2683_v0 = vunpack.i.h.bf16 %v2681_v20  ;;  %v2682_v37 = vunpack.i.l.bf16 %v2681_v20 }
 0x381   : > { %v1255_v38 = vmax.f32 %v3835_v52, %v1253_v55  ;;  %v1256_v41 = vmax.f32 %v3838_v22, %v1254_v56  ;;  %v1217_v42 = vmax.f32 %v3841_v57, %v1215_v60  ;;  %v1218_v43 = vmax.f32 %v3844_v5, %v1216_v62 }
 0x382   : > { %vm4696_vm3 = vcmask 130048   ;;  %vm4698_vm7 = vcmask 916480   ;;  %vm4700_vm12 = vcmp.ge.s32.totalorder %v3095_v13, 1  ;;  %vm4701_vm11 = vcmp.ge.s32.totalorder %v3091_v11, 1 }
 0x383   : > { %v608_v44 = vsel %vm4696_vm3, %v2687_v33, %v2688_v26  ;;  %vm4697_vm2 = vmmov %vm4696_vm3  ;;  %v556_v49 = vsel %vm4698_vm7, %v2682_v37, %v2683_v0  ;;  %v2701_v36 = vpop.permute.xlu1 %2700  ;;  %v2691_v50 = vpop.permute.xlu0 %2690  ;;  %vm4702_vm4 = vcmp.lt.s32.totalorder %v3095_v13, 15  ;;  %vm4703_vm13 = vcmp.lt.s32.totalorder %v3091_v11, 15 }
 0x384   : > { %v609_v45 = vsel %vm4697_vm2, %v2688_v26, %v2687_v33  ;;  %vm4699_vm15 = vmmov %vm4698_vm7  ;;  %v2703_v51 = vunpack.i.h.bf16 %v2701_v36  ;;  %v2702_v47 = vunpack.i.l.bf16 %v2701_v36  ;;  %v2693_v48 = vunpack.i.h.bf16 %v2691_v50 }
 0x385   : > { %v557_v34 = vsel %vm4699_vm15, %v2683_v0, %v2682_v37  ;;  %v2692_v52 = vunpack.i.l.bf16 %v2691_v50  ;;  %v612_v22 = vsel %vm4700_vm12, %v608_v44, -inf  ;;  %v613_v57 = vsel %vm4701_vm11, %v609_v45, -inf  ;;  %vm4704_vm3 = vmmov %vm4697_vm2 }
 0x386   : > { %v560_v5 = vsel %vm4702_vm4, %v556_v49, -inf  ;;  %v561_v6 = vsel %vm4703_vm13, %v557_v34, -inf  ;;  %v964_v8 = vsel %vm4704_vm3, %v2702_v47, %v2703_v51  ;;  %v965_v9 = vsel %vm4697_vm2, %v2703_v51, %v2702_v47  ;;  %vm4705_vm15 = vmmov %vm4698_vm7 }
 0x387   : > { %v924_v10 = vsel %vm4698_vm7, %v2692_v52, %v2693_v48  ;;  %v925_v27 = vsel %vm4705_vm15, %v2693_v48, %v2692_v52  ;;  %v2706_v54 = vpop.permute.xlu1 %2705  ;;  %v2696_v30 = vpop.permute.xlu0 %2695  ;;  %v3913_v31 = vmax.f32 %v3846_v53, %v612_v22  ;;  %v3916_v32 = vmax.f32 %v3848_v58, %v613_v57  ;;  %v2120_v52 = vld [vmem:[%s4490_s2 + $0x18] sm:$0xff] }
 0x388   : > { %v562_v1 = vmax.f32 %v3846_v53, %v560_v5  ;;  %v563_v15 = vmax.f32 %v3848_v58, %v561_v6  ;;  %v2708_v17 = vunpack.i.h.bf16 %v2706_v54  ;;  %v2707_v3 = vunpack.i.l.bf16 %v2706_v54 }
 0x389   : > { %v2698_v35 = vunpack.i.h.bf16 %v2696_v30  ;;  %v2697_v63 = vunpack.i.l.bf16 %v2696_v30  ;;  %v2714_v39 = vpack.i.bf16 %v3913_v31, %v3916_v32  ;;  %v968_v2 = vsel %vm4700_vm12, %v964_v8, -inf }
 0x38a   : > { %v2709_v40 = vpack.i.bf16 %v563_v15, %v562_v1  ;;  %v969_v18 = vsel %vm4701_vm11, %v965_v9, -inf  ;;  %v1261_v7 = vsel %vm524_vm9, %v2707_v3, %v2708_v17  ;;  %v1262_v55 = vsel %vm524_vm9, %v2708_v17, %v2707_v3  ;;  %vm4707_vm9 = vmmov %vm4703_vm13 }
 0x38b   : > { %v1223_v56 = vsel %vm463_vm14, %v2697_v63, %v2698_v35  ;;  %v1224_v60 = vsel %vm463_vm14, %v2698_v35, %v2697_v63  ;;  %v1265_v62 = vsel %vm516_vm0, %v1261_v7, -inf  ;;  %v1266_v19 = vsel %vm517_vm1, %v1262_v55, -inf  ;;  %2715 = vrot.lane.b32.xlu1 %v2714_v39, %s2954_s8  ;;  %vm4706_vm14 = vmmov %vm4702_vm4 }
 0x38c   : > { %v1227_v20 = vsel %vm455_vm5, %v1223_v56, -inf  ;;  %v1228_v26 = vsel %vm456_vm8, %v1224_v60, -inf  ;;  %2710 = vrot.lane.b32.xlu0 %v2709_v40, %s2958_s12  ;;  %v1267_v33 = vmax.f32 %v1255_v38, %v1265_v62  ;;  %v1268_v0 = vmax.f32 %v1256_v41, %v1266_v19 }
 0x38d   : > { %v1229_v37 = vmax.f32 %v1217_v42, %v1227_v20  ;;  %v1230_v44 = vmax.f32 %v1218_v43, %v1228_v26  ;;  %v970_v45 = vmax.f32 %v3860_v25, %v968_v2  ;;  %v971_v49 = vmax.f32 %v3862_v28, %v969_v18 }
 0x38e   : > { %v928_v34 = vsel %vm4706_vm14, %v924_v10, -inf  ;;  %v929_v36 = vsel %vm4707_vm9, %v925_v27, -inf  ;;  %vm4708_vm5 = vcmask 785408   ;;  %vm4710_vm0 = vcmp.lt.s32.totalorder %v3095_v13, 14 }
 0x38f   : > { %v3946_v50 = vmax.f32 %v1229_v37, %v1267_v33  ;;  %v3948_v51 = vmax.f32 %v1230_v44, %v1268_v0  ;;  %v3951_v47 = vmax.f32 %v3860_v25, %v928_v34  ;;  %v3954_v38 = vmax.f32 %v3862_v28, %v929_v36  ;;  %v3967_v25 = vpop.f32.mrb[6].mxu1  ;;  %vm4709_vm8 = vmmov %vm4708_vm5 }
 0x390   : > { %v2729_v41 = vpack.i.bf16 %v970_v45, %v971_v49  ;;  %v3971_v28 = vpop.f32.mrb[7].mxu1  ;;  %vm4711_vm1 = vcmp.lt.s32.totalorder %v3091_v11, 14  ;;  %vm4712_vm4 = vcmask 261120   ;;  %vm4716_vm7 = vcmp.ge.s32.totalorder %v3095_v13, 2 }
 0x391   : > { %v2719_v42 = vpack.i.bf16 %v3954_v38, %v3951_v47  ;;  %v2734_v43 = vpack.i.bf16 %v3946_v50, %v3948_v51  ;;  %v3964_v48 = vpack.i.bf16 %v3948_v51, %v3946_v50  ;;  %vm4713_vm13 = vmmov %vm4712_vm4  ;;  %vm4717_vm15 = vcmp.ge.s32.totalorder %v3091_v11, 2 }
 0x392   : > { %2730 = vrot.lane.b32.xlu1 %v2729_v41, %s2954_s8  ;;  %vm4714_vm3 = vmmov %vm4712_vm4  ;;  %vm4719_vm11 = vcmask 130048  }
 0x393   : > { %2720 = vrot.lane.b32.xlu0 %v2719_v42, %s2958_s12  ;;  %vm4715_vm2 = vmmov %vm4714_vm3 }
 0x394   : > { %vm4718_vm12 = vmmov %vm4716_vm7 }
 0x395   : > { %vm4720_vm14 = vmmov %vm4719_vm11 }
 0x396   : > { %2735 = vrot.lane.b32.xlu1 %v2734_v43, %s2947_s27  ;;  %vm4721_vm9 = vmmov %vm4717_vm15 }
 0x397   : > { %2725 = vrot.lane.b32.xlu0 %v3964_v48, %s2950_s30 }
 0x39b   : > { %1435 = vperm.xlu0 %2563, %v2120_v52  }
 0x3fd   : > { %v2716_v22 = vpop.permute.xlu1 %2715 }
 0x3fe   : > { %v2711_v57 = vpop.permute.xlu0 %2710  ;;  %v2718_v8 = vunpack.i.h.bf16 %v2716_v22  ;;  %v2717_v9 = vunpack.i.l.bf16 %v2716_v22 }
 0x3ff   : > { %v2713_v5 = vunpack.i.h.bf16 %v2711_v57  ;;  %v2712_v6 = vunpack.i.l.bf16 %v2711_v57 }
 0x400   : > { %v625_v63 = vsel %vm4712_vm4, %v2717_v9, %v2718_v8  ;;  %vm4726_vm4 = vcmp.lt.s32.totalorder %v3095_v13, 15 }
 0x401   : > { %v573_v10 = vsel %vm4708_vm5, %v2712_v6, %v2713_v5  ;;  %v574_v27 = vsel %vm4709_vm8, %v2713_v5, %v2712_v6  ;;  %v629_v62 = vsel %vm4718_vm12, %v625_v63, -inf  ;;  %vm4722_vm5 = vcmask 916480  }
 0x402   : > { %v577_v54 = vsel %vm4710_vm0, %v573_v10, -inf  ;;  %v578_v30 = vsel %vm4711_vm1, %v574_v27, -inf  ;;  %vm4723_vm8 = vmmov %vm4722_vm5  ;;  %vm4724_vm0 = vcmp.ge.s32.totalorder %v3095_v13, 1  ;;  %vm4725_vm1 = vcmp.ge.s32.totalorder %v3091_v11, 1 }
 0x403   : > { %v3982_v17 = vmax.f32 %v562_v1, %v577_v54  ;;  %v3984_v3 = vmax.f32 %v563_v15, %v578_v30  ;;  %v626_v1 = vsel %vm4715_vm2, %v2718_v8, %v2717_v9  ;;  %vm589_vm12 = vcmask 523264  }
 0x404   : > { %v2731_v35 = vpop.permute.xlu1 %2730  ;;  %v630_v52 = vsel %vm4721_vm9, %v626_v1, -inf  ;;  %vm598_vm9 = vcmp.lt.s32.totalorder %v3095_v13, 8 }
 0x405   : > { %v2733_v39 = vunpack.i.h.bf16 %v2731_v35  ;;  %v2732_v40 = vunpack.i.l.bf16 %v2731_v35  ;;  %v2721_v2 = vpop.permute.xlu0 %2720  ;;  %v2744_v18 = vpack.i.bf16 %v3984_v3, %v3982_v17 }
 0x406   : > { %v2723_v37 = vunpack.i.h.bf16 %v2721_v2  ;;  %v2722_v44 = vunpack.i.l.bf16 %v2721_v2 }
 0x407   : > { %v978_v7 = vsel %vm4713_vm13, %v2732_v40, %v2733_v39  ;;  %v979_v55 = vsel %vm4714_vm3, %v2733_v39, %v2732_v40  ;;  %2745 = vrot.lane.b32.xlu0 %v2744_v18, %s2981_s22  ;;  %vm4727_vm13 = vcmp.lt.s32.totalorder %v3091_v11, 15  ;;  %vm4728_vm3 = vcmask 785408  }
 0x408   : > { %v2736_v15 = vpop.permute.xlu1 %2735  ;;  %v982_v56 = vsel %vm4716_vm7, %v978_v7, -inf  ;;  %v983_v60 = vsel %vm4717_vm15, %v979_v55, -inf  ;;  %v938_v10 = vsel %vm4728_vm3, %v2722_v44, %v2723_v37  ;;  %vm4729_vm2 = vmmov %vm4728_vm3  ;;  %v4039_v39 = vmax.f32 %v3913_v31, %v629_v62 }
 0x409   : > { %v2738_v19 = vunpack.i.h.bf16 %v2736_v15  ;;  %v2737_v20 = vunpack.i.l.bf16 %v2736_v15  ;;  %v2726_v26 = vpop.permute.xlu0 %2725  ;;  %v3999_v33 = vmax.f32 %v970_v45, %v982_v56  ;;  %v4001_v0 = vmax.f32 %v971_v49, %v983_v60 }
 0x40a   : > { %v2728_v34 = vunpack.i.h.bf16 %v2726_v26  ;;  %v2727_v36 = vunpack.i.l.bf16 %v2726_v26  ;;  %v939_v27 = vsel %vm4729_vm2, %v2723_v37, %v2722_v44  ;;  %v4042_v40 = vmax.f32 %v3916_v32, %v630_v52 }
 0x40b   : > { %v1315_v41 = vsel %vm4719_vm11, %v2737_v20, %v2738_v19  ;;  %v1316_v42 = vsel %vm4720_vm14, %v2738_v19, %v2737_v20  ;;  %v2759_v43 = vpack.i.bf16 %v3999_v33, %v4001_v0  ;;  %vm4730_vm7 = vcmp.lt.s32.totalorder %v3095_v13, 14 }
 0x40c   : > { %v1277_v22 = vsel %vm4722_vm5, %v2727_v36, %v2728_v34  ;;  %v1278_v45 = vsel %vm4723_vm8, %v2728_v34, %v2727_v36  ;;  %v1319_v49 = vsel %vm4724_vm0, %v1315_v41, -inf  ;;  %v1320_v57 = vsel %vm4725_vm1, %v1316_v42, -inf }
 0x40d   : > { %2760 = vrot.lane.b32.xlu0 %v2759_v43, %s2981_s22  ;;  %v1281_v5 = vsel %vm4726_vm4, %v1277_v22, -inf  ;;  %v1282_v6 = vsel %vm4727_vm13, %v1278_v45, -inf  ;;  %v4021_v8 = vmax.f32 %v3946_v50, %v1319_v49  ;;  %v4024_v9 = vmax.f32 %v3948_v51, %v1320_v57 }
 0x40e   : > { %v4029_v54 = vmax.f32 %v3946_v50, %v1281_v5  ;;  %v4032_v30 = vmax.f32 %v3948_v51, %v1282_v6  ;;  %v942_v50 = vsel %vm4730_vm7, %v938_v10, -inf  ;;  %vm4731_vm15 = vcmp.lt.s32.totalorder %v3091_v11, 14  ;;  %vm4734_vm7 = vmmov %vm4729_vm2 }
 0x40f   : > { %v2764_v35 = vpack.i.bf16 %v4021_v8, %v4024_v9  ;;  %v943_v51 = vsel %vm4731_vm15, %v939_v27, -inf  ;;  %v2749_v2 = vpack.i.bf16 %v4039_v39, %v4042_v40  ;;  %v4053_v18 = vmax.f32 %v3951_v47, %v942_v50 }
 0x410   : > { %v2739_v63 = vpack.i.bf16 %v4032_v30, %v4029_v54  ;;  %v4056_v31 = vmax.f32 %v3954_v38, %v943_v51  ;;  %vm581_vm11 = vcmp.lt.s32.totalorder %v3095_v13, 12  ;;  %vm582_vm14 = vcmp.lt.s32.totalorder %v3091_v11, 12 }
 0x411   : > { %2765 = vrot.lane.b32.xlu0 %v2764_v35, %s2954_s8  ;;  %vm599_vm5 = vcmp.lt.s32.totalorder %v3091_v11, 8  ;;  %v600_v37 = vsel %vm598_vm9, %v3848_v58, -inf  ;;  %vm649_vm8 = vcmp.ge.s32.totalorder %v3095_v13, 8  ;;  %vm650_vm0 = vcmp.ge.s32.totalorder %v3091_v11, 8 }
 0x412   : > { %2740 = vrot.lane.b32.xlu1 %v2739_v63, %s2958_s12  ;;  %v2754_v32 = vpack.i.bf16 %v4056_v31, %v4053_v18  ;;  %vm633_vm1 = vcmp.ge.s32.totalorder %v3095_v13, 4  ;;  %vm634_vm4 = vcmp.ge.s32.totalorder %v3091_v11, 4  ;;  %v601_v52 = vsel %vm599_vm5, %v3846_v53, -inf }
 0x413   : > { %v651_v49 = vsel %vm649_vm8, %v3848_v58, -inf  ;;  %v652_v6 = vsel %vm650_vm0, %v3846_v53, -inf  ;;  %vm4732_vm13 = vcmask 261120   ;;  %vm4735_vm15 = vcmp.ge.s32.totalorder %v3095_v13, 2 }
 0x414   : > { %vm4733_vm3 = vmmov %vm4732_vm13  ;;  %vm4736_vm9 = vcmp.ge.s32.totalorder %v3091_v11, 2  ;;  %vm4737_vm5 = vcmp.lt.s32.totalorder %v3095_v13, 14  ;;  %vm4738_vm8 = vcmp.lt.s32.totalorder %v3091_v11, 14 }
 0x416   : > { %2750 = vrot.lane.b32.xlu1 %v2749_v2, %s2981_s22 }
 0x41a   : > { %2755 = vrot.lane.b32.xlu1 %v2754_v32, %s2981_s22  ;;  %v4064_v7 = vpop.permute.xlu0 %1435 }
 0x41e   : > { %2770 = vrot.lane.b32.xlu1 %v3964_v48, %s2981_s22 }
 0x479   : > { %v2746_v55 = vpop.permute.xlu0 %2745 }
 0x47a   : > { %v2748_v1 = vunpack.i.h.bf16 %v2746_v55  ;;  %v2747_v15 = vunpack.i.l.bf16 %v2746_v55 }
 0x47c   : > { %v590_v47 = vsel %vm589_vm12, %v2747_v15, %v2748_v1  ;;  %v591_v38 = vsel %vm589_vm12, %v2748_v1, %v2747_v15 }
 0x47d   : > { %v594_v48 = vsel %vm581_vm11, %v590_v47, -inf  ;;  %v595_v60 = vsel %vm582_vm14, %v591_v38, -inf }
 0x47e   : > { %v596_v44 = vmax.f32 %v3982_v17, %v594_v48  ;;  %v597_v34 = vmax.f32 %v3984_v3, %v595_v60  ;;  %v1508_v17 = vadd.f32 %v3967_v25, %v4064_v7 }
 0x47f   : > { %v2761_v56 = vpop.permute.xlu0 %2760 }
 0x480   : > { %v2763_v62 = vunpack.i.h.bf16 %v2761_v56  ;;  %v2762_v19 = vunpack.i.l.bf16 %v2761_v56  ;;  %v602_v10 = vmax.f32 %v596_v44, %v600_v37  ;;  %v603_v27 = vmax.f32 %v597_v34, %v601_v52 }
 0x481   : > { %v1510_v52 = vadd.f32 %v3971_v28, %v4064_v7 }
 0x482   : > { %v992_v36 = vsel %vm589_vm12, %v2762_v19, %v2763_v62  ;;  %v993_v41 = vsel %vm589_vm12, %v2763_v62, %v2762_v19 }
 0x483   : > { %v2766_v26 = vpop.permute.xlu0 %2765  ;;  %v996_v35 = vsel %vm633_vm1, %v992_v36, -inf  ;;  %v997_v63 = vsel %vm634_vm4, %v993_v41, -inf }
 0x484   : > { %v2741_v20 = vpop.permute.xlu1 %2740  ;;  %v2768_v42 = vunpack.i.h.bf16 %v2766_v26  ;;  %v2767_v43 = vunpack.i.l.bf16 %v2766_v26  ;;  %v998_v48 = vmax.f32 %v3999_v33, %v996_v35  ;;  %v999_v60 = vmax.f32 %v4001_v0, %v997_v63 }
 0x485   : > { %v2743_v22 = vunpack.i.h.bf16 %v2741_v20  ;;  %v2742_v45 = vunpack.i.l.bf16 %v2741_v20 }
 0x486   : > { %v1329_v58 = vsel %vm4732_vm13, %v2767_v43, %v2768_v42  ;;  %v1330_v50 = vsel %vm4733_vm3, %v2768_v42, %v2767_v43 }
 0x487   : > { %v1291_v2 = vsel %vm4729_vm2, %v2742_v45, %v2743_v22  ;;  %v1292_v53 = vsel %vm4734_vm7, %v2743_v22, %v2742_v45  ;;  %v1333_v62 = vsel %vm4735_vm15, %v1329_v58, -inf  ;;  %v1334_v19 = vsel %vm4736_vm9, %v1330_v50, -inf }
 0x488   : > { %v2751_v57 = vpop.permute.xlu1 %2750  ;;  %v1296_v33 = vsel %vm4738_vm8, %v1292_v53, -inf  ;;  %v1335_v22 = vmax.f32 %v4021_v8, %v1333_v62  ;;  %v4153_v58 = vmax.f32 %v1508_v17, 0.0  ;;  %v4155_v50 = vmax.f32 %v1510_v52, 0.0 }
 0x489   : > { %v2753_v3 = vunpack.i.h.bf16 %v2751_v57  ;;  %v2752_v5 = vunpack.i.l.bf16 %v2751_v57  ;;  %v1336_v57 = vmax.f32 %v4024_v9, %v1334_v19  ;;  %vm4747_vm15 = vcmask 130048  }
 0x48a   : > { %vm4748_vm9 = vmmov %vm4747_vm15 }
 0x48b   : > { %v641_v25 = vsel %vm589_vm12, %v2752_v5, %v2753_v3  ;;  %v642_v51 = vsel %vm589_vm12, %v2753_v3, %v2752_v5 }
 0x48c   : > { %v645_v32 = vsel %vm633_vm1, %v641_v25, -inf  ;;  %v646_v55 = vsel %vm634_vm4, %v642_v51, -inf  ;;  %v2756_v1 = vpop.permute.xlu1 %2755 }
 0x48d   : > { %v647_v15 = vmax.f32 %v4039_v39, %v645_v32  ;;  %v648_v47 = vmax.f32 %v4042_v40, %v646_v55  ;;  %v2758_v38 = vunpack.i.h.bf16 %v2756_v1  ;;  %v2757_v56 = vunpack.i.l.bf16 %v2756_v1 }
 0x48e   : > { %v1295_v40 = vsel %vm4737_vm5, %v1291_v2, -inf  ;;  %v2789_v32 = vpack.i.bf16 %v4153_v58, %v4155_v50  ;;  %vm4749_vm5 = vmmov %vm4748_vm9 }
 0x48f   : > { %v653_v20 = vmax.f32 %v647_v15, %v651_v49  ;;  %v654_v26 = vmax.f32 %v648_v47, %v652_v6  ;;  %v952_v37 = vsel %vm589_vm12, %v2757_v56, %v2758_v38  ;;  %v953_v39 = vsel %vm589_vm12, %v2758_v38, %v2757_v56  ;;  %v1515_v56 = vld [vmem:[%s4491_s3 + $0x8] sm:$0xff]  ;;  %vm4750_vm8 = vmmov %vm4749_vm5 }
 0x490   : > { %v956_v0 = vsel %vm581_vm11, %v952_v37, -inf  ;;  %v957_v44 = vsel %vm582_vm14, %v953_v39, -inf  ;;  %v2771_v34 = vpop.permute.xlu1 %2770  ;;  %v2869_v38 = vpack.i.bf16 %v4155_v50, %v4153_v58  ;;  %1918 = vmatprep.mubr.f32.mxu0 %v1515_v56 }
 0x491   : > { %v4124_v36 = vmax.f32 %v602_v10, %v653_v20  ;;  %v4126_v41 = vmax.f32 %v603_v27, %v654_v26  ;;  %v958_v42 = vmax.f32 %v4053_v18, %v956_v0  ;;  %v959_v43 = vmax.f32 %v4056_v31, %v957_v44 }
 0x492   : > { %v2773_v45 = vunpack.i.h.bf16 %v2771_v34  ;;  %v2772_v49 = vunpack.i.l.bf16 %v2771_v34  ;;  %v1297_v18 = vmax.f32 %v4029_v54, %v1295_v40  ;;  %v1298_v31 = vmax.f32 %v4032_v30, %v1296_v33 }
 0x493   : > { %v4134_v3 = vmax.f32 %v958_v42, %v998_v48  ;;  %v4136_v5 = vmax.f32 %v959_v43, %v999_v60  ;;  %v2774_v6 = vpack.i.bf16 %v4124_v36, %v4126_v41  ;;  %v2854_v1 = vpack.i.bf16 %v4126_v41, %v4124_v36  ;;  %v1517_v48 = vld [vmem:[%s4492_s4] sm:$0xff] }
 0x494   : > { %v1303_v10 = vsel %vm589_vm12, %v2772_v49, %v2773_v45  ;;  %v1304_v28 = vsel %vm589_vm12, %v2773_v45, %v2772_v49  ;;  %vm4739_vm12 = vcmask 138240  }
 0x495   : > { %v1307_v8 = vsel %vm581_vm11, %v1303_v10, -inf  ;;  %v1308_v9 = vsel %vm582_vm14, %v1304_v28, -inf  ;;  %v1337_v7 = vsel %vm633_vm1, %v1304_v28, -inf  ;;  %v1338_v27 = vsel %vm634_vm4, %v1303_v10, -inf  ;;  %2775 = vrot.lane.b32.xlu0 %v2774_v6, %s2945_s25  ;;  %vm4740_vm11 = vmmov %vm4739_vm12 }
 0x496   : > { %v1309_v54 = vmax.f32 %v1297_v18, %v1307_v8  ;;  %v1310_v30 = vmax.f32 %v1298_v31, %v1308_v9  ;;  %v1339_v35 = vmax.f32 %v1335_v22, %v1337_v7  ;;  %v1340_v63 = vmax.f32 %v1336_v57, %v1338_v27  ;;  %vm2304_vm14 = vmpackc.low %vm3108_vm6, %vm3108_vm6 }
 0x497   : > { %v2784_v25 = vpack.i.bf16 %v4134_v3, %v4136_v5  ;;  %v2351_v17 = vpack.c.bf16 %v4136_v5, %v4126_v41  ;;  %v2353_v55 = vpack.c.bf16 %v4134_v3, %v4124_v36  ;;  %v2864_v15 = vpack.i.bf16 %v4136_v5, %v4134_v3  ;;  %vm4741_vm0 = vmmov %vm4740_vm11 }
 0x498   : > { %v4159_v51 = vmax.f32 %v1309_v54, %v1339_v35  ;;  %v4161_v2 = vmax.f32 %v1310_v30, %v1340_v63  ;;  %vm4742_vm1 = vmmov %vm4741_vm0  ;;  %vm4754_vm6 = vcmp.ge.s32.totalorder %v3095_v13, 1 }
 0x499   : > { %2785 = vrot.lane.b32.xlu1 %v2784_v25, %s2945_s25  ;;  %vm2307_vm4 = vmpackc.low %vm3116_vm10, %vm3116_vm10 }
 0x49a   : > { %v2779_v53 = vpack.i.bf16 %v4159_v51, %v4161_v2  ;;  %v2859_v47 = vpack.i.bf16 %v4161_v2, %v4159_v51  ;;  %vm4743_vm13 = vmmov %vm4741_vm0 }
 0x49b   : > { %vm4744_vm3 = vmmov %vm4741_vm0 }
 0x49c   : > { %2780 = vrot.lane.b32.xlu0 %v2779_v53, %s2945_s25  ;;  %vm4745_vm2 = vmmov %vm4741_vm0 }
 0x49d   : > { %2790 = vrot.lane.b32.xlu1 %v2789_v32, %s2945_s25  ;;  %vm4746_vm7 = vmmov %vm4741_vm0 }
 0x49e   : > { %vm4757_vm10 = vmmov %vm4749_vm5 }
 0x4a0   : > { %2795 = vrot.lane.b32.xlu0 %v2774_v6, %s2947_s27 }
 0x4a1   : > { %2805 = vrot.lane.b32.xlu1 %v2784_v25, %s2947_s27 }
 0x4a4   : > { %2800 = vrot.lane.b32.xlu0 %v2779_v53, %s2947_s27 }
 0x4a5   : > { %2810 = vrot.lane.b32.xlu1 %v2789_v32, %s2947_s27 }
 0x4a8   : > { %2815 = vrot.lane.b32.xlu0 %v2774_v6, %s2944_s24 }
 0x4a9   : > { %2825 = vrot.lane.b32.xlu1 %v2784_v25, %s2944_s24 }
 0x4ac   : > { %2820 = vrot.lane.b32.xlu0 %v2779_v53, %s2944_s24 }
 0x4ad   : > { %2830 = vrot.lane.b32.xlu1 %v2789_v32, %s2944_s24 }
 0x4b0   : > { %2835 = vrot.lane.b32.xlu0 %v2774_v6, %s2946_s26 }
 0x4b1   : > { %2845 = vrot.lane.b32.xlu1 %v2784_v25, %s2946_s26 }
 0x4b4   : > { %2840 = vrot.lane.b32.xlu0 %v2779_v53, %s2946_s26 }
 0x4b5   : > { %2850 = vrot.lane.b32.xlu1 %v2789_v32, %s2946_s26 }
 0x4b8   : > { %2855 = vrot.lane.b32.xlu0 %v2854_v1, %s2948_s28 }
 0x4b9   : > { %2865 = vrot.lane.b32.xlu1 %v2864_v15, %s2948_s28 }
 0x4bc   : > { %2860 = vrot.lane.b32.xlu0 %v2859_v47, %s2948_s28 }
 0x4bd   : > { %2870 = vrot.lane.b32.xlu1 %v2869_v38, %s2948_s28 }
 0x4c0   : > { %2875 = vrot.lane.b32.xlu0 %v2854_v1, %s2949_s29 }
 0x4c1   : > { %2885 = vrot.lane.b32.xlu1 %v2864_v15, %s2949_s29 }
 0x4c4   : > { %2880 = vrot.lane.b32.xlu0 %v2859_v47, %s2949_s29 }
 0x4c5   : > { %2890 = vrot.lane.b32.xlu1 %v2869_v38, %s2949_s29 }
 0x4c8   : > { %2895 = vrot.lane.b32.xlu0 %v2854_v1, %s2950_s30 }
 0x4c9   : > { %2905 = vrot.lane.b32.xlu1 %v2864_v15, %s2950_s30 }
 0x4cc   : > { %2900 = vrot.lane.b32.xlu0 %v2859_v47, %s2950_s30 }
 0x4cd   : > { %2910 = vrot.lane.b32.xlu1 %v2869_v38, %s2950_s30 }
 0x4d0   : > { %2915 = vrot.lane.b32.xlu0 %v2854_v1, %s2951_s6 }
 0x4d1   : > { %2925 = vrot.lane.b32.xlu1 %v2864_v15, %s2951_s6 }
 0x4d4   : > { %2920 = vrot.lane.b32.xlu0 %v2859_v47, %s2951_s6 }
 0x4d5   : > { %2930 = vrot.lane.b32.xlu1 %v2869_v38, %s2951_s6 }
 0x4d8   : > { %1848 = vperm.xlu0 %2563, %v1517_v48  }
 0x507   : > { %v2776_v60 = vpop.permute.xlu0 %2775 }
 0x508   : > { %v2778_v62 = vunpack.i.h.bf16 %v2776_v60  ;;  %v2777_v19 = vunpack.i.l.bf16 %v2776_v60 }
 0x50a   : > { %v1543_v40 = vsel %vm4739_vm12, %v2778_v62, %v2777_v19  ;;  %v1542_v0 = vsel %vm4741_vm0, %v2777_v19, %v2778_v62  ;;  %vm4751_vm12 = vcmp.ge.s32.totalorder %v3091_v11, 1  ;;  %vm4758_vm0 = vmmov %vm4749_vm5 }
 0x50b   : > { %v2786_v20 = vpop.permute.xlu1 %2785 }
 0x50c   : > { %v2788_v26 = vunpack.i.h.bf16 %v2786_v20  ;;  %v2787_v37 = vunpack.i.l.bf16 %v2786_v20 }
 0x50e   : > { %v2781_v39 = vpop.permute.xlu0 %2780  ;;  %v1545_v33 = vsel %vm4740_vm11, %v2788_v26, %v2787_v37  ;;  %v1544_v44 = vsel %vm4742_vm1, %v2787_v37, %v2788_v26  ;;  %vm4257_vm11 = vmpackc.low %vm4751_vm12, %vm4751_vm12 }
 0x50f   : > { %v2791_v34 = vpop.permute.xlu1 %2790  ;;  %v2783_v42 = vunpack.i.h.bf16 %v2781_v39  ;;  %v2782_v43 = vunpack.i.l.bf16 %v2781_v39  ;;  %v2303_v52 = vpack.c.bf16 %v1545_v33, %v1543_v40  ;;  %v2306_v22 = vpack.c.bf16 %v1544_v44, %v1542_v0  ;;  %vm4759_vm1 = vmmov %vm4758_vm0 }
 0x510   : > { %v2793_v45 = vunpack.i.h.bf16 %v2791_v34  ;;  %v2792_v49 = vunpack.i.l.bf16 %v2791_v34 }
 0x511   : > { %v1546_v57 = vsel %vm4743_vm13, %v2782_v43, %v2783_v42  ;;  %v1547_v6 = vsel %vm4744_vm3, %v2783_v42, %v2782_v43  ;;  %2305 = vmatprep.subr.msk.bf16.mxu0 %vm2304_vm14, %v2303_v52  ;;  %vm4761_vm13 = vcmask 121856  }
 0x512   : > { %v1548_v18 = vsel %vm4745_vm2, %v2792_v49, %v2793_v45  ;;  %v1549_v31 = vsel %vm4746_vm7, %v2793_v45, %v2792_v49  ;;  %2308 = vmatpush1.bf16.msk.msra.mxu0 %vm2307_vm4, %v2306_v22  ;;  %v2796_v10 = vpop.permute.xlu0 %2795  ;;  %vm4762_vm3 = vmmov %vm4761_vm13 }
 0x513   : > { %v2309_v28 = vpack.c.bf16 %v1549_v31, %v1547_v6  ;;  %v2312_v8 = vpack.c.bf16 %v1548_v18, %v1546_v57  ;;  %v2806_v9 = vpop.permute.xlu1 %2805  ;;  %v2798_v7 = vunpack.i.h.bf16 %v2796_v10  ;;  %v2797_v27 = vunpack.i.l.bf16 %v2796_v10  ;;  %vm4763_vm2 = vmmov %vm4762_vm3 }
 0x514   : > { %v2808_v54 = vunpack.i.h.bf16 %v2806_v9  ;;  %v2807_v30 = vunpack.i.l.bf16 %v2806_v9  ;;  %vm4764_vm7 = vmmov %vm4763_vm2 }
 0x515   : > { %v1582_v35 = vsel %vm4747_vm15, %v2797_v27, %v2798_v7  ;;  %v1583_v63 = vsel %vm4748_vm9, %v2798_v7, %v2797_v27  ;;  %2311 = vmatprep.subr.msk.bf16.mxu0 %vm2304_vm14, %v2309_v28  ;;  %vm4264_vm14 = vmpackc.low %vm4754_vm6, %vm4754_vm6  ;;  %vm4765_vm15 = vnez %v4537_v29 }
 0x516   : > { %v1584_v25 = vsel %vm4749_vm5, %v2807_v30, %v2808_v54  ;;  %v1585_v53 = vsel %vm4750_vm8, %v2808_v54, %v2807_v30  ;;  %2314 = vmatpush1.bf16.msk.msra.mxu0 %vm2307_vm4, %v2312_v8  ;;  %v2801_v32 = vpop.permute.xlu0 %2800  ;;  %vm4760_vm4 = vmmov %vm4758_vm0  ;;  %vm4766_vm5 = vnez %v4543_v46 }
 0x517   : > { %v2315_v21 = vpack.c.bf16 %v1585_v53, %v1583_v63  ;;  %v2318_v15 = vpack.c.bf16 %v1584_v25, %v1582_v35  ;;  %v2811_v47 = vpop.permute.xlu1 %2810  ;;  %v2803_v38 = vunpack.i.h.bf16 %v2801_v32  ;;  %v2802_v56 = vunpack.i.l.bf16 %v2801_v32  ;;  %vm2328_vm9 = vmpackc.low %vm4765_vm15, %vm4765_vm15 }
 0x518   : > { %v2813_v48 = vunpack.i.h.bf16 %v2811_v47  ;;  %v2812_v60 = vunpack.i.l.bf16 %v2811_v47  ;;  %vm2331_vm8 = vmpackc.low %vm4766_vm5, %vm4766_vm5 }
 0x519   : > { %v1586_v62 = vsel %vm4757_vm10, %v2802_v56, %v2803_v38  ;;  %v1587_v19 = vsel %vm4758_vm0, %v2803_v38, %v2802_v56  ;;  %2317 = vmatprep.subr.msk.bf16.mxu0 %vm4257_vm11, %v2315_v21  ;;  %vm4767_vm12 = vmmov %vm4763_vm2  ;;  %vm4771_vm10 = vcmask 7168  }
 0x51a   : > { %v1588_v20 = vsel %vm4759_vm1, %v2812_v60, %v2813_v48  ;;  %v1589_v26 = vsel %vm4760_vm4, %v2813_v48, %v2812_v60  ;;  %2320 = vmatpush1.bf16.msk.msra.mxu0 %vm4264_vm14, %v2318_v15  ;;  %v2816_v37 = vpop.permute.xlu0 %2815  ;;  %vm4769_vm6 = vmmov %vm4763_vm2 }
 0x51b   : > { %v2321_v39 = vpack.c.bf16 %v1589_v26, %v1587_v19  ;;  %v2324_v40 = vpack.c.bf16 %v1588_v20, %v1586_v62  ;;  %v2826_v33 = vpop.permute.xlu1 %2825  ;;  %v2818_v0 = vunpack.i.h.bf16 %v2816_v37  ;;  %v2817_v44 = vunpack.i.l.bf16 %v2816_v37  ;;  %vm4772_vm0 = vmmov %vm4771_vm10 }
 0x51c   : > { %v2828_v34 = vunpack.i.h.bf16 %v2826_v33  ;;  %v2827_v42 = vunpack.i.l.bf16 %v2826_v33  ;;  %vm4773_vm1 = vmmov %vm4772_vm0 }
 0x51d   : > { %v1622_v43 = vsel %vm4761_vm13, %v2817_v44, %v2818_v0  ;;  %v1623_v52 = vsel %vm4762_vm3, %v2818_v0, %v2817_v44  ;;  %2323 = vmatprep.subr.msk.bf16.mxu0 %vm4257_vm11, %v2321_v39  ;;  %vm4768_vm11 = vmmov %vm4763_vm2  ;;  %vm4775_vm13 = vcmp.ge.s32.totalorder %v3093_v12, 1 }
 0x51e   : > { %v1624_v22 = vsel %vm4763_vm2, %v2827_v42, %v2828_v34  ;;  %v1625_v45 = vsel %vm4764_vm7, %v2828_v34, %v2827_v42  ;;  %2326 = vmatpush1.bf16.msk.msra.mxu0 %vm4264_vm14, %v2324_v40  ;;  %v2821_v49 = vpop.permute.xlu0 %2820  ;;  %vm4770_vm14 = vmmov %vm4763_vm2  ;;  %vm4778_vm2 = vcmp.ge.s32.totalorder %v3097_v14, 1 }
 0x51f   : > { %v2327_v57 = vpack.c.bf16 %v1625_v45, %v1623_v52  ;;  %v2330_v6 = vpack.c.bf16 %v1624_v22, %v1622_v43  ;;  %v2831_v18 = vpop.permute.xlu1 %2830  ;;  %v2823_v31 = vunpack.i.h.bf16 %v2821_v49  ;;  %v2822_v10 = vunpack.i.l.bf16 %v2821_v49  ;;  %vm4774_vm4 = vmmov %vm4772_vm0 }
 0x520   : > { %v2833_v28 = vunpack.i.h.bf16 %v2831_v18  ;;  %v2832_v8 = vunpack.i.l.bf16 %v2831_v18  ;;  %vm4321_vm3 = vmpackc.low %vm4775_vm13, %vm4775_vm13  ;;  %vm4794_vm13 = vcmp.lt.s32.totalorder %v3097_v14, 15 }
 0x521   : > { %v1626_v9 = vsel %vm4767_vm12, %v2822_v10, %v2823_v31  ;;  %v1627_v7 = vsel %vm4768_vm11, %v2823_v31, %v2822_v10  ;;  %2329 = vmatprep.subr.msk.bf16.mxu0 %vm2328_vm9, %v2327_v57  ;;  %vm4328_vm7 = vmpackc.low %vm4778_vm2, %vm4778_vm2  ;;  %vm4785_vm12 = vcmask 1039360   ;;  %v2355_v10 = vpack.c.bf16 %v4155_v50, %v4161_v2 }
 0x522   : > { %v1628_v27 = vsel %vm4769_vm6, %v2832_v8, %v2833_v28  ;;  %v1629_v54 = vsel %vm4770_vm14, %v2833_v28, %v2832_v8  ;;  %2332 = vmatpush1.bf16.msk.msra.mxu0 %vm2331_vm8, %v2330_v6  ;;  %v2836_v30 = vpop.permute.xlu0 %2835  ;;  %vm4781_vm15 = vmmov %vm4772_vm0 }
 0x523   : > { %v2333_v35 = vpack.c.bf16 %v1629_v54, %v1627_v7  ;;  %v2336_v63 = vpack.c.bf16 %v1628_v27, %v1626_v9  ;;  %v2846_v25 = vpop.permute.xlu1 %2845  ;;  %v2838_v53 = vunpack.i.h.bf16 %v2836_v30  ;;  %v2837_v32 = vunpack.i.l.bf16 %v2836_v30  ;;  %vm4783_vm5 = vmmov %vm4772_vm0 }
 0x524   : > { %v2848_v1 = vunpack.i.h.bf16 %v2846_v25  ;;  %v2847_v21 = vunpack.i.l.bf16 %v2846_v25  ;;  %vm4786_vm11 = vmmov %vm4785_vm12  ;;  %v2357_v30 = vpack.c.bf16 %v4153_v58, %v4159_v51 }
 0x525   : > { %v1662_v15 = vsel %vm4771_vm10, %v2837_v32, %v2838_v53  ;;  %v1663_v47 = vsel %vm4772_vm0, %v2838_v53, %v2837_v32  ;;  %2335 = vmatprep.subr.msk.bf16.mxu0 %vm2328_vm9, %v2333_v35  ;;  %vm4782_vm9 = vmmov %vm4772_vm0  ;;  %vm4789_vm10 = vcmp.lt.s32.totalorder %v3093_v12, 15 }
 0x526   : > { %v1664_v38 = vsel %vm4773_vm1, %v2847_v21, %v2848_v1  ;;  %v1665_v56 = vsel %vm4774_vm4, %v2848_v1, %v2847_v21  ;;  %2338 = vmatpush1.bf16.msk.msra.mxu0 %vm2331_vm8, %v2336_v63  ;;  %v2841_v24 = vpop.permute.xlu0 %2840  ;;  %vm4784_vm8 = vmmov %vm4772_vm0 }
 0x527   : > { %v2339_v29 = vpack.c.bf16 %v1665_v56, %v1663_v47  ;;  %v2342_v60 = vpack.c.bf16 %v1664_v38, %v1662_v15  ;;  %v2851_v62 = vpop.permute.xlu1 %2850  ;;  %v2843_v19 = vunpack.i.h.bf16 %v2841_v24  ;;  %v2842_v20 = vunpack.i.l.bf16 %v2841_v24  ;;  %vm4787_vm6 = vmmov %vm4786_vm11 }
 0x528   : > { %v2853_v26 = vunpack.i.h.bf16 %v2851_v62  ;;  %v2852_v37 = vunpack.i.l.bf16 %v2851_v62  ;;  %vm4788_vm14 = vmmov %vm4787_vm6 }
 0x529   : > { %v1666_v39 = vsel %vm4781_vm15, %v2842_v20, %v2843_v19  ;;  %v1667_v40 = vsel %vm4782_vm9, %v2843_v19, %v2842_v20  ;;  %2341 = vmatprep.subr.msk.bf16.mxu0 %vm4321_vm3, %v2339_v29  ;;  %vm4361_vm0 = vmpackc.low %vm4789_vm10, %vm4789_vm10  ;;  %vm4799_vm15 = vcmask 924672   ;;  %vm4806_vm10 = vnez %v4548_v61 }
 0x52a   : > { %v1668_v33 = vsel %vm4783_vm5, %v2852_v37, %v2853_v26  ;;  %v1669_v0 = vsel %vm4784_vm8, %v2853_v26, %v2852_v37  ;;  %2344 = vmatpush1.bf16.msk.msra.mxu0 %vm4328_vm7, %v2342_v60  ;;  %v2856_v44 = vpop.permute.xlu0 %2855  ;;  %vm4792_vm1 = vmmov %vm4787_vm6 }
 0x52b   : > { %v2345_v34 = vpack.c.bf16 %v1669_v0, %v1667_v40  ;;  %v2348_v42 = vpack.c.bf16 %v1668_v33, %v1666_v39  ;;  %v2866_v43 = vpop.permute.xlu1 %2865  ;;  %v2858_v45 = vunpack.i.h.bf16 %v2856_v44  ;;  %v2857_v49 = vunpack.i.l.bf16 %v2856_v44  ;;  %vm4793_vm4 = vmmov %vm4792_vm1 }
 0x52c   : > { %v2868_v52 = vunpack.i.h.bf16 %v2866_v43  ;;  %v2867_v22 = vunpack.i.l.bf16 %v2866_v43  ;;  %vm4797_vm2 = vmmov %vm4792_vm1 }
 0x52d   : > { %2347 = vmatprep.subr.msk.bf16.mxu0 %vm4321_vm3, %v2345_v34  ;;  %v1703_v31 = vsel %vm4786_vm11, %v2858_v45, %v2857_v49  ;;  %v1702_v5 = vsel %vm4788_vm14, %v2857_v49, %v2858_v45  ;;  %vm4372_vm3 = vmpackc.low %vm4794_vm13, %vm4794_vm13  ;;  %vm4809_vm13 = vcmask 916480  }
 0x52e   : > { %2350 = vmatpush1.bf16.msk.msra.mxu0 %vm4328_vm7, %v2348_v42  ;;  %v2861_v57 = vpop.permute.xlu0 %2860  ;;  %v1705_v18 = vsel %vm4785_vm12, %v2868_v52, %v2867_v22  ;;  %v1704_v41 = vsel %vm4787_vm6, %v2867_v22, %v2868_v52  ;;  %vm4798_vm7 = vmmov %vm4792_vm1  ;;  %vm4803_vm12 = vnez %v4546_v59 }
 0x52f   : > { %v2871_v6 = vpop.permute.xlu1 %2870  ;;  %2352 = vmatprep.subr.bf16.mxu0 %v2351_v17  ;;  %v2863_v9 = vunpack.i.h.bf16 %v2861_v57  ;;  %v2862_v7 = vunpack.i.l.bf16 %v2861_v57  ;;  %v2359_v17 = vpack.c.bf16 %v1705_v18, %v1703_v31  ;;  %v2362_v58 = vpack.c.bf16 %v1704_v41, %v1702_v5  ;;  %vm4800_vm9 = vmmov %vm4799_vm15 }
 0x530   : > { %v2873_v28 = vunpack.i.h.bf16 %v2871_v6  ;;  %v2872_v8 = vunpack.i.l.bf16 %v2871_v6  ;;  %vm4801_vm5 = vmmov %vm4800_vm9 }
 0x531   : > { %v1707_v63 = vsel %vm4793_vm4, %v2863_v9, %v2862_v7  ;;  %v1706_v51 = vsel %vm4797_vm2, %v2862_v7, %v2863_v9  ;;  %vm4802_vm8 = vmmov %vm4801_vm5 }
 0x532   : > { %2354 = vmatpush1.bf16.msra.mxu0 %v2353_v55  ;;  %v2876_v27 = vpop.permute.xlu0 %2875  ;;  %v1709_v35 = vsel %vm4792_vm1, %v2873_v28, %v2872_v8  ;;  %v1708_v32 = vsel %vm4798_vm7, %v2872_v8, %v2873_v28  ;;  %vm2372_vm11 = vmpackc.low %vm4803_vm12, %vm4803_vm12  ;;  %vm4818_vm12 = vcmp.lt.s32.totalorder %v3095_v13, 15 }
 0x533   : > { %v2886_v54 = vpop.permute.xlu1 %2885  ;;  %2356 = vmatprep.subr.bf16.mxu0 %v2355_v10  ;;  %v2878_v2 = vunpack.i.h.bf16 %v2876_v27  ;;  %v2877_v55 = vunpack.i.l.bf16 %v2876_v27  ;;  %v2365_v1 = vpack.c.bf16 %v1709_v35, %v1707_v63  ;;  %v2368_v29 = vpack.c.bf16 %v1708_v32, %v1706_v51  ;;  %vm4804_vm6 = vmmov %vm4801_vm5 }
 0x534   : > { %v2888_v36 = vunpack.i.h.bf16 %v2886_v54  ;;  %v2887_v3 = vunpack.i.l.bf16 %v2886_v54  ;;  %vm4805_vm14 = vmmov %vm4801_vm5 }
 0x535   : > { %v1743_v15 = vsel %vm4800_vm9, %v2878_v2, %v2877_v55  ;;  %v1742_v62 = vsel %vm4802_vm8, %v2877_v55, %v2878_v2  ;;  %vm4807_vm1 = vmmov %vm4801_vm5 }
 0x536   : > { %2358 = vmatpush1.bf16.msra.mxu0 %v2357_v30  ;;  %v2881_v25 = vpop.permute.xlu0 %2880  ;;  %v1745_v21 = vsel %vm4799_vm15, %v2888_v36, %v2887_v3  ;;  %v1744_v60 = vsel %vm4801_vm5, %v2887_v3, %v2888_v36  ;;  %vm4808_vm4 = vmmov %vm4807_vm1  ;;  %vm4813_vm15 = vcmp.lt.s32.totalorder %v3091_v11, 15 }
 0x537   : > { %v2891_v53 = vpop.permute.xlu1 %2890  ;;  %2361 = vmatprep.subr.msk.bf16.mxu0 %vm4361_vm0, %v2359_v17  ;;  %v2883_v56 = vunpack.i.h.bf16 %v2881_v25  ;;  %v2882_v24 = vunpack.i.l.bf16 %v2881_v25  ;;  %v2371_v19 = vpack.c.bf16 %v1745_v21, %v1743_v15  ;;  %v2374_v44 = vpack.c.bf16 %v1744_v60, %v1742_v62  ;;  %vm4420_vm9 = vmpackc.low %vm4813_vm15, %vm4813_vm15  ;;  %v1514_v15 = vld [vmem:[%s4491_s3] sm:$0xff] }
 0x538   : > { %v2893_v47 = vunpack.i.h.bf16 %v2891_v53  ;;  %v2892_v38 = vunpack.i.l.bf16 %v2891_v53  ;;  %vm4830_vm15 = vnez %v4562_v23 }
 0x539   : > { %v1747_v40 = vsel %vm4805_vm14, %v2883_v56, %v2882_v24  ;;  %v1746_v34 = vsel %vm4807_vm1, %v2882_v24, %v2883_v56  ;;  %vm4825_vm1 = vnez %v4556_v16 }
 0x53a   : > { %2364 = vmatpush1.bf16.msk.msra.mxu0 %vm4372_vm3, %v2362_v58  ;;  %v2896_v14 = vpop.permute.xlu0 %2895  ;;  %v1749_v39 = vsel %vm4804_vm6, %v2893_v47, %v2892_v38  ;;  %v1748_v42 = vsel %vm4808_vm4, %v2892_v38, %v2893_v47  ;;  %vm2396_vm4 = vmpackc.low %vm4825_vm1, %vm4825_vm1 }
 0x53b   : > { %v2906_v48 = vpop.permute.xlu1 %2905  ;;  %2367 = vmatprep.subr.msk.bf16.mxu0 %vm4361_vm0, %v2365_v1  ;;  %v2898_v26 = vunpack.i.h.bf16 %v2896_v14  ;;  %v2897_v37 = vunpack.i.l.bf16 %v2896_v14  ;;  %vm2375_vm0 = vmpackc.low %vm4806_vm10, %vm4806_vm10  ;;  %v2377_v43 = vpack.c.bf16 %v1749_v39, %v1747_v40  ;;  %v2380_v10 = vpack.c.bf16 %v1748_v42, %v1746_v34  ;;  %v1516_v14 = vld [vmem:[%s4491_s3 + $0x10] sm:$0xff] }
 0x53c   : > { %v2908_v20 = vunpack.i.h.bf16 %v2906_v48  ;;  %v2907_v46 = vunpack.i.l.bf16 %v2906_v48  ;;  %vm4823_vm10 = vcmask 908288  }
 0x53e   : > { %2370 = vmatpush1.bf16.msk.msra.mxu0 %vm4372_vm3, %v2368_v29  ;;  %v2901_v33 = vpop.permute.xlu0 %2900  ;;  %v1785_v52 = vsel %vm4809_vm13, %v2908_v20, %v2907_v46  ;;  %vm4810_vm3 = vmmov %vm4809_vm13 }
 0x53f   : > { %v2911_v0 = vpop.permute.xlu1 %2910  ;;  %2373 = vmatprep.subr.msk.bf16.mxu0 %vm2372_vm11, %v2371_v19  ;;  %v1783_v22 = vsel %vm4810_vm3, %v2898_v26, %v2897_v37  ;;  %v2903_v57 = vunpack.i.h.bf16 %v2901_v33  ;;  %v2902_v6 = vunpack.i.l.bf16 %v2901_v33  ;;  %vm4811_vm2 = vmmov %vm4810_vm3 }
 0x540   : > { %v2913_v45 = vunpack.i.h.bf16 %v2911_v0  ;;  %v2912_v49 = vunpack.i.l.bf16 %v2911_v0  ;;  %v1784_v28 = vsel %vm4811_vm2, %v2907_v46, %v2908_v20  ;;  %vm4812_vm7 = vmmov %vm4811_vm2  ;;  %v2383_v9 = vpack.c.bf16 %v1785_v52, %v1783_v22 }
 0x541   : > { %v1782_v8 = vsel %vm4812_vm7, %v2897_v37, %v2898_v26  ;;  %vm4816_vm5 = vmmov %vm4811_vm2 }
 0x542   : > { %2376 = vmatpush1.bf16.msk.msra.mxu0 %vm2375_vm0, %v2374_v44  ;;  %v2916_v18 = vpop.permute.xlu0 %2915  ;;  %v1789_v59 = vsel %vm4816_vm5, %v2913_v45, %v2912_v49  ;;  %vm4817_vm8 = vmmov %vm4811_vm2  ;;  %v2386_v36 = vpack.c.bf16 %v1784_v28, %v1782_v8 }
 0x543   : > { %v2926_v31 = vpop.permute.xlu1 %2925  ;;  %2379 = vmatprep.subr.msk.bf16.mxu0 %vm2372_vm11, %v2377_v43  ;;  %v2918_v41 = vunpack.i.h.bf16 %v2916_v18  ;;  %v2917_v5 = vunpack.i.l.bf16 %v2916_v18  ;;  %v1787_v17 = vsel %vm4817_vm8, %v2903_v57, %v2902_v6  ;;  %vm4436_vm11 = vmpackc.low %vm4818_vm12, %vm4818_vm12  ;;  %vm4833_vm12 = vcmask 261120  }
 0x544   : > { %v2928_v27 = vunpack.i.h.bf16 %v2926_v31  ;;  %v2927_v54 = vunpack.i.l.bf16 %v2926_v31  ;;  %vm4821_vm6 = vmmov %vm4811_vm2  ;;  %v2389_v61 = vpack.c.bf16 %v1789_v59, %v1787_v17 }
 0x545   : > { %v1786_v3 = vsel %vm4821_vm6, %v2902_v6, %v2903_v57  ;;  %vm4822_vm14 = vmmov %vm4811_vm2 }
 0x546   : > { %2382 = vmatpush1.bf16.msk.msra.mxu0 %vm2375_vm0, %v2380_v10  ;;  %v2921_v30 = vpop.permute.xlu0 %2920  ;;  %v1788_v2 = vsel %vm4822_vm14, %v2912_v49, %v2913_v45  ;;  %v1825_v55 = vsel %vm4823_vm10, %v2928_v27, %v2927_v54  ;;  %vm4824_vm0 = vmmov %vm4823_vm10 }
 0x547   : > { %v2931_v11 = vpop.permute.xlu1 %2930  ;;  %2385 = vmatprep.subr.msk.bf16.mxu0 %vm4420_vm9, %v2383_v9  ;;  %v1823_v35 = vsel %vm4824_vm0, %v2918_v41, %v2917_v5  ;;  %v2923_v53 = vunpack.i.h.bf16 %v2921_v30  ;;  %v2922_v12 = vunpack.i.l.bf16 %v2921_v30  ;;  %v2392_v13 = vpack.c.bf16 %v1788_v2, %v1786_v3  ;;  %vm4826_vm13 = vmmov %vm4824_vm0 }
 0x548   : > { %v2933_v63 = vunpack.i.h.bf16 %v2931_v11  ;;  %v2932_v25 = vunpack.i.l.bf16 %v2931_v11  ;;  %v1824_v58 = vsel %vm4826_vm13, %v2927_v54, %v2928_v27  ;;  %vm4827_vm3 = vmmov %vm4824_vm0  ;;  %v2395_v32 = vpack.c.bf16 %v1825_v55, %v1823_v35 }
 0x549   : > { %v1822_v51 = vsel %vm4827_vm3, %v2917_v5, %v2918_v41  ;;  %vm4828_vm2 = vmmov %vm4824_vm0 }
 0x54a   : > { %2388 = vmatpush1.bf16.msk.msra.mxu0 %vm4436_vm11, %v2386_v36  ;;  %v1829_v1 = vsel %vm4828_vm2, %v2933_v63, %v2932_v25  ;;  %vm4829_vm7 = vmmov %vm4824_vm0  ;;  %v2398_v47 = vpack.c.bf16 %v1824_v58, %v1822_v51 }
 0x54b   : > { %2391 = vmatprep.subr.msk.bf16.mxu0 %vm4420_vm9, %v2389_v61  ;;  %v1827_v21 = vsel %vm4829_vm7, %v2923_v53, %v2922_v12  ;;  %vm2399_vm9 = vmpackc.low %vm4830_vm15, %vm4830_vm15 }
 0x54c   : > { %vm4831_vm5 = vmmov %vm4824_vm0  ;;  %v2401_v24 = vpack.c.bf16 %v1829_v1, %v1827_v21 }
 0x54d   : > { %v1828_v38 = vsel %vm4831_vm5, %v2932_v25, %v2933_v63  ;;  %vm4832_vm8 = vmmov %vm4824_vm0 }
 0x54e   : > { %2394 = vmatpush1.bf16.msk.msra.mxu0 %vm4436_vm11, %v2392_v13  ;;  %v1826_v56 = vsel %vm4832_vm8, %v2922_v12, %v2923_v53 }
 0x54f   : > { %2397 = vmatprep.subr.msk.bf16.mxu0 %vm2396_vm4, %v2395_v32  ;;  %v2404_v23 = vpack.c.bf16 %v1828_v38, %v1826_v56 }
 0x551   : > { %1919 = vmatmul.mubr.f32.vlgmr.msra.gmra.mrb[0].mxu0 %v1514_v15 }
 0x552   : > { %2400 = vmatpush1.bf16.msk.msra.mxu0 %vm2399_vm9, %v2398_v47  ;;  %1989 = vmatprep.mubr.f32.mxu0 %v2952_v4 }
 0x553   : > { %2403 = vmatprep.subr.msk.bf16.mxu0 %vm2396_vm4, %v2401_v24 }
 0x556   : > { %2406 = vmatpush1.bf16.msk.msra.mxu0 %vm2399_vm9, %v2404_v23 }
 0x557   : > { %v1849_v48 = vpop.permute.xlu0 %1848 }
 0x559   : > { %2202 = vmatmul.mubr.msk.f32.vlgmr.msra.gmra.mrb[0].mxu0 %vm4833_vm12, %v1516_v14 }
 0x62c   : > { %v1991_v29 = vpop.f32.mrb[0].mxu0 }
 0x62d   : > { %v2407_v60 = vadd.f32 %v1991_v29, %v1849_v48  ;;  %v1993_v62 = vpop.f32.mrb[1].mxu0 }
 0x62e   : > { %v2408_v4 = vadd.f32 %v1993_v62, %v1849_v48 }
 0x62f   : > { %v1996_v16 = vmax.f32 %v2407_v60, 0.0 }
 0x630   : > { %v1997_v19 = vmax.f32 %v2408_v4, 0.0 }
 0x631   : > { %1998 = vst [vmem:[%s224_s7] sm:$0xff] %v1996_v16 }
 0x632   : > { %1999 = vst [vmem:[%s224_s7 + $0x8] sm:$0xff] %v1997_v19 }
 0x633 PF: > { %s15_s18 = sadd.s32 1, %s2942_s18  }
 0x634   : > { %p12_p4 = scmp.ge.s32.totalorder %s15_s18, 4  }
 0x636   :  { %14 = sbr.rel (!%p12_p4) target bundleno = 1 (0x1), region = 76 }

</bundles_post_ra>
